<compile_context>
chip_gen: v7x
topology: tpu7x:2x2x1
jax: 0.10.0
libtpu: 0.0.40
codegen_flags: <defaults>
</compile_context>

<pallas_src>
import functools
import numpy as np

import jax
import jax.numpy as jnp
from jax import lax
from jax.experimental import pallas as pl
from jax.experimental.pallas import tpu as pltpu


# ----------------------------------------------------------------------------
# Helpers
# ----------------------------------------------------------------------------

def _erf_approx(x):
    # Abramowitz & Stegun 7.1.26 (exp-only), max abs error ~1.5e-7.
    a1, a2, a3, a4, a5 = 0.254829592, -0.284496736, 1.421413741, -1.453152027, 1.061405429
    p = 0.3275911
    z = jnp.abs(x)
    t = 1.0 / (1.0 + p * z)
    poly = ((((a5 * t + a4) * t + a3) * t + a2) * t + a1) * t
    y = 1.0 - poly * jnp.exp(-z * z)
    return jnp.where(x >= 0, y, -y)


def _gelu_exact(x):
    # torch.nn.GELU default (erf formulation).
    return 0.5 * x * (1.0 + _erf_approx(x * 0.7071067811865476))


def _layernorm_f32(x, gamma, beta, eps=1e-5):
    mu = jnp.mean(x, axis=-1, keepdims=True)
    var = jnp.mean(jnp.square(x - mu), axis=-1, keepdims=True)
    return (x - mu) * lax.rsqrt(var + eps) * gamma + beta


def _largest_divisor_tile(dim, cap, align):
    t = (min(cap, dim) // align) * align
    while t >= align:
        if dim % t == 0:
            return t
        t -= align
    return dim


# ----------------------------------------------------------------------------
# Fused linear kernel:  o = LN_out( act( LN_in(x) @ W + b ) + residual )
# ----------------------------------------------------------------------------

def _make_fused_linear_kernel(has_ln_in, has_bias, has_res, has_ln_out, activation):
    def kernel(*refs):
        it = iter(refs)
        x_ref = next(it)
        w_ref = next(it)
        gin_ref = bin_ref = b_ref = r_ref = gout_ref = bout_ref = None
        if has_ln_in:
            gin_ref, bin_ref = next(it), next(it)
        if has_bias:
            b_ref = next(it)
        if has_res:
            r_ref = next(it)
        if has_ln_out:
            gout_ref, bout_ref = next(it), next(it)
        o_ref = next(it)

        x = x_ref[...].astype(jnp.float32)
        if has_ln_in:
            x = _layernorm_f32(x, gin_ref[...].astype(jnp.float32),
                               bin_ref[...].astype(jnp.float32))
        # bf16 MXU operands, f32 accumulate.
        out = jnp.dot(x.astype(jnp.bfloat16), w_ref[...].astype(jnp.bfloat16),
                      preferred_element_type=jnp.float32)
        if has_bias:
            out = out + b_ref[...].astype(jnp.float32)
        if activation == "gelu":
            out = _gelu_exact(out)
        if has_res:
            out = out + r_ref[...].astype(jnp.float32)
        if has_ln_out:
            out = _layernorm_f32(out, gout_ref[...].astype(jnp.float32),
                                 bout_ref[...].astype(jnp.float32))
        o_ref[...] = out.astype(o_ref.dtype)

    return kernel


def linear(x, w, b=None, *, residual=None, activation=None, ln_in=None, ln_out=None):
    """y = LN_out( act( LN_in(x) @ w + b ) + residual ), one Pallas call.

    x: (..., K) f32, w: (K, N) bf16/f32, b: (N,) or None, residual: (..., N).
    ln_in / ln_out: optional (gamma, beta) pairs fused as prologue / epilogue.
    """
    *lead, K = x.shape
    Kw, N = w.shape
    assert Kw == K
    M = int(np.prod(lead)) if lead else 1
    x2 = x.reshape(M, K)

    # TODO(synk): add a K-tiled accumulator path for very large K; every MAE
    # width used here fits a single resident K tile, so we skip the f32 acc
    # scratch and the pl.when init/finalize entirely.
    tn = N if (N <= 512 or ln_out is not None) else _largest_divisor_tile(N, 512, 128)
    tm = M if M <= 128 else _largest_divisor_tile(M, 128, 8)
    if (M // tm) * (N // tn) == 1 and M >= 16 and M % 16 == 0:
        tm = M // 2   # >=2 parallel grid steps so v7x's second TensorCore has work

    args = [x2, w]
    in_specs = [
        pl.BlockSpec((tm, K), lambda i, j: (i, 0)),
        pl.BlockSpec((K, tn), lambda i, j: (0, j)),
    ]
    if ln_in is not None:
        g, be = ln_in
        args += [g.reshape(1, K), be.reshape(1, K)]
        in_specs += [pl.BlockSpec((1, K), lambda i, j: (0, 0))] * 2
    if b is not None:
        args.append(b.reshape(1, N))
        in_specs.append(pl.BlockSpec((1, tn), lambda i, j: (0, j)))
    if residual is not None:
        args.append(residual.reshape(M, N))
        in_specs.append(pl.BlockSpec((tm, tn), lambda i, j: (i, j)))
    if ln_out is not None:
        g, be = ln_out
        args += [g.reshape(1, N), be.reshape(1, N)]
        in_specs += [pl.BlockSpec((1, N), lambda i, j: (0, 0))] * 2

    out = pl.pallas_call(
        _make_fused_linear_kernel(ln_in is not None, b is not None,
                                  residual is not None, ln_out is not None,
                                  activation),
        out_shape=jax.ShapeDtypeStruct((M, N), jnp.float32),
        grid=(M // tm, N // tn),
        in_specs=in_specs,
        out_specs=pl.BlockSpec((tm, tn), lambda i, j: (i, j)),
        compiler_params=pltpu.CompilerParams(
            dimension_semantics=("parallel", "parallel"),
            vmem_limit_bytes=32 * 1024 * 1024),
    )(*args)

    return out.reshape(*lead, N)


# ----------------------------------------------------------------------------
# Head-batched attention kernel
# ----------------------------------------------------------------------------

def _attn_kernel(q_ref, k_ref, v_ref, o_ref, *, scale):
    # Refs are (H, L, hd) for one batch element; all heads in one batched dot.
    q = q_ref[...].astype(jnp.bfloat16)
    k = k_ref[...].astype(jnp.bfloat16)
    v = v_ref[...].astype(jnp.bfloat16)
    s = jnp.einsum("hqd,hkd->hqk", q, k,
                   preferred_element_type=jnp.float32) * scale        # (H, L, L)
    m = jnp.max(s, axis=-1, keepdims=True)
    p = jnp.exp(s - m)
    p = p * pl.reciprocal(jnp.sum(p, axis=-1, keepdims=True), approx=True)  # EUP
    o = jnp.einsum("hqk,hkd->hqd", p.astype(jnp.bfloat16), v,
                   preferred_element_type=jnp.float32)                # (H, L, hd)
    o_ref[...] = o.astype(o_ref.dtype)
    # TODO(synk): switch to online-softmax (flash) K/V tiling if L grows beyond
    #             a few hundred; dense (L,L) scores are fine at L=16.


def attention(qkv, n_heads, width):
    """qkv: (B, L, 3W) -> (B, L, W).  scale = W**-0.5 (matches reference MSA)."""
    B, L, threeW = qkv.shape
    assert threeW == 3 * width
    hd = width // n_heads
    scale = float(width) ** (-0.5)

    # Layout plumbing done once in XLA (tiny): (B,L,3W) -> (3, B*H, L, hd).
    # Avoids lane-unaligned per-head slices and the lane concat in-kernel.
    qkv5 = qkv.reshape(B, L, 3, n_heads, hd).transpose(2, 0, 3, 1, 4)
    qkv5 = qkv5.reshape(3, B * n_heads, L, hd)
    q, k, v = qkv5[0], qkv5[1], qkv5[2]

    out = pl.pallas_call(
        functools.partial(_attn_kernel, scale=scale),
        out_shape=jax.ShapeDtypeStruct((B * n_heads, L, hd), jnp.float32),
        grid=(B,),
        in_specs=[pl.BlockSpec((n_heads, L, hd), lambda b: (b, 0, 0))] * 3,
        out_specs=pl.BlockSpec((n_heads, L, hd), lambda b: (b, 0, 0)),
        compiler_params=pltpu.CompilerParams(dimension_semantics=("parallel",)),
    )(q, k, v)

    # (B*H, L, hd) -> 'b i (n h)'
    return out.reshape(B, n_heads, L, hd).transpose(0, 2, 1, 3).reshape(B, L, width)


# ----------------------------------------------------------------------------
# Model (glue in plain JAX; all matmul/LN/attention compute via kernels above)
# ----------------------------------------------------------------------------

def sincos_pos_embed(max_len, dim):
    pos = np.arange(max_len, dtype=np.float32)[:, None]
    i = np.arange(dim // 2, dtype=np.float32)[None, :]
    angle = pos / np.power(10000.0, 2.0 * i / dim)
    pe = np.zeros((max_len, dim), np.float32)
    pe[:, 0::2] = np.sin(angle)
    pe[:, 1::2] = np.cos(angle)
    return jnp.asarray(pe)


def transformer_block(x, p, n_heads, final_ln=None):
    width = x.shape[-1]
    # --- MSA sublayer: pre-LN fused into qkv matmul, residual fused into out_proj ---
    qkv = linear(x, p["attn"]["qkv_w"], ln_in=(p["ln1_g"], p["ln1_b"]))   # no bias
    att = attention(qkv, n_heads, width)
    x = linear(att, p["attn"]["out_w"], residual=x)                        # no bias
    # --- MLP sublayer: GELU after BOTH linears (reference nn.Sequential) ---
    h = linear(x, p["mlp"]["w1"], p["mlp"]["b1"], activation="gelu",
               ln_in=(p["ln2_g"], p["ln2_b"]))
    x = linear(h, p["mlp"]["w2"], p["mlp"]["b2"], activation="gelu",
               residual=x, ln_out=final_ln)   # encoder-final LN fused here if given
    return x


def transformer_blocks(x, blocks, n_heads, final_ln=None):
    last = len(blocks) - 1
    for i, blk in enumerate(blocks):
        x = transformer_block(x, blk, n_heads,
                              final_ln=final_ln if i == last else None)
    return x


def patchify(image, patch_size):
    # 'b c (h p1) (w p2) -> b (h w) (p1 p2 c)'
    B, C, H, W = image.shape
    h, w = H // patch_size, W // patch_size
    x = image.reshape(B, C, h, patch_size, w, patch_size)
    x = x.transpose(0, 2, 4, 3, 5, 1)
    return x.reshape(B, h * w, patch_size * patch_size * C)


def unpatchify(x, patch_size, cell_size):
    # 'b (i1 i2) (p1 p2 c) -> b c (i1 p1) (i2 p2)'
    B = x.shape[0]
    c = x.shape[-1] // (patch_size * patch_size)
    x = x.reshape(B, cell_size, cell_size, patch_size, patch_size, c)
    x = x.transpose(0, 5, 1, 3, 2, 4)
    return x.reshape(B, c, cell_size * patch_size, cell_size * patch_size)


def mae_forward(params, image, keep_idx, cfg):
    ps, n_cells = cfg["patch_size"], cfg["n_cells"]
    n_tokens = n_cells * n_cells
    B = image.shape[0]
    pe = params["enc"]

    # ---- Patch embedding: LN -> Linear -> LN, all fused into ONE matmul call ----
    x = patchify(image, ps)                                       # (B, L, p^2*3)
    x = linear(x, pe["pe_w"], pe["pe_b"],
               ln_in=(pe["pe_ln1_g"], pe["pe_ln1_b"]),
               ln_out=(pe["pe_ln2_g"], pe["pe_ln2_b"]))
    x = x + params["enc_pos"][None, : x.shape[1], :]

    # ---- Visible-token gather (static indices, plain XLA gather) ----
    x_vis = x[:, keep_idx, :]
    x_vis = transformer_blocks(x_vis, pe["blocks"], cfg["enc_n_heads"],
                               final_ln=(pe["final_ln_g"], pe["final_ln_b"]))

    tokens = jnp.broadcast_to(pe["mask_token"][None, None, :],
                              (B, n_tokens, cfg["enc_width"]))
    tokens = tokens.at[:, keep_idx, :].set(x_vis)

    # ---- Encoder -> Decoder projection ----
    x = linear(tokens, params["proj_w"], params["proj_b"])

    # ---- Decoder ----
    pd = params["dec"]
    x = x + params["dec_pos"][None, : x.shape[1], :]
    x = transformer_blocks(x, pd["blocks"], cfg["dec_n_heads"])
    x = linear(x, pd["proj_w"], pd["proj_b"])                      # (B, L, p^2*3)
    return unpatchify(x, ps, n_cells)


# ----------------------------------------------------------------------------
# Deterministic parameter initialization (weights pre-laid-out as bf16)
# ----------------------------------------------------------------------------

def init_linear_params(key, din, dout, bias=True):
    kw, kb = jax.random.split(key)
    lim = 1.0 / np.sqrt(din)
    w = jax.random.uniform(kw, (din, dout), jnp.float32, -lim, lim).astype(jnp.bfloat16)
    b = jax.random.uniform(kb, (dout,), jnp.float32, -lim, lim) if bias else None
    return w, b


def init_block(key, width):
    ks = jax.random.split(key, 4)
    qkv_w, _ = init_linear_params(ks[0], width, 3 * width, bias=False)
    out_w, _ = init_linear_params(ks[1], width, width, bias=False)
    w1, b1 = init_linear_params(ks[2], width, 4 * width)
    w2, b2 = init_linear_params(ks[3], 4 * width, width)
    return {
        "ln1_g": jnp.ones((width,)), "ln1_b": jnp.zeros((width,)),
        "attn": {"qkv_w": qkv_w, "out_w": out_w},
        "ln2_g": jnp.ones((width,)), "ln2_b": jnp.zeros((width,)),
        "mlp": {"w1": w1, "b1": b1, "w2": w2, "b2": b2},
    }


def init_mae_params(key, cfg):
    in_feats = cfg["patch_size"] ** 2 * 3
    k = jax.random.split(key, 6)

    pe_w, pe_b = init_linear_params(k[0], in_feats, cfg["enc_width"])
    enc_blocks = [init_block(kk, cfg["enc_width"])
                  for kk in jax.random.split(k[1], cfg["enc_depth"])]
    mask_token = jax.random.normal(k[2], (cfg["enc_width"],), jnp.float32)

    proj_w, proj_b = init_linear_params(k[3], cfg["enc_width"], cfg["dec_width"])

    dec_blocks = [init_block(kk, cfg["dec_width"])
                  for kk in jax.random.split(k[4], cfg["dec_depth"])]
    dproj_w, dproj_b = init_linear_params(k[5], cfg["dec_width"], in_feats)

    return {
        "enc": {
            "pe_ln1_g": jnp.ones((in_feats,)), "pe_ln1_b": jnp.zeros((in_feats,)),
            "pe_w": pe_w, "pe_b": pe_b,
            "pe_ln2_g": jnp.ones((cfg["enc_width"],)), "pe_ln2_b": jnp.zeros((cfg["enc_width"],)),
            "blocks": enc_blocks,
            "final_ln_g": jnp.ones((cfg["enc_width"],)), "final_ln_b": jnp.zeros((cfg["enc_width"],)),
            "mask_token": mask_token,
        },
        "proj_w": proj_w, "proj_b": proj_b,
        "dec": {"blocks": dec_blocks, "proj_w": dproj_w, "proj_b": dproj_b},
        "enc_pos": sincos_pos_embed(cfg["n_cells"] ** 2, cfg["enc_width"]),
        "dec_pos": sincos_pos_embed(cfg["n_cells"] ** 2, cfg["dec_width"]),
    }


# ----------------------------------------------------------------------------
# Main
# ----------------------------------------------------------------------------

if __name__ == "__main__":
    cfg = dict(
        img_size=32, patch_size=8,
        enc_depth=2, enc_width=64, enc_n_heads=4,
        dec_depth=1, dec_width=32, dec_n_heads=2,
    )
    cfg["n_cells"] = cfg["img_size"] // cfg["patch_size"]
    n_tokens = cfg["n_cells"] ** 2
    mask_ratio = 0.75

    root = jax.random.PRNGKey(0)
    k_img, k_param, k_shuffle = jax.random.split(root, 3)

    batch = 2
    image = jax.random.normal(k_img, (batch, 3, cfg["img_size"], cfg["img_size"]),
                              jnp.float32)

    params = init_mae_params(k_param, cfg)

    # PatchShuffle: random permutation, drop last mask_ratio fraction (host-side).
    perm = np.asarray(jax.random.permutation(k_shuffle, n_tokens))
    n_masked = int(n_tokens * mask_ratio)
    mask_indices = perm[-n_masked:]
    mask = np.isin(np.arange(n_tokens), mask_indices)          # True = masked
    keep_idx = np.where(~mask)[0]

    # jit the whole forward; keep_idx / cfg are closed over as static constants.
    fwd = jax.jit(functools.partial(mae_forward, keep_idx=keep_idx, cfg=cfg))

    recon = jax.block_until_ready(fwd(params, image))

    assert recon.shape == (batch, 3, cfg["img_size"], cfg["img_size"])
    assert np.all(np.isfinite(np.asarray(recon)))
    print("KERNEL_OK")
</pallas_src>

<mosaic_0001>
module attributes {stable_mosaic.version = 11 : i64} {
  func.func @kernel(%arg0: i32, %arg1: i32, %arg2: memref<16x192xf32, #tpu.memory_space<vmem>>, %arg3: memref<192x64xbf16, #tpu.memory_space<vmem>>, %arg4: memref<1x192xf32, #tpu.memory_space<vmem>>, %arg5: memref<1x192xf32, #tpu.memory_space<vmem>>, %arg6: memref<1x64xf32, #tpu.memory_space<vmem>>, %arg7: memref<1x64xf32, #tpu.memory_space<vmem>>, %arg8: memref<1x64xf32, #tpu.memory_space<vmem>>, %arg9: memref<16x64xf32, #tpu.memory_space<vmem>>) attributes {dimension_semantics = [#tpu.dimension_semantics<parallel>, #tpu.dimension_semantics<parallel>], iteration_bounds = array<i64: 2, 1>, scalar_prefetch = 0 : i64, scratch_operands = 0 : i64, tpu.core_type = #tpu.core_type<tc>, window_params = [{transform_indices = @transform_0, window_bounds = array<i64: 16, 192>}, {transform_indices = @transform_1, window_bounds = array<i64: 192, 64>}, {pipeline_mode = #tpu.pipeline_mode<synchronous>, transform_indices = @transform_2, window_bounds = array<i64: 1, 192>}, {pipeline_mode = #tpu.pipeline_mode<synchronous>, transform_indices = @transform_3, window_bounds = array<i64: 1, 192>}, {transform_indices = @transform_4, window_bounds = array<i64: 1, 64>}, {pipeline_mode = #tpu.pipeline_mode<synchronous>, transform_indices = @transform_5, window_bounds = array<i64: 1, 64>}, {pipeline_mode = #tpu.pipeline_mode<synchronous>, transform_indices = @transform_6, window_bounds = array<i64: 1, 64>}, {transform_indices = @transform_7, window_bounds = array<i64: 16, 64>}]} {
    %c0 = arith.constant 0 : index
    %c0_0 = arith.constant 0 : index
    %0 = vector.load %arg2[%c0, %c0_0] : memref<16x192xf32, #tpu.memory_space<vmem>>, vector<16x192xf32>
    %c0_1 = arith.constant 0 : index
    %c0_2 = arith.constant 0 : index
    %1 = vector.load %arg4[%c0_1, %c0_2] : memref<1x192xf32, #tpu.memory_space<vmem>>, vector<1x192xf32>
    %c0_3 = arith.constant 0 : index
    %c0_4 = arith.constant 0 : index
    %2 = vector.load %arg5[%c0_3, %c0_4] : memref<1x192xf32, #tpu.memory_space<vmem>>, vector<1x192xf32>
    %cst = arith.constant dense<0.000000e+00> : vector<16xf32>
    %3 = vector.multi_reduction <add>, %0, %cst [1] : vector<16x192xf32> to vector<16xf32>
    %4 = vector.shape_cast %3 : vector<16xf32> to vector<16x1xf32>
    %cst_5 = arith.constant 1.920000e+02 : f32
    %5 = vector.broadcast %cst_5 : f32 to vector<16x1xf32>
    %6 = arith.divf %4, %5 : vector<16x1xf32>
    %7 = vector.broadcast %6 : vector<16x1xf32> to vector<16x192xf32>
    %8 = arith.subf %0, %7 : vector<16x192xf32>
    %9 = arith.mulf %8, %8 : vector<16x192xf32>
    %cst_6 = arith.constant dense<0.000000e+00> : vector<16xf32>
    %10 = vector.multi_reduction <add>, %9, %cst_6 [1] : vector<16x192xf32> to vector<16xf32>
    %11 = vector.shape_cast %10 : vector<16xf32> to vector<16x1xf32>
    %cst_7 = arith.constant 1.920000e+02 : f32
    %12 = vector.broadcast %cst_7 : f32 to vector<16x1xf32>
    %13 = arith.divf %11, %12 : vector<16x1xf32>
    %14 = vector.broadcast %6 : vector<16x1xf32> to vector<16x192xf32>
    %15 = arith.subf %0, %14 : vector<16x192xf32>
    %cst_8 = arith.constant 9.99999974E-6 : f32
    %16 = vector.broadcast %cst_8 : f32 to vector<16x1xf32>
    %17 = arith.addf %13, %16 : vector<16x1xf32>
    %18 = math.rsqrt %17 : vector<16x1xf32>
    %19 = vector.broadcast %18 : vector<16x1xf32> to vector<16x192xf32>
    %20 = arith.mulf %15, %19 : vector<16x192xf32>
    %21 = vector.broadcast %1 : vector<1x192xf32> to vector<16x192xf32>
    %22 = arith.mulf %20, %21 : vector<16x192xf32>
    %23 = vector.broadcast %2 : vector<1x192xf32> to vector<16x192xf32>
    %24 = arith.addf %22, %23 : vector<16x192xf32>
    %25 = arith.truncf %24 : vector<16x192xf32> to vector<16x192xbf16>
    %c0_9 = arith.constant 0 : index
    %c0_10 = arith.constant 0 : index
    %26 = vector.load %arg3[%c0_9, %c0_10] : memref<192x64xbf16, #tpu.memory_space<vmem>>, vector<192x64xbf16>
    %cst_11 = arith.constant dense<0.000000e+00> : vector<16x64xf32>
    %27 = tpu.matmul %25, %26, %cst_11 {dimension_numbers = #tpu.dot_dimension_numbers<[1], [0], [0], [1], [0, 0, 1, 1], [], []>} : vector<16x192xbf16>, vector<192x64xbf16>, vector<16x64xf32> -> vector<16x64xf32>
    %c0_12 = arith.constant 0 : index
    %c0_13 = arith.constant 0 : index
    %28 = vector.load %arg6[%c0_12, %c0_13] : memref<1x64xf32, #tpu.memory_space<vmem>>, vector<1x64xf32>
    %29 = vector.broadcast %28 : vector<1x64xf32> to vector<16x64xf32>
    %30 = arith.addf %27, %29 : vector<16x64xf32>
    %c0_14 = arith.constant 0 : index
    %c0_15 = arith.constant 0 : index
    %31 = vector.load %arg7[%c0_14, %c0_15] : memref<1x64xf32, #tpu.memory_space<vmem>>, vector<1x64xf32>
    %c0_16 = arith.constant 0 : index
    %c0_17 = arith.constant 0 : index
    %32 = vector.load %arg8[%c0_16, %c0_17] : memref<1x64xf32, #tpu.memory_space<vmem>>, vector<1x64xf32>
    %cst_18 = arith.constant dense<0.000000e+00> : vector<16xf32>
    %33 = vector.multi_reduction <add>, %30, %cst_18 [1] : vector<16x64xf32> to vector<16xf32>
    %34 = vector.shape_cast %33 : vector<16xf32> to vector<16x1xf32>
    %cst_19 = arith.constant 6.400000e+01 : f32
    %35 = vector.broadcast %cst_19 : f32 to vector<16x1xf32>
    %36 = arith.divf %34, %35 : vector<16x1xf32>
    %37 = vector.broadcast %36 : vector<16x1xf32> to vector<16x64xf32>
    %38 = arith.subf %30, %37 : vector<16x64xf32>
    %39 = arith.mulf %38, %38 : vector<16x64xf32>
    %cst_20 = arith.constant dense<0.000000e+00> : vector<16xf32>
    %40 = vector.multi_reduction <add>, %39, %cst_20 [1] : vector<16x64xf32> to vector<16xf32>
    %41 = vector.shape_cast %40 : vector<16xf32> to vector<16x1xf32>
    %cst_21 = arith.constant 6.400000e+01 : f32
    %42 = vector.broadcast %cst_21 : f32 to vector<16x1xf32>
    %43 = arith.divf %41, %42 : vector<16x1xf32>
    %44 = vector.broadcast %36 : vector<16x1xf32> to vector<16x64xf32>
    %45 = arith.subf %30, %44 : vector<16x64xf32>
    %cst_22 = arith.constant 9.99999974E-6 : f32
    %46 = vector.broadcast %cst_22 : f32 to vector<16x1xf32>
    %47 = arith.addf %43, %46 : vector<16x1xf32>
    %48 = math.rsqrt %47 : vector<16x1xf32>
    %49 = vector.broadcast %48 : vector<16x1xf32> to vector<16x64xf32>
    %50 = arith.mulf %45, %49 : vector<16x64xf32>
    %51 = vector.broadcast %31 : vector<1x64xf32> to vector<16x64xf32>
    %52 = arith.mulf %50, %51 : vector<16x64xf32>
    %53 = vector.broadcast %32 : vector<1x64xf32> to vector<16x64xf32>
    %54 = arith.addf %52, %53 : vector<16x64xf32>
    %c0_23 = arith.constant 0 : index
    %c0_24 = arith.constant 0 : index
    %55 = vector.load %arg9[%c0_23, %c0_24] : memref<16x64xf32, #tpu.memory_space<vmem>>, vector<16x64xf32>
    tpu.vector_store %arg9[%c0_23, %c0_24], %54 {strides = array<i32>} : memref<16x64xf32, #tpu.memory_space<vmem>>, vector<16x64xf32>,
    return
  }
  func.func @transform_0(%arg0: i32, %arg1: i32) -> (i32, i32) {
    %c0_i32 = arith.constant 0 : i32
    %c0_i32_0 = arith.constant 0 : i32
    return %arg0, %c0_i32 : i32, i32
  }
  func.func @transform_1(%arg0: i32, %arg1: i32) -> (i32, i32) {
    %c0_i32 = arith.constant 0 : i32
    %c0_i32_0 = arith.constant 0 : i32
    return %c0_i32, %arg1 : i32, i32
  }
  func.func @transform_2(%arg0: i32, %arg1: i32) -> (i32, i32) {
    %c0_i32 = arith.constant 0 : i32
    %c0_i32_0 = arith.constant 0 : i32
    %c0_i32_1 = arith.constant 0 : i32
    return %c0_i32, %c0_i32_0 : i32, i32
  }
  func.func @transform_3(%arg0: i32, %arg1: i32) -> (i32, i32) {
    %c0_i32 = arith.constant 0 : i32
    %c0_i32_0 = arith.constant 0 : i32
    %c0_i32_1 = arith.constant 0 : i32
    return %c0_i32, %c0_i32_0 : i32, i32
  }
  func.func @transform_4(%arg0: i32, %arg1: i32) -> (i32, i32) {
    %c0_i32 = arith.constant 0 : i32
    %c0_i32_0 = arith.constant 0 : i32
    return %c0_i32, %arg1 : i32, i32
  }
  func.func @transform_5(%arg0: i32, %arg1: i32) -> (i32, i32) {
    %c0_i32 = arith.constant 0 : i32
    %c0_i32_0 = arith.constant 0 : i32
    %c0_i32_1 = arith.constant 0 : i32
    return %c0_i32, %c0_i32_0 : i32, i32
  }
  func.func @transform_6(%arg0: i32, %arg1: i32) -> (i32, i32) {
    %c0_i32 = arith.constant 0 : i32
    %c0_i32_0 = arith.constant 0 : i32
    %c0_i32_1 = arith.constant 0 : i32
    return %c0_i32, %c0_i32_0 : i32, i32
  }
  func.func @transform_7(%arg0: i32, %arg1: i32) -> (i32, i32) {
    %c0_i32 = arith.constant 0 : i32
    return %arg0, %arg1 : i32, i32
  }
}

module attributes {stable_mosaic.version = 11 : i64} {
  func.func @kernel(%arg0: i32, %arg1: i32, %arg2: memref<8x64xf32, #tpu.memory_space<vmem>>, %arg3: memref<64x192xbf16, #tpu.memory_space<vmem>>, %arg4: memref<1x64xf32, #tpu.memory_space<vmem>>, %arg5: memref<1x64xf32, #tpu.memory_space<vmem>>, %arg6: memref<8x192xf32, #tpu.memory_space<vmem>>) attributes {dimension_semantics = [#tpu.dimension_semantics<parallel>, #tpu.dimension_semantics<parallel>], iteration_bounds = array<i64: 1, 1>, scalar_prefetch = 0 : i64, scratch_operands = 0 : i64, tpu.core_type = #tpu.core_type<tc>, window_params = [{transform_indices = @transform_0, window_bounds = array<i64: 8, 64>}, {transform_indices = @transform_1, window_bounds = array<i64: 64, 192>}, {pipeline_mode = #tpu.pipeline_mode<synchronous>, transform_indices = @transform_2, window_bounds = array<i64: 1, 64>}, {pipeline_mode = #tpu.pipeline_mode<synchronous>, transform_indices = @transform_3, window_bounds = array<i64: 1, 64>}, {transform_indices = @transform_4, window_bounds = array<i64: 8, 192>}]} {
    %c0 = arith.constant 0 : index
    %c0_0 = arith.constant 0 : index
    %0 = vector.load %arg2[%c0, %c0_0] : memref<8x64xf32, #tpu.memory_space<vmem>>, vector<8x64xf32>
    %c0_1 = arith.constant 0 : index
    %c0_2 = arith.constant 0 : index
    %1 = vector.load %arg4[%c0_1, %c0_2] : memref<1x64xf32, #tpu.memory_space<vmem>>, vector<1x64xf32>
    %c0_3 = arith.constant 0 : index
    %c0_4 = arith.constant 0 : index
    %2 = vector.load %arg5[%c0_3, %c0_4] : memref<1x64xf32, #tpu.memory_space<vmem>>, vector<1x64xf32>
    %cst = arith.constant dense<0.000000e+00> : vector<8xf32>
    %3 = vector.multi_reduction <add>, %0, %cst [1] : vector<8x64xf32> to vector<8xf32>
    %4 = vector.shape_cast %3 : vector<8xf32> to vector<8x1xf32>
    %cst_5 = arith.constant 6.400000e+01 : f32
    %5 = vector.broadcast %cst_5 : f32 to vector<8x1xf32>
    %6 = arith.divf %4, %5 : vector<8x1xf32>
    %7 = vector.broadcast %6 : vector<8x1xf32> to vector<8x64xf32>
    %8 = arith.subf %0, %7 : vector<8x64xf32>
    %9 = arith.mulf %8, %8 : vector<8x64xf32>
    %cst_6 = arith.constant dense<0.000000e+00> : vector<8xf32>
    %10 = vector.multi_reduction <add>, %9, %cst_6 [1] : vector<8x64xf32> to vector<8xf32>
    %11 = vector.shape_cast %10 : vector<8xf32> to vector<8x1xf32>
    %cst_7 = arith.constant 6.400000e+01 : f32
    %12 = vector.broadcast %cst_7 : f32 to vector<8x1xf32>
    %13 = arith.divf %11, %12 : vector<8x1xf32>
    %14 = vector.broadcast %6 : vector<8x1xf32> to vector<8x64xf32>
    %15 = arith.subf %0, %14 : vector<8x64xf32>
    %cst_8 = arith.constant 9.99999974E-6 : f32
    %16 = vector.broadcast %cst_8 : f32 to vector<8x1xf32>
    %17 = arith.addf %13, %16 : vector<8x1xf32>
    %18 = math.rsqrt %17 : vector<8x1xf32>
    %19 = vector.broadcast %18 : vector<8x1xf32> to vector<8x64xf32>
    %20 = arith.mulf %15, %19 : vector<8x64xf32>
    %21 = vector.broadcast %1 : vector<1x64xf32> to vector<8x64xf32>
    %22 = arith.mulf %20, %21 : vector<8x64xf32>
    %23 = vector.broadcast %2 : vector<1x64xf32> to vector<8x64xf32>
    %24 = arith.addf %22, %23 : vector<8x64xf32>
    %25 = arith.truncf %24 : vector<8x64xf32> to vector<8x64xbf16>
    %c0_9 = arith.constant 0 : index
    %c0_10 = arith.constant 0 : index
    %26 = vector.load %arg3[%c0_9, %c0_10] : memref<64x192xbf16, #tpu.memory_space<vmem>>, vector<64x192xbf16>
    %cst_11 = arith.constant dense<0.000000e+00> : vector<8x192xf32>
    %27 = tpu.matmul %25, %26, %cst_11 {dimension_numbers = #tpu.dot_dimension_numbers<[1], [0], [0], [1], [0, 0, 1, 1], [], []>} : vector<8x64xbf16>, vector<64x192xbf16>, vector<8x192xf32> -> vector<8x192xf32>
    %c0_12 = arith.constant 0 : index
    %c0_13 = arith.constant 0 : index
    %28 = vector.load %arg6[%c0_12, %c0_13] : memref<8x192xf32, #tpu.memory_space<vmem>>, vector<8x192xf32>
    tpu.vector_store %arg6[%c0_12, %c0_13], %27 {strides = array<i32>} : memref<8x192xf32, #tpu.memory_space<vmem>>, vector<8x192xf32>,
    return
  }
  func.func @transform_0(%arg0: i32, %arg1: i32) -> (i32, i32) {
    %c0_i32 = arith.constant 0 : i32
    %c0_i32_0 = arith.constant 0 : i32
    return %arg0, %c0_i32 : i32, i32
  }
  func.func @transform_1(%arg0: i32, %arg1: i32) -> (i32, i32) {
    %c0_i32 = arith.constant 0 : i32
    %c0_i32_0 = arith.constant 0 : i32
    return %c0_i32, %arg1 : i32, i32
  }
  func.func @transform_2(%arg0: i32, %arg1: i32) -> (i32, i32) {
    %c0_i32 = arith.constant 0 : i32
    %c0_i32_0 = arith.constant 0 : i32
    %c0_i32_1 = arith.constant 0 : i32
    return %c0_i32, %c0_i32_0 : i32, i32
  }
  func.func @transform_3(%arg0: i32, %arg1: i32) -> (i32, i32) {
    %c0_i32 = arith.constant 0 : i32
    %c0_i32_0 = arith.constant 0 : i32
    %c0_i32_1 = arith.constant 0 : i32
    return %c0_i32, %c0_i32_0 : i32, i32
  }
  func.func @transform_4(%arg0: i32, %arg1: i32) -> (i32, i32) {
    %c0_i32 = arith.constant 0 : i32
    return %arg0, %arg1 : i32, i32
  }
}

module attributes {stable_mosaic.version = 11 : i64} {
  func.func @_attn_kernel(%arg0: i32, %arg1: memref<4x4x16xf32, #tpu.memory_space<vmem>>, %arg2: memref<4x4x16xf32, #tpu.memory_space<vmem>>, %arg3: memref<4x4x16xf32, #tpu.memory_space<vmem>>, %arg4: memref<4x4x16xf32, #tpu.memory_space<vmem>>) attributes {dimension_semantics = [#tpu.dimension_semantics<parallel>], iteration_bounds = array<i64: 2>, scalar_prefetch = 0 : i64, scratch_operands = 0 : i64, tpu.core_type = #tpu.core_type<tc>, window_params = [{transform_indices = @transform_0, window_bounds = array<i64: 4, 4, 16>}, {transform_indices = @transform_1, window_bounds = array<i64: 4, 4, 16>}, {transform_indices = @transform_2, window_bounds = array<i64: 4, 4, 16>}, {transform_indices = @transform_3, window_bounds = array<i64: 4, 4, 16>}]} {
    %c0 = arith.constant 0 : index
    %c0_0 = arith.constant 0 : index
    %c0_1 = arith.constant 0 : index
    %0 = vector.load %arg1[%c0, %c0_0, %c0_1] : memref<4x4x16xf32, #tpu.memory_space<vmem>>, vector<4x4x16xf32>
    %1 = arith.truncf %0 : vector<4x4x16xf32> to vector<4x4x16xbf16>
    %c0_2 = arith.constant 0 : index
    %c0_3 = arith.constant 0 : index
    %c0_4 = arith.constant 0 : index
    %2 = vector.load %arg2[%c0_2, %c0_3, %c0_4] : memref<4x4x16xf32, #tpu.memory_space<vmem>>, vector<4x4x16xf32>
    %3 = arith.truncf %2 : vector<4x4x16xf32> to vector<4x4x16xbf16>
    %c0_5 = arith.constant 0 : index
    %c0_6 = arith.constant 0 : index
    %c0_7 = arith.constant 0 : index
    %4 = vector.load %arg3[%c0_5, %c0_6, %c0_7] : memref<4x4x16xf32, #tpu.memory_space<vmem>>, vector<4x4x16xf32>
    %5 = arith.truncf %4 : vector<4x4x16xf32> to vector<4x4x16xbf16>
    "tpu.trace_start"() <{level = 10 : i32, message = "hqd,hkd->hqk"}> : () -> ()
    %cst = arith.constant dense<0.000000e+00> : vector<4x4x4xf32>
    %6 = tpu.matmul %1, %3, %cst {dimension_numbers = #tpu.dot_dimension_numbers<[2], [2], [1], [1], [0, 0, 0, 1, 1, 1], [0], [0]>} : vector<4x4x16xbf16>, vector<4x4x16xbf16>, vector<4x4x4xf32> -> vector<4x4x4xf32>
    "tpu.trace_stop"() : () -> ()
    %cst_8 = arith.constant 1.250000e-01 : f32
    %7 = vector.broadcast %cst_8 : f32 to vector<4x4x4xf32>
    %8 = arith.mulf %6, %7 : vector<4x4x4xf32>
    %cst_9 = arith.constant dense<0xFF800000> : vector<4x4xf32>
    %9 = vector.multi_reduction <maximumf>, %8, %cst_9 [2] : vector<4x4x4xf32> to vector<4x4xf32>
    %10 = vector.shape_cast %9 : vector<4x4xf32> to vector<4x4x1xf32>
    %11 = vector.broadcast %10 : vector<4x4x1xf32> to vector<4x4x4xf32>
    %12 = arith.subf %8, %11 : vector<4x4x4xf32>
    %13 = math.exp %12 : vector<4x4x4xf32>
    %cst_10 = arith.constant dense<0.000000e+00> : vector<4x4xf32>
    %14 = vector.multi_reduction <add>, %13, %cst_10 [2] : vector<4x4x4xf32> to vector<4x4xf32>
    %15 = vector.shape_cast %14 : vector<4x4xf32> to vector<4x4x1xf32>
    %16 = tpu.reciprocal %15 {approx = true} : vector<4x4x1xf32> -> vector<4x4x1xf32>
    %17 = vector.broadcast %16 : vector<4x4x1xf32> to vector<4x4x4xf32>
    %18 = arith.mulf %13, %17 : vector<4x4x4xf32>
    %19 = arith.truncf %18 : vector<4x4x4xf32> to vector<4x4x4xbf16>
    "tpu.trace_start"() <{level = 10 : i32, message = "hqk,hkd->hqd"}> : () -> ()
    %cst_11 = arith.constant dense<0.000000e+00> : vector<4x4x16xf32>
    %20 = tpu.matmul %19, %5, %cst_11 {dimension_numbers = #tpu.dot_dimension_numbers<[2], [1], [1], [2], [0, 0, 0, 1, 1, 2], [0], [0]>} : vector<4x4x4xbf16>, vector<4x4x16xbf16>, vector<4x4x16xf32> -> vector<4x4x16xf32>
    "tpu.trace_stop"() : () -> ()
    %c0_12 = arith.constant 0 : index
    %c0_13 = arith.constant 0 : index
    %c0_14 = arith.constant 0 : index
    %21 = vector.load %arg4[%c0_12, %c0_13, %c0_14] : memref<4x4x16xf32, #tpu.memory_space<vmem>>, vector<4x4x16xf32>
    tpu.vector_store %arg4[%c0_12, %c0_13, %c0_14], %20 {strides = array<i32>} : memref<4x4x16xf32, #tpu.memory_space<vmem>>, vector<4x4x16xf32>,
    return
  }
  func.func @transform_0(%arg0: i32) -> (i32, i32, i32) {
    %c0_i32 = arith.constant 0 : i32
    %c0_i32_0 = arith.constant 0 : i32
    %c0_i32_1 = arith.constant 0 : i32
    return %arg0, %c0_i32, %c0_i32_0 : i32, i32, i32
  }
  func.func @transform_1(%arg0: i32) -> (i32, i32, i32) {
    %c0_i32 = arith.constant 0 : i32
    %c0_i32_0 = arith.constant 0 : i32
    %c0_i32_1 = arith.constant 0 : i32
    return %arg0, %c0_i32, %c0_i32_0 : i32, i32, i32
  }
  func.func @transform_2(%arg0: i32) -> (i32, i32, i32) {
    %c0_i32 = arith.constant 0 : i32
    %c0_i32_0 = arith.constant 0 : i32
    %c0_i32_1 = arith.constant 0 : i32
    return %arg0, %c0_i32, %c0_i32_0 : i32, i32, i32
  }
  func.func @transform_3(%arg0: i32) -> (i32, i32, i32) {
    %c0_i32 = arith.constant 0 : i32
    %c0_i32_0 = arith.constant 0 : i32
    %c0_i32_1 = arith.constant 0 : i32
    return %arg0, %c0_i32, %c0_i32_0 : i32, i32, i32
  }
}

module attributes {stable_mosaic.version = 11 : i64} {
  func.func @kernel(%arg0: i32, %arg1: i32, %arg2: memref<8x64xf32, #tpu.memory_space<vmem>>, %arg3: memref<64x256xbf16, #tpu.memory_space<vmem>>, %arg4: memref<1x64xf32, #tpu.memory_space<vmem>>, %arg5: memref<1x64xf32, #tpu.memory_space<vmem>>, %arg6: memref<1x256xf32, #tpu.memory_space<vmem>>, %arg7: memref<8x256xf32, #tpu.memory_space<vmem>>) attributes {dimension_semantics = [#tpu.dimension_semantics<parallel>, #tpu.dimension_semantics<parallel>], iteration_bounds = array<i64: 1, 1>, scalar_prefetch = 0 : i64, scratch_operands = 0 : i64, tpu.core_type = #tpu.core_type<tc>, window_params = [{transform_indices = @transform_0, window_bounds = array<i64: 8, 64>}, {transform_indices = @transform_1, window_bounds = array<i64: 64, 256>}, {pipeline_mode = #tpu.pipeline_mode<synchronous>, transform_indices = @transform_2, window_bounds = array<i64: 1, 64>}, {pipeline_mode = #tpu.pipeline_mode<synchronous>, transform_indices = @transform_3, window_bounds = array<i64: 1, 64>}, {transform_indices = @transform_4, window_bounds = array<i64: 1, 256>}, {transform_indices = @transform_5, window_bounds = array<i64: 8, 256>}]} {
    %c0 = arith.constant 0 : index
    %c0_0 = arith.constant 0 : index
    %0 = vector.load %arg2[%c0, %c0_0] : memref<8x64xf32, #tpu.memory_space<vmem>>, vector<8x64xf32>
    %c0_1 = arith.constant 0 : index
    %c0_2 = arith.constant 0 : index
    %1 = vector.load %arg4[%c0_1, %c0_2] : memref<1x64xf32, #tpu.memory_space<vmem>>, vector<1x64xf32>
    %c0_3 = arith.constant 0 : index
    %c0_4 = arith.constant 0 : index
    %2 = vector.load %arg5[%c0_3, %c0_4] : memref<1x64xf32, #tpu.memory_space<vmem>>, vector<1x64xf32>
    %cst = arith.constant dense<0.000000e+00> : vector<8xf32>
    %3 = vector.multi_reduction <add>, %0, %cst [1] : vector<8x64xf32> to vector<8xf32>
    %4 = vector.shape_cast %3 : vector<8xf32> to vector<8x1xf32>
    %cst_5 = arith.constant 6.400000e+01 : f32
    %5 = vector.broadcast %cst_5 : f32 to vector<8x1xf32>
    %6 = arith.divf %4, %5 : vector<8x1xf32>
    %7 = vector.broadcast %6 : vector<8x1xf32> to vector<8x64xf32>
    %8 = arith.subf %0, %7 : vector<8x64xf32>
    %9 = arith.mulf %8, %8 : vector<8x64xf32>
    %cst_6 = arith.constant dense<0.000000e+00> : vector<8xf32>
    %10 = vector.multi_reduction <add>, %9, %cst_6 [1] : vector<8x64xf32> to vector<8xf32>
    %11 = vector.shape_cast %10 : vector<8xf32> to vector<8x1xf32>
    %cst_7 = arith.constant 6.400000e+01 : f32
    %12 = vector.broadcast %cst_7 : f32 to vector<8x1xf32>
    %13 = arith.divf %11, %12 : vector<8x1xf32>
    %14 = vector.broadcast %6 : vector<8x1xf32> to vector<8x64xf32>
    %15 = arith.subf %0, %14 : vector<8x64xf32>
    %cst_8 = arith.constant 9.99999974E-6 : f32
    %16 = vector.broadcast %cst_8 : f32 to vector<8x1xf32>
    %17 = arith.addf %13, %16 : vector<8x1xf32>
    %18 = math.rsqrt %17 : vector<8x1xf32>
    %19 = vector.broadcast %18 : vector<8x1xf32> to vector<8x64xf32>
    %20 = arith.mulf %15, %19 : vector<8x64xf32>
    %21 = vector.broadcast %1 : vector<1x64xf32> to vector<8x64xf32>
    %22 = arith.mulf %20, %21 : vector<8x64xf32>
    %23 = vector.broadcast %2 : vector<1x64xf32> to vector<8x64xf32>
    %24 = arith.addf %22, %23 : vector<8x64xf32>
    %25 = arith.truncf %24 : vector<8x64xf32> to vector<8x64xbf16>
    %c0_9 = arith.constant 0 : index
    %c0_10 = arith.constant 0 : index
    %26 = vector.load %arg3[%c0_9, %c0_10] : memref<64x256xbf16, #tpu.memory_space<vmem>>, vector<64x256xbf16>
    %cst_11 = arith.constant dense<0.000000e+00> : vector<8x256xf32>
    %27 = tpu.matmul %25, %26, %cst_11 {dimension_numbers = #tpu.dot_dimension_numbers<[1], [0], [0], [1], [0, 0, 1, 1], [], []>} : vector<8x64xbf16>, vector<64x256xbf16>, vector<8x256xf32> -> vector<8x256xf32>
    %c0_12 = arith.constant 0 : index
    %c0_13 = arith.constant 0 : index
    %28 = vector.load %arg6[%c0_12, %c0_13] : memref<1x256xf32, #tpu.memory_space<vmem>>, vector<1x256xf32>
    %29 = vector.broadcast %28 : vector<1x256xf32> to vector<8x256xf32>
    %30 = arith.addf %27, %29 : vector<8x256xf32>
    %cst_14 = arith.constant 5.000000e-01 : f32
    %31 = vector.broadcast %cst_14 : f32 to vector<8x256xf32>
    %32 = arith.mulf %31, %30 : vector<8x256xf32>
    %cst_15 = arith.constant 0.707106769 : f32
    %33 = vector.broadcast %cst_15 : f32 to vector<8x256xf32>
    %34 = arith.mulf %30, %33 : vector<8x256xf32>
    %35 = math.absf %34 : vector<8x256xf32>
    %cst_16 = arith.constant 0.327591091 : f32
    %36 = vector.broadcast %cst_16 : f32 to vector<8x256xf32>
    %37 = arith.mulf %36, %35 : vector<8x256xf32>
    %cst_17 = arith.constant 1.000000e+00 : f32
    %38 = vector.broadcast %cst_17 : f32 to vector<8x256xf32>
    %39 = arith.addf %38, %37 : vector<8x256xf32>
    %cst_18 = arith.constant 1.000000e+00 : f32
    %40 = vector.broadcast %cst_18 : f32 to vector<8x256xf32>
    %41 = arith.divf %40, %39 : vector<8x256xf32>
    %cst_19 = arith.constant 1.06140542 : f32
    %42 = vector.broadcast %cst_19 : f32 to vector<8x256xf32>
    %43 = arith.mulf %42, %41 : vector<8x256xf32>
    %cst_20 = arith.constant -1.45315206 : f32
    %44 = vector.broadcast %cst_20 : f32 to vector<8x256xf32>
    %45 = arith.addf %43, %44 : vector<8x256xf32>
    %46 = arith.mulf %45, %41 : vector<8x256xf32>
    %cst_21 = arith.constant 1.42141378 : f32
    %47 = vector.broadcast %cst_21 : f32 to vector<8x256xf32>
    %48 = arith.addf %46, %47 : vector<8x256xf32>
    %49 = arith.mulf %48, %41 : vector<8x256xf32>
    %cst_22 = arith.constant -0.284496725 : f32
    %50 = vector.broadcast %cst_22 : f32 to vector<8x256xf32>
    %51 = arith.addf %49, %50 : vector<8x256xf32>
    %52 = arith.mulf %51, %41 : vector<8x256xf32>
    %cst_23 = arith.constant 0.254829586 : f32
    %53 = vector.broadcast %cst_23 : f32 to vector<8x256xf32>
    %54 = arith.addf %52, %53 : vector<8x256xf32>
    %55 = arith.mulf %54, %41 : vector<8x256xf32>
    %cst_24 = arith.constant 0.000000e+00 : f32
    %56 = vector.broadcast %cst_24 : f32 to vector<8x256xf32>
    %57 = arith.subf %56, %35 : vector<8x256xf32>
    %58 = arith.mulf %57, %35 : vector<8x256xf32>
    %59 = math.exp %58 : vector<8x256xf32>
    %60 = arith.mulf %55, %59 : vector<8x256xf32>
    %cst_25 = arith.constant 1.000000e+00 : f32
    %61 = vector.broadcast %cst_25 : f32 to vector<8x256xf32>
    %62 = arith.subf %61, %60 : vector<8x256xf32>
    %cst_26 = arith.constant 0.000000e+00 : f32
    %63 = vector.broadcast %cst_26 : f32 to vector<8x256xf32>
    %64 = arith.cmpf oge, %34, %63 : vector<8x256xf32>
    %cst_27 = arith.constant 0.000000e+00 : f32
    %65 = vector.broadcast %cst_27 : f32 to vector<8x256xf32>
    %66 = arith.subf %65, %62 : vector<8x256xf32>
    %67 = arith.select %64, %62, %66 : vector<8x256xi1>, vector<8x256xf32>
    %cst_28 = arith.constant 1.000000e+00 : f32
    %68 = vector.broadcast %cst_28 : f32 to vector<8x256xf32>
    %69 = arith.addf %68, %67 : vector<8x256xf32>
    %70 = arith.mulf %32, %69 : vector<8x256xf32>
    %c0_29 = arith.constant 0 : index
    %c0_30 = arith.constant 0 : index
    %71 = vector.load %arg7[%c0_29, %c0_30] : memref<8x256xf32, #tpu.memory_space<vmem>>, vector<8x256xf32>
    tpu.vector_store %arg7[%c0_29, %c0_30], %70 {strides = array<i32>} : memref<8x256xf32, #tpu.memory_space<vmem>>, vector<8x256xf32>,
    return
  }
  func.func @transform_0(%arg0: i32, %arg1: i32) -> (i32, i32) {
    %c0_i32 = arith.constant 0 : i32
    %c0_i32_0 = arith.constant 0 : i32
    return %arg0, %c0_i32 : i32, i32
  }
  func.func @transform_1(%arg0: i32, %arg1: i32) -> (i32, i32) {
    %c0_i32 = arith.constant 0 : i32
    %c0_i32_0 = arith.constant 0 : i32
    return %c0_i32, %arg1 : i32, i32
  }
  func.func @transform_2(%arg0: i32, %arg1: i32) -> (i32, i32) {
    %c0_i32 = arith.constant 0 : i32
    %c0_i32_0 = arith.constant 0 : i32
    %c0_i32_1 = arith.constant 0 : i32
    return %c0_i32, %c0_i32_0 : i32, i32
  }
  func.func @transform_3(%arg0: i32, %arg1: i32) -> (i32, i32) {
    %c0_i32 = arith.constant 0 : i32
    %c0_i32_0 = arith.constant 0 : i32
    %c0_i32_1 = arith.constant 0 : i32
    return %c0_i32, %c0_i32_0 : i32, i32
  }
  func.func @transform_4(%arg0: i32, %arg1: i32) -> (i32, i32) {
    %c0_i32 = arith.constant 0 : i32
    %c0_i32_0 = arith.constant 0 : i32
    return %c0_i32, %arg1 : i32, i32
  }
  func.func @transform_5(%arg0: i32, %arg1: i32) -> (i32, i32) {
    %c0_i32 = arith.constant 0 : i32
    return %arg0, %arg1 : i32, i32
  }
}

module attributes {stable_mosaic.version = 11 : i64} {
  func.func @kernel(%arg0: i32, %arg1: i32, %arg2: memref<8x64xf32, #tpu.memory_space<vmem>>, %arg3: memref<64x64xbf16, #tpu.memory_space<vmem>>, %arg4: memref<8x64xf32, #tpu.memory_space<vmem>>, %arg5: memref<8x64xf32, #tpu.memory_space<vmem>>) attributes {dimension_semantics = [#tpu.dimension_semantics<parallel>, #tpu.dimension_semantics<parallel>], iteration_bounds = array<i64: 1, 1>, scalar_prefetch = 0 : i64, scratch_operands = 0 : i64, tpu.core_type = #tpu.core_type<tc>, window_params = [{transform_indices = @transform_0, window_bounds = array<i64: 8, 64>}, {transform_indices = @transform_1, window_bounds = array<i64: 64, 64>}, {transform_indices = @transform_2, window_bounds = array<i64: 8, 64>}, {transform_indices = @transform_3, window_bounds = array<i64: 8, 64>}]} {
    %c0 = arith.constant 0 : index
    %c0_0 = arith.constant 0 : index
    %0 = vector.load %arg2[%c0, %c0_0] : memref<8x64xf32, #tpu.memory_space<vmem>>, vector<8x64xf32>
    %1 = arith.truncf %0 : vector<8x64xf32> to vector<8x64xbf16>
    %c0_1 = arith.constant 0 : index
    %c0_2 = arith.constant 0 : index
    %2 = vector.load %arg3[%c0_1, %c0_2] : memref<64x64xbf16, #tpu.memory_space<vmem>>, vector<64x64xbf16>
    %cst = arith.constant dense<0.000000e+00> : vector<8x64xf32>
    %3 = tpu.matmul %1, %2, %cst {dimension_numbers = #tpu.dot_dimension_numbers<[1], [0], [0], [1], [0, 0, 1, 1], [], []>} : vector<8x64xbf16>, vector<64x64xbf16>, vector<8x64xf32> -> vector<8x64xf32>
    %c0_3 = arith.constant 0 : index
    %c0_4 = arith.constant 0 : index
    %4 = vector.load %arg4[%c0_3, %c0_4] : memref<8x64xf32, #tpu.memory_space<vmem>>, vector<8x64xf32>
    %5 = arith.addf %3, %4 : vector<8x64xf32>
    %c0_5 = arith.constant 0 : index
    %c0_6 = arith.constant 0 : index
    %6 = vector.load %arg5[%c0_5, %c0_6] : memref<8x64xf32, #tpu.memory_space<vmem>>, vector<8x64xf32>
    tpu.vector_store %arg5[%c0_5, %c0_6], %5 {strides = array<i32>} : memref<8x64xf32, #tpu.memory_space<vmem>>, vector<8x64xf32>,
    return
  }
  func.func @transform_0(%arg0: i32, %arg1: i32) -> (i32, i32) {
    %c0_i32 = arith.constant 0 : i32
    %c0_i32_0 = arith.constant 0 : i32
    return %arg0, %c0_i32 : i32, i32
  }
  func.func @transform_1(%arg0: i32, %arg1: i32) -> (i32, i32) {
    %c0_i32 = arith.constant 0 : i32
    %c0_i32_0 = arith.constant 0 : i32
    return %c0_i32, %arg1 : i32, i32
  }
  func.func @transform_2(%arg0: i32, %arg1: i32) -> (i32, i32) {
    %c0_i32 = arith.constant 0 : i32
    return %arg0, %arg1 : i32, i32
  }
  func.func @transform_3(%arg0: i32, %arg1: i32) -> (i32, i32) {
    %c0_i32 = arith.constant 0 : i32
    return %arg0, %arg1 : i32, i32
  }
}

module attributes {stable_mosaic.version = 11 : i64} {
  func.func @kernel(%arg0: i32, %arg1: i32, %arg2: memref<8x256xf32, #tpu.memory_space<vmem>>, %arg3: memref<256x64xbf16, #tpu.memory_space<vmem>>, %arg4: memref<1x64xf32, #tpu.memory_space<vmem>>, %arg5: memref<8x64xf32, #tpu.memory_space<vmem>>, %arg6: memref<8x64xf32, #tpu.memory_space<vmem>>) attributes {dimension_semantics = [#tpu.dimension_semantics<parallel>, #tpu.dimension_semantics<parallel>], iteration_bounds = array<i64: 1, 1>, scalar_prefetch = 0 : i64, scratch_operands = 0 : i64, tpu.core_type = #tpu.core_type<tc>, window_params = [{transform_indices = @transform_0, window_bounds = array<i64: 8, 256>}, {transform_indices = @transform_1, window_bounds = array<i64: 256, 64>}, {transform_indices = @transform_2, window_bounds = array<i64: 1, 64>}, {transform_indices = @transform_3, window_bounds = array<i64: 8, 64>}, {transform_indices = @transform_4, window_bounds = array<i64: 8, 64>}]} {
    %c0 = arith.constant 0 : index
    %c0_0 = arith.constant 0 : index
    %0 = vector.load %arg2[%c0, %c0_0] : memref<8x256xf32, #tpu.memory_space<vmem>>, vector<8x256xf32>
    %1 = arith.truncf %0 : vector<8x256xf32> to vector<8x256xbf16>
    %c0_1 = arith.constant 0 : index
    %c0_2 = arith.constant 0 : index
    %2 = vector.load %arg3[%c0_1, %c0_2] : memref<256x64xbf16, #tpu.memory_space<vmem>>, vector<256x64xbf16>
    %cst = arith.constant dense<0.000000e+00> : vector<8x64xf32>
    %3 = tpu.matmul %1, %2, %cst {dimension_numbers = #tpu.dot_dimension_numbers<[1], [0], [0], [1], [0, 0, 1, 1], [], []>} : vector<8x256xbf16>, vector<256x64xbf16>, vector<8x64xf32> -> vector<8x64xf32>
    %c0_3 = arith.constant 0 : index
    %c0_4 = arith.constant 0 : index
    %4 = vector.load %arg4[%c0_3, %c0_4] : memref<1x64xf32, #tpu.memory_space<vmem>>, vector<1x64xf32>
    %5 = vector.broadcast %4 : vector<1x64xf32> to vector<8x64xf32>
    %6 = arith.addf %3, %5 : vector<8x64xf32>
    %cst_5 = arith.constant 5.000000e-01 : f32
    %7 = vector.broadcast %cst_5 : f32 to vector<8x64xf32>
    %8 = arith.mulf %7, %6 : vector<8x64xf32>
    %cst_6 = arith.constant 0.707106769 : f32
    %9 = vector.broadcast %cst_6 : f32 to vector<8x64xf32>
    %10 = arith.mulf %6, %9 : vector<8x64xf32>
    %11 = math.absf %10 : vector<8x64xf32>
    %cst_7 = arith.constant 0.327591091 : f32
    %12 = vector.broadcast %cst_7 : f32 to vector<8x64xf32>
    %13 = arith.mulf %12, %11 : vector<8x64xf32>
    %cst_8 = arith.constant 1.000000e+00 : f32
    %14 = vector.broadcast %cst_8 : f32 to vector<8x64xf32>
    %15 = arith.addf %14, %13 : vector<8x64xf32>
    %cst_9 = arith.constant 1.000000e+00 : f32
    %16 = vector.broadcast %cst_9 : f32 to vector<8x64xf32>
    %17 = arith.divf %16, %15 : vector<8x64xf32>
    %cst_10 = arith.constant 1.06140542 : f32
    %18 = vector.broadcast %cst_10 : f32 to vector<8x64xf32>
    %19 = arith.mulf %18, %17 : vector<8x64xf32>
    %cst_11 = arith.constant -1.45315206 : f32
    %20 = vector.broadcast %cst_11 : f32 to vector<8x64xf32>
    %21 = arith.addf %19, %20 : vector<8x64xf32>
    %22 = arith.mulf %21, %17 : vector<8x64xf32>
    %cst_12 = arith.constant 1.42141378 : f32
    %23 = vector.broadcast %cst_12 : f32 to vector<8x64xf32>
    %24 = arith.addf %22, %23 : vector<8x64xf32>
    %25 = arith.mulf %24, %17 : vector<8x64xf32>
    %cst_13 = arith.constant -0.284496725 : f32
    %26 = vector.broadcast %cst_13 : f32 to vector<8x64xf32>
    %27 = arith.addf %25, %26 : vector<8x64xf32>
    %28 = arith.mulf %27, %17 : vector<8x64xf32>
    %cst_14 = arith.constant 0.254829586 : f32
    %29 = vector.broadcast %cst_14 : f32 to vector<8x64xf32>
    %30 = arith.addf %28, %29 : vector<8x64xf32>
    %31 = arith.mulf %30, %17 : vector<8x64xf32>
    %cst_15 = arith.constant 0.000000e+00 : f32
    %32 = vector.broadcast %cst_15 : f32 to vector<8x64xf32>
    %33 = arith.subf %32, %11 : vector<8x64xf32>
    %34 = arith.mulf %33, %11 : vector<8x64xf32>
    %35 = math.exp %34 : vector<8x64xf32>
    %36 = arith.mulf %31, %35 : vector<8x64xf32>
    %cst_16 = arith.constant 1.000000e+00 : f32
    %37 = vector.broadcast %cst_16 : f32 to vector<8x64xf32>
    %38 = arith.subf %37, %36 : vector<8x64xf32>
    %cst_17 = arith.constant 0.000000e+00 : f32
    %39 = vector.broadcast %cst_17 : f32 to vector<8x64xf32>
    %40 = arith.cmpf oge, %10, %39 : vector<8x64xf32>
    %cst_18 = arith.constant 0.000000e+00 : f32
    %41 = vector.broadcast %cst_18 : f32 to vector<8x64xf32>
    %42 = arith.subf %41, %38 : vector<8x64xf32>
    %43 = arith.select %40, %38, %42 : vector<8x64xi1>, vector<8x64xf32>
    %cst_19 = arith.constant 1.000000e+00 : f32
    %44 = vector.broadcast %cst_19 : f32 to vector<8x64xf32>
    %45 = arith.addf %44, %43 : vector<8x64xf32>
    %46 = arith.mulf %8, %45 : vector<8x64xf32>
    %c0_20 = arith.constant 0 : index
    %c0_21 = arith.constant 0 : index
    %47 = vector.load %arg5[%c0_20, %c0_21] : memref<8x64xf32, #tpu.memory_space<vmem>>, vector<8x64xf32>
    %48 = arith.addf %46, %47 : vector<8x64xf32>
    %c0_22 = arith.constant 0 : index
    %c0_23 = arith.constant 0 : index
    %49 = vector.load %arg6[%c0_22, %c0_23] : memref<8x64xf32, #tpu.memory_space<vmem>>, vector<8x64xf32>
    tpu.vector_store %arg6[%c0_22, %c0_23], %48 {strides = array<i32>} : memref<8x64xf32, #tpu.memory_space<vmem>>, vector<8x64xf32>,
    return
  }
  func.func @transform_0(%arg0: i32, %arg1: i32) -> (i32, i32) {
    %c0_i32 = arith.constant 0 : i32
    %c0_i32_0 = arith.constant 0 : i32
    return %arg0, %c0_i32 : i32, i32
  }
  func.func @transform_1(%arg0: i32, %arg1: i32) -> (i32, i32) {
    %c0_i32 = arith.constant 0 : i32
    %c0_i32_0 = arith.constant 0 : i32
    return %c0_i32, %arg1 : i32, i32
  }
  func.func @transform_2(%arg0: i32, %arg1: i32) -> (i32, i32) {
    %c0_i32 = arith.constant 0 : i32
    %c0_i32_0 = arith.constant 0 : i32
    return %c0_i32, %arg1 : i32, i32
  }
  func.func @transform_3(%arg0: i32, %arg1: i32) -> (i32, i32) {
    %c0_i32 = arith.constant 0 : i32
    return %arg0, %arg1 : i32, i32
  }
  func.func @transform_4(%arg0: i32, %arg1: i32) -> (i32, i32) {
    %c0_i32 = arith.constant 0 : i32
    return %arg0, %arg1 : i32, i32
  }
}

module attributes {stable_mosaic.version = 11 : i64} {
  func.func @kernel(%arg0: i32, %arg1: i32, %arg2: memref<8x256xf32, #tpu.memory_space<vmem>>, %arg3: memref<256x64xbf16, #tpu.memory_space<vmem>>, %arg4: memref<1x64xf32, #tpu.memory_space<vmem>>, %arg5: memref<8x64xf32, #tpu.memory_space<vmem>>, %arg6: memref<1x64xf32, #tpu.memory_space<vmem>>, %arg7: memref<1x64xf32, #tpu.memory_space<vmem>>, %arg8: memref<8x64xf32, #tpu.memory_space<vmem>>) attributes {dimension_semantics = [#tpu.dimension_semantics<parallel>, #tpu.dimension_semantics<parallel>], iteration_bounds = array<i64: 1, 1>, scalar_prefetch = 0 : i64, scratch_operands = 0 : i64, tpu.core_type = #tpu.core_type<tc>, window_params = [{transform_indices = @transform_0, window_bounds = array<i64: 8, 256>}, {transform_indices = @transform_1, window_bounds = array<i64: 256, 64>}, {transform_indices = @transform_2, window_bounds = array<i64: 1, 64>}, {transform_indices = @transform_3, window_bounds = array<i64: 8, 64>}, {pipeline_mode = #tpu.pipeline_mode<synchronous>, transform_indices = @transform_4, window_bounds = array<i64: 1, 64>}, {pipeline_mode = #tpu.pipeline_mode<synchronous>, transform_indices = @transform_5, window_bounds = array<i64: 1, 64>}, {transform_indices = @transform_6, window_bounds = array<i64: 8, 64>}]} {
    %c0 = arith.constant 0 : index
    %c0_0 = arith.constant 0 : index
    %0 = vector.load %arg2[%c0, %c0_0] : memref<8x256xf32, #tpu.memory_space<vmem>>, vector<8x256xf32>
    %1 = arith.truncf %0 : vector<8x256xf32> to vector<8x256xbf16>
    %c0_1 = arith.constant 0 : index
    %c0_2 = arith.constant 0 : index
    %2 = vector.load %arg3[%c0_1, %c0_2] : memref<256x64xbf16, #tpu.memory_space<vmem>>, vector<256x64xbf16>
    %cst = arith.constant dense<0.000000e+00> : vector<8x64xf32>
    %3 = tpu.matmul %1, %2, %cst {dimension_numbers = #tpu.dot_dimension_numbers<[1], [0], [0], [1], [0, 0, 1, 1], [], []>} : vector<8x256xbf16>, vector<256x64xbf16>, vector<8x64xf32> -> vector<8x64xf32>
    %c0_3 = arith.constant 0 : index
    %c0_4 = arith.constant 0 : index
    %4 = vector.load %arg4[%c0_3, %c0_4] : memref<1x64xf32, #tpu.memory_space<vmem>>, vector<1x64xf32>
    %5 = vector.broadcast %4 : vector<1x64xf32> to vector<8x64xf32>
    %6 = arith.addf %3, %5 : vector<8x64xf32>
    %cst_5 = arith.constant 5.000000e-01 : f32
    %7 = vector.broadcast %cst_5 : f32 to vector<8x64xf32>
    %8 = arith.mulf %7, %6 : vector<8x64xf32>
    %cst_6 = arith.constant 0.707106769 : f32
    %9 = vector.broadcast %cst_6 : f32 to vector<8x64xf32>
    %10 = arith.mulf %6, %9 : vector<8x64xf32>
    %11 = math.absf %10 : vector<8x64xf32>
    %cst_7 = arith.constant 0.327591091 : f32
    %12 = vector.broadcast %cst_7 : f32 to vector<8x64xf32>
    %13 = arith.mulf %12, %11 : vector<8x64xf32>
    %cst_8 = arith.constant 1.000000e+00 : f32
    %14 = vector.broadcast %cst_8 : f32 to vector<8x64xf32>
    %15 = arith.addf %14, %13 : vector<8x64xf32>
    %cst_9 = arith.constant 1.000000e+00 : f32
    %16 = vector.broadcast %cst_9 : f32 to vector<8x64xf32>
    %17 = arith.divf %16, %15 : vector<8x64xf32>
    %cst_10 = arith.constant 1.06140542 : f32
    %18 = vector.broadcast %cst_10 : f32 to vector<8x64xf32>
    %19 = arith.mulf %18, %17 : vector<8x64xf32>
    %cst_11 = arith.constant -1.45315206 : f32
    %20 = vector.broadcast %cst_11 : f32 to vector<8x64xf32>
    %21 = arith.addf %19, %20 : vector<8x64xf32>
    %22 = arith.mulf %21, %17 : vector<8x64xf32>
    %cst_12 = arith.constant 1.42141378 : f32
    %23 = vector.broadcast %cst_12 : f32 to vector<8x64xf32>
    %24 = arith.addf %22, %23 : vector<8x64xf32>
    %25 = arith.mulf %24, %17 : vector<8x64xf32>
    %cst_13 = arith.constant -0.284496725 : f32
    %26 = vector.broadcast %cst_13 : f32 to vector<8x64xf32>
    %27 = arith.addf %25, %26 : vector<8x64xf32>
    %28 = arith.mulf %27, %17 : vector<8x64xf32>
    %cst_14 = arith.constant 0.254829586 : f32
    %29 = vector.broadcast %cst_14 : f32 to vector<8x64xf32>
    %30 = arith.addf %28, %29 : vector<8x64xf32>
    %31 = arith.mulf %30, %17 : vector<8x64xf32>
    %cst_15 = arith.constant 0.000000e+00 : f32
    %32 = vector.broadcast %cst_15 : f32 to vector<8x64xf32>
    %33 = arith.subf %32, %11 : vector<8x64xf32>
    %34 = arith.mulf %33, %11 : vector<8x64xf32>
    %35 = math.exp %34 : vector<8x64xf32>
    %36 = arith.mulf %31, %35 : vector<8x64xf32>
    %cst_16 = arith.constant 1.000000e+00 : f32
    %37 = vector.broadcast %cst_16 : f32 to vector<8x64xf32>
    %38 = arith.subf %37, %36 : vector<8x64xf32>
    %cst_17 = arith.constant 0.000000e+00 : f32
    %39 = vector.broadcast %cst_17 : f32 to vector<8x64xf32>
    %40 = arith.cmpf oge, %10, %39 : vector<8x64xf32>
    %cst_18 = arith.constant 0.000000e+00 : f32
    %41 = vector.broadcast %cst_18 : f32 to vector<8x64xf32>
    %42 = arith.subf %41, %38 : vector<8x64xf32>
    %43 = arith.select %40, %38, %42 : vector<8x64xi1>, vector<8x64xf32>
    %cst_19 = arith.constant 1.000000e+00 : f32
    %44 = vector.broadcast %cst_19 : f32 to vector<8x64xf32>
    %45 = arith.addf %44, %43 : vector<8x64xf32>
    %46 = arith.mulf %8, %45 : vector<8x64xf32>
    %c0_20 = arith.constant 0 : index
    %c0_21 = arith.constant 0 : index
    %47 = vector.load %arg5[%c0_20, %c0_21] : memref<8x64xf32, #tpu.memory_space<vmem>>, vector<8x64xf32>
    %48 = arith.addf %46, %47 : vector<8x64xf32>
    %c0_22 = arith.constant 0 : index
    %c0_23 = arith.constant 0 : index
    %49 = vector.load %arg6[%c0_22, %c0_23] : memref<1x64xf32, #tpu.memory_space<vmem>>, vector<1x64xf32>
    %c0_24 = arith.constant 0 : index
    %c0_25 = arith.constant 0 : index
    %50 = vector.load %arg7[%c0_24, %c0_25] : memref<1x64xf32, #tpu.memory_space<vmem>>, vector<1x64xf32>
    %cst_26 = arith.constant dense<0.000000e+00> : vector<8xf32>
    %51 = vector.multi_reduction <add>, %48, %cst_26 [1] : vector<8x64xf32> to vector<8xf32>
    %52 = vector.shape_cast %51 : vector<8xf32> to vector<8x1xf32>
    %cst_27 = arith.constant 6.400000e+01 : f32
    %53 = vector.broadcast %cst_27 : f32 to vector<8x1xf32>
    %54 = arith.divf %52, %53 : vector<8x1xf32>
    %55 = vector.broadcast %54 : vector<8x1xf32> to vector<8x64xf32>
    %56 = arith.subf %48, %55 : vector<8x64xf32>
    %57 = arith.mulf %56, %56 : vector<8x64xf32>
    %cst_28 = arith.constant dense<0.000000e+00> : vector<8xf32>
    %58 = vector.multi_reduction <add>, %57, %cst_28 [1] : vector<8x64xf32> to vector<8xf32>
    %59 = vector.shape_cast %58 : vector<8xf32> to vector<8x1xf32>
    %cst_29 = arith.constant 6.400000e+01 : f32
    %60 = vector.broadcast %cst_29 : f32 to vector<8x1xf32>
    %61 = arith.divf %59, %60 : vector<8x1xf32>
    %62 = vector.broadcast %54 : vector<8x1xf32> to vector<8x64xf32>
    %63 = arith.subf %48, %62 : vector<8x64xf32>
    %cst_30 = arith.constant 9.99999974E-6 : f32
    %64 = vector.broadcast %cst_30 : f32 to vector<8x1xf32>
    %65 = arith.addf %61, %64 : vector<8x1xf32>
    %66 = math.rsqrt %65 : vector<8x1xf32>
    %67 = vector.broadcast %66 : vector<8x1xf32> to vector<8x64xf32>
    %68 = arith.mulf %63, %67 : vector<8x64xf32>
    %69 = vector.broadcast %49 : vector<1x64xf32> to vector<8x64xf32>
    %70 = arith.mulf %68, %69 : vector<8x64xf32>
    %71 = vector.broadcast %50 : vector<1x64xf32> to vector<8x64xf32>
    %72 = arith.addf %70, %71 : vector<8x64xf32>
    %c0_31 = arith.constant 0 : index
    %c0_32 = arith.constant 0 : index
    %73 = vector.load %arg8[%c0_31, %c0_32] : memref<8x64xf32, #tpu.memory_space<vmem>>, vector<8x64xf32>
    tpu.vector_store %arg8[%c0_31, %c0_32], %72 {strides = array<i32>} : memref<8x64xf32, #tpu.memory_space<vmem>>, vector<8x64xf32>,
    return
  }
  func.func @transform_0(%arg0: i32, %arg1: i32) -> (i32, i32) {
    %c0_i32 = arith.constant 0 : i32
    %c0_i32_0 = arith.constant 0 : i32
    return %arg0, %c0_i32 : i32, i32
  }
  func.func @transform_1(%arg0: i32, %arg1: i32) -> (i32, i32) {
    %c0_i32 = arith.constant 0 : i32
    %c0_i32_0 = arith.constant 0 : i32
    return %c0_i32, %arg1 : i32, i32
  }
  func.func @transform_2(%arg0: i32, %arg1: i32) -> (i32, i32) {
    %c0_i32 = arith.constant 0 : i32
    %c0_i32_0 = arith.constant 0 : i32
    return %c0_i32, %arg1 : i32, i32
  }
  func.func @transform_3(%arg0: i32, %arg1: i32) -> (i32, i32) {
    %c0_i32 = arith.constant 0 : i32
    return %arg0, %arg1 : i32, i32
  }
  func.func @transform_4(%arg0: i32, %arg1: i32) -> (i32, i32) {
    %c0_i32 = arith.constant 0 : i32
    %c0_i32_0 = arith.constant 0 : i32
    %c0_i32_1 = arith.constant 0 : i32
    return %c0_i32, %c0_i32_0 : i32, i32
  }
  func.func @transform_5(%arg0: i32, %arg1: i32) -> (i32, i32) {
    %c0_i32 = arith.constant 0 : i32
    %c0_i32_0 = arith.constant 0 : i32
    %c0_i32_1 = arith.constant 0 : i32
    return %c0_i32, %c0_i32_0 : i32, i32
  }
  func.func @transform_6(%arg0: i32, %arg1: i32) -> (i32, i32) {
    %c0_i32 = arith.constant 0 : i32
    return %arg0, %arg1 : i32, i32
  }
}

module attributes {stable_mosaic.version = 11 : i64} {
  func.func @kernel(%arg0: i32, %arg1: i32, %arg2: memref<16x64xf32, #tpu.memory_space<vmem>>, %arg3: memref<64x32xbf16, #tpu.memory_space<vmem>>, %arg4: memref<1x32xf32, #tpu.memory_space<vmem>>, %arg5: memref<16x32xf32, #tpu.memory_space<vmem>>) attributes {dimension_semantics = [#tpu.dimension_semantics<parallel>, #tpu.dimension_semantics<parallel>], iteration_bounds = array<i64: 2, 1>, scalar_prefetch = 0 : i64, scratch_operands = 0 : i64, tpu.core_type = #tpu.core_type<tc>, window_params = [{transform_indices = @transform_0, window_bounds = array<i64: 16, 64>}, {transform_indices = @transform_1, window_bounds = array<i64: 64, 32>}, {transform_indices = @transform_2, window_bounds = array<i64: 1, 32>}, {transform_indices = @transform_3, window_bounds = array<i64: 16, 32>}]} {
    %c0 = arith.constant 0 : index
    %c0_0 = arith.constant 0 : index
    %0 = vector.load %arg2[%c0, %c0_0] : memref<16x64xf32, #tpu.memory_space<vmem>>, vector<16x64xf32>
    %1 = arith.truncf %0 : vector<16x64xf32> to vector<16x64xbf16>
    %c0_1 = arith.constant 0 : index
    %c0_2 = arith.constant 0 : index
    %2 = vector.load %arg3[%c0_1, %c0_2] : memref<64x32xbf16, #tpu.memory_space<vmem>>, vector<64x32xbf16>
    %cst = arith.constant dense<0.000000e+00> : vector<16x32xf32>
    %3 = tpu.matmul %1, %2, %cst {dimension_numbers = #tpu.dot_dimension_numbers<[1], [0], [0], [1], [0, 0, 1, 1], [], []>} : vector<16x64xbf16>, vector<64x32xbf16>, vector<16x32xf32> -> vector<16x32xf32>
    %c0_3 = arith.constant 0 : index
    %c0_4 = arith.constant 0 : index
    %4 = vector.load %arg4[%c0_3, %c0_4] : memref<1x32xf32, #tpu.memory_space<vmem>>, vector<1x32xf32>
    %5 = vector.broadcast %4 : vector<1x32xf32> to vector<16x32xf32>
    %6 = arith.addf %3, %5 : vector<16x32xf32>
    %c0_5 = arith.constant 0 : index
    %c0_6 = arith.constant 0 : index
    %7 = vector.load %arg5[%c0_5, %c0_6] : memref<16x32xf32, #tpu.memory_space<vmem>>, vector<16x32xf32>
    tpu.vector_store %arg5[%c0_5, %c0_6], %6 {strides = array<i32>} : memref<16x32xf32, #tpu.memory_space<vmem>>, vector<16x32xf32>,
    return
  }
  func.func @transform_0(%arg0: i32, %arg1: i32) -> (i32, i32) {
    %c0_i32 = arith.constant 0 : i32
    %c0_i32_0 = arith.constant 0 : i32
    return %arg0, %c0_i32 : i32, i32
  }
  func.func @transform_1(%arg0: i32, %arg1: i32) -> (i32, i32) {
    %c0_i32 = arith.constant 0 : i32
    %c0_i32_0 = arith.constant 0 : i32
    return %c0_i32, %arg1 : i32, i32
  }
  func.func @transform_2(%arg0: i32, %arg1: i32) -> (i32, i32) {
    %c0_i32 = arith.constant 0 : i32
    %c0_i32_0 = arith.constant 0 : i32
    return %c0_i32, %arg1 : i32, i32
  }
  func.func @transform_3(%arg0: i32, %arg1: i32) -> (i32, i32) {
    %c0_i32 = arith.constant 0 : i32
    return %arg0, %arg1 : i32, i32
  }
}

module attributes {stable_mosaic.version = 11 : i64} {
  func.func @kernel(%arg0: i32, %arg1: i32, %arg2: memref<16x32xf32, #tpu.memory_space<vmem>>, %arg3: memref<32x96xbf16, #tpu.memory_space<vmem>>, %arg4: memref<1x32xf32, #tpu.memory_space<vmem>>, %arg5: memref<1x32xf32, #tpu.memory_space<vmem>>, %arg6: memref<16x96xf32, #tpu.memory_space<vmem>>) attributes {dimension_semantics = [#tpu.dimension_semantics<parallel>, #tpu.dimension_semantics<parallel>], iteration_bounds = array<i64: 2, 1>, scalar_prefetch = 0 : i64, scratch_operands = 0 : i64, tpu.core_type = #tpu.core_type<tc>, window_params = [{transform_indices = @transform_0, window_bounds = array<i64: 16, 32>}, {transform_indices = @transform_1, window_bounds = array<i64: 32, 96>}, {pipeline_mode = #tpu.pipeline_mode<synchronous>, transform_indices = @transform_2, window_bounds = array<i64: 1, 32>}, {pipeline_mode = #tpu.pipeline_mode<synchronous>, transform_indices = @transform_3, window_bounds = array<i64: 1, 32>}, {transform_indices = @transform_4, window_bounds = array<i64: 16, 96>}]} {
    %c0 = arith.constant 0 : index
    %c0_0 = arith.constant 0 : index
    %0 = vector.load %arg2[%c0, %c0_0] : memref<16x32xf32, #tpu.memory_space<vmem>>, vector<16x32xf32>
    %c0_1 = arith.constant 0 : index
    %c0_2 = arith.constant 0 : index
    %1 = vector.load %arg4[%c0_1, %c0_2] : memref<1x32xf32, #tpu.memory_space<vmem>>, vector<1x32xf32>
    %c0_3 = arith.constant 0 : index
    %c0_4 = arith.constant 0 : index
    %2 = vector.load %arg5[%c0_3, %c0_4] : memref<1x32xf32, #tpu.memory_space<vmem>>, vector<1x32xf32>
    %cst = arith.constant dense<0.000000e+00> : vector<16xf32>
    %3 = vector.multi_reduction <add>, %0, %cst [1] : vector<16x32xf32> to vector<16xf32>
    %4 = vector.shape_cast %3 : vector<16xf32> to vector<16x1xf32>
    %cst_5 = arith.constant 3.200000e+01 : f32
    %5 = vector.broadcast %cst_5 : f32 to vector<16x1xf32>
    %6 = arith.divf %4, %5 : vector<16x1xf32>
    %7 = vector.broadcast %6 : vector<16x1xf32> to vector<16x32xf32>
    %8 = arith.subf %0, %7 : vector<16x32xf32>
    %9 = arith.mulf %8, %8 : vector<16x32xf32>
    %cst_6 = arith.constant dense<0.000000e+00> : vector<16xf32>
    %10 = vector.multi_reduction <add>, %9, %cst_6 [1] : vector<16x32xf32> to vector<16xf32>
    %11 = vector.shape_cast %10 : vector<16xf32> to vector<16x1xf32>
    %cst_7 = arith.constant 3.200000e+01 : f32
    %12 = vector.broadcast %cst_7 : f32 to vector<16x1xf32>
    %13 = arith.divf %11, %12 : vector<16x1xf32>
    %14 = vector.broadcast %6 : vector<16x1xf32> to vector<16x32xf32>
    %15 = arith.subf %0, %14 : vector<16x32xf32>
    %cst_8 = arith.constant 9.99999974E-6 : f32
    %16 = vector.broadcast %cst_8 : f32 to vector<16x1xf32>
    %17 = arith.addf %13, %16 : vector<16x1xf32>
    %18 = math.rsqrt %17 : vector<16x1xf32>
    %19 = vector.broadcast %18 : vector<16x1xf32> to vector<16x32xf32>
    %20 = arith.mulf %15, %19 : vector<16x32xf32>
    %21 = vector.broadcast %1 : vector<1x32xf32> to vector<16x32xf32>
    %22 = arith.mulf %20, %21 : vector<16x32xf32>
    %23 = vector.broadcast %2 : vector<1x32xf32> to vector<16x32xf32>
    %24 = arith.addf %22, %23 : vector<16x32xf32>
    %25 = arith.truncf %24 : vector<16x32xf32> to vector<16x32xbf16>
    %c0_9 = arith.constant 0 : index
    %c0_10 = arith.constant 0 : index
    %26 = vector.load %arg3[%c0_9, %c0_10] : memref<32x96xbf16, #tpu.memory_space<vmem>>, vector<32x96xbf16>
    %cst_11 = arith.constant dense<0.000000e+00> : vector<16x96xf32>
    %27 = tpu.matmul %25, %26, %cst_11 {dimension_numbers = #tpu.dot_dimension_numbers<[1], [0], [0], [1], [0, 0, 1, 1], [], []>} : vector<16x32xbf16>, vector<32x96xbf16>, vector<16x96xf32> -> vector<16x96xf32>
    %c0_12 = arith.constant 0 : index
    %c0_13 = arith.constant 0 : index
    %28 = vector.load %arg6[%c0_12, %c0_13] : memref<16x96xf32, #tpu.memory_space<vmem>>, vector<16x96xf32>
    tpu.vector_store %arg6[%c0_12, %c0_13], %27 {strides = array<i32>} : memref<16x96xf32, #tpu.memory_space<vmem>>, vector<16x96xf32>,
    return
  }
  func.func @transform_0(%arg0: i32, %arg1: i32) -> (i32, i32) {
    %c0_i32 = arith.constant 0 : i32
    %c0_i32_0 = arith.constant 0 : i32
    return %arg0, %c0_i32 : i32, i32
  }
  func.func @transform_1(%arg0: i32, %arg1: i32) -> (i32, i32) {
    %c0_i32 = arith.constant 0 : i32
    %c0_i32_0 = arith.constant 0 : i32
    return %c0_i32, %arg1 : i32, i32
  }
  func.func @transform_2(%arg0: i32, %arg1: i32) -> (i32, i32) {
    %c0_i32 = arith.constant 0 : i32
    %c0_i32_0 = arith.constant 0 : i32
    %c0_i32_1 = arith.constant 0 : i32
    return %c0_i32, %c0_i32_0 : i32, i32
  }
  func.func @transform_3(%arg0: i32, %arg1: i32) -> (i32, i32) {
    %c0_i32 = arith.constant 0 : i32
    %c0_i32_0 = arith.constant 0 : i32
    %c0_i32_1 = arith.constant 0 : i32
    return %c0_i32, %c0_i32_0 : i32, i32
  }
  func.func @transform_4(%arg0: i32, %arg1: i32) -> (i32, i32) {
    %c0_i32 = arith.constant 0 : i32
    return %arg0, %arg1 : i32, i32
  }
}

module attributes {stable_mosaic.version = 11 : i64} {
  func.func @_attn_kernel(%arg0: i32, %arg1: memref<2x16x16xf32, #tpu.memory_space<vmem>>, %arg2: memref<2x16x16xf32, #tpu.memory_space<vmem>>, %arg3: memref<2x16x16xf32, #tpu.memory_space<vmem>>, %arg4: memref<2x16x16xf32, #tpu.memory_space<vmem>>) attributes {dimension_semantics = [#tpu.dimension_semantics<parallel>], iteration_bounds = array<i64: 2>, scalar_prefetch = 0 : i64, scratch_operands = 0 : i64, tpu.core_type = #tpu.core_type<tc>, window_params = [{transform_indices = @transform_0, window_bounds = array<i64: 2, 16, 16>}, {transform_indices = @transform_1, window_bounds = array<i64: 2, 16, 16>}, {transform_indices = @transform_2, window_bounds = array<i64: 2, 16, 16>}, {transform_indices = @transform_3, window_bounds = array<i64: 2, 16, 16>}]} {
    %c0 = arith.constant 0 : index
    %c0_0 = arith.constant 0 : index
    %c0_1 = arith.constant 0 : index
    %0 = vector.load %arg1[%c0, %c0_0, %c0_1] : memref<2x16x16xf32, #tpu.memory_space<vmem>>, vector<2x16x16xf32>
    %1 = arith.truncf %0 : vector<2x16x16xf32> to vector<2x16x16xbf16>
    %c0_2 = arith.constant 0 : index
    %c0_3 = arith.constant 0 : index
    %c0_4 = arith.constant 0 : index
    %2 = vector.load %arg2[%c0_2, %c0_3, %c0_4] : memref<2x16x16xf32, #tpu.memory_space<vmem>>, vector<2x16x16xf32>
    %3 = arith.truncf %2 : vector<2x16x16xf32> to vector<2x16x16xbf16>
    %c0_5 = arith.constant 0 : index
    %c0_6 = arith.constant 0 : index
    %c0_7 = arith.constant 0 : index
    %4 = vector.load %arg3[%c0_5, %c0_6, %c0_7] : memref<2x16x16xf32, #tpu.memory_space<vmem>>, vector<2x16x16xf32>
    %5 = arith.truncf %4 : vector<2x16x16xf32> to vector<2x16x16xbf16>
    "tpu.trace_start"() <{level = 10 : i32, message = "hqd,hkd->hqk"}> : () -> ()
    %cst = arith.constant dense<0.000000e+00> : vector<2x16x16xf32>
    %6 = tpu.matmul %1, %3, %cst {dimension_numbers = #tpu.dot_dimension_numbers<[2], [2], [1], [1], [0, 0, 0, 1, 1, 1], [0], [0]>} : vector<2x16x16xbf16>, vector<2x16x16xbf16>, vector<2x16x16xf32> -> vector<2x16x16xf32>
    "tpu.trace_stop"() : () -> ()
    %cst_8 = arith.constant 0.176776692 : f32
    %7 = vector.broadcast %cst_8 : f32 to vector<2x16x16xf32>
    %8 = arith.mulf %6, %7 : vector<2x16x16xf32>
    %cst_9 = arith.constant dense<0xFF800000> : vector<2x16xf32>
    %9 = vector.multi_reduction <maximumf>, %8, %cst_9 [2] : vector<2x16x16xf32> to vector<2x16xf32>
    %10 = vector.shape_cast %9 : vector<2x16xf32> to vector<2x16x1xf32>
    %11 = vector.broadcast %10 : vector<2x16x1xf32> to vector<2x16x16xf32>
    %12 = arith.subf %8, %11 : vector<2x16x16xf32>
    %13 = math.exp %12 : vector<2x16x16xf32>
    %cst_10 = arith.constant dense<0.000000e+00> : vector<2x16xf32>
    %14 = vector.multi_reduction <add>, %13, %cst_10 [2] : vector<2x16x16xf32> to vector<2x16xf32>
    %15 = vector.shape_cast %14 : vector<2x16xf32> to vector<2x16x1xf32>
    %16 = tpu.reciprocal %15 {approx = true} : vector<2x16x1xf32> -> vector<2x16x1xf32>
    %17 = vector.broadcast %16 : vector<2x16x1xf32> to vector<2x16x16xf32>
    %18 = arith.mulf %13, %17 : vector<2x16x16xf32>
    %19 = arith.truncf %18 : vector<2x16x16xf32> to vector<2x16x16xbf16>
    "tpu.trace_start"() <{level = 10 : i32, message = "hqk,hkd->hqd"}> : () -> ()
    %cst_11 = arith.constant dense<0.000000e+00> : vector<2x16x16xf32>
    %20 = tpu.matmul %19, %5, %cst_11 {dimension_numbers = #tpu.dot_dimension_numbers<[2], [1], [1], [2], [0, 0, 0, 1, 1, 2], [0], [0]>} : vector<2x16x16xbf16>, vector<2x16x16xbf16>, vector<2x16x16xf32> -> vector<2x16x16xf32>
    "tpu.trace_stop"() : () -> ()
    %c0_12 = arith.constant 0 : index
    %c0_13 = arith.constant 0 : index
    %c0_14 = arith.constant 0 : index
    %21 = vector.load %arg4[%c0_12, %c0_13, %c0_14] : memref<2x16x16xf32, #tpu.memory_space<vmem>>, vector<2x16x16xf32>
    tpu.vector_store %arg4[%c0_12, %c0_13, %c0_14], %20 {strides = array<i32>} : memref<2x16x16xf32, #tpu.memory_space<vmem>>, vector<2x16x16xf32>,
    return
  }
  func.func @transform_0(%arg0: i32) -> (i32, i32, i32) {
    %c0_i32 = arith.constant 0 : i32
    %c0_i32_0 = arith.constant 0 : i32
    %c0_i32_1 = arith.constant 0 : i32
    return %arg0, %c0_i32, %c0_i32_0 : i32, i32, i32
  }
  func.func @transform_1(%arg0: i32) -> (i32, i32, i32) {
    %c0_i32 = arith.constant 0 : i32
    %c0_i32_0 = arith.constant 0 : i32
    %c0_i32_1 = arith.constant 0 : i32
    return %arg0, %c0_i32, %c0_i32_0 : i32, i32, i32
  }
  func.func @transform_2(%arg0: i32) -> (i32, i32, i32) {
    %c0_i32 = arith.constant 0 : i32
    %c0_i32_0 = arith.constant 0 : i32
    %c0_i32_1 = arith.constant 0 : i32
    return %arg0, %c0_i32, %c0_i32_0 : i32, i32, i32
  }
  func.func @transform_3(%arg0: i32) -> (i32, i32, i32) {
    %c0_i32 = arith.constant 0 : i32
    %c0_i32_0 = arith.constant 0 : i32
    %c0_i32_1 = arith.constant 0 : i32
    return %arg0, %c0_i32, %c0_i32_0 : i32, i32, i32
  }
}

module attributes {stable_mosaic.version = 11 : i64} {
  func.func @kernel(%arg0: i32, %arg1: i32, %arg2: memref<16x32xf32, #tpu.memory_space<vmem>>, %arg3: memref<32x32xbf16, #tpu.memory_space<vmem>>, %arg4: memref<16x32xf32, #tpu.memory_space<vmem>>, %arg5: memref<16x32xf32, #tpu.memory_space<vmem>>) attributes {dimension_semantics = [#tpu.dimension_semantics<parallel>, #tpu.dimension_semantics<parallel>], iteration_bounds = array<i64: 2, 1>, scalar_prefetch = 0 : i64, scratch_operands = 0 : i64, tpu.core_type = #tpu.core_type<tc>, window_params = [{transform_indices = @transform_0, window_bounds = array<i64: 16, 32>}, {transform_indices = @transform_1, window_bounds = array<i64: 32, 32>}, {transform_indices = @transform_2, window_bounds = array<i64: 16, 32>}, {transform_indices = @transform_3, window_bounds = array<i64: 16, 32>}]} {
    %c0 = arith.constant 0 : index
    %c0_0 = arith.constant 0 : index
    %0 = vector.load %arg2[%c0, %c0_0] : memref<16x32xf32, #tpu.memory_space<vmem>>, vector<16x32xf32>
    %1 = arith.truncf %0 : vector<16x32xf32> to vector<16x32xbf16>
    %c0_1 = arith.constant 0 : index
    %c0_2 = arith.constant 0 : index
    %2 = vector.load %arg3[%c0_1, %c0_2] : memref<32x32xbf16, #tpu.memory_space<vmem>>, vector<32x32xbf16>
    %cst = arith.constant dense<0.000000e+00> : vector<16x32xf32>
    %3 = tpu.matmul %1, %2, %cst {dimension_numbers = #tpu.dot_dimension_numbers<[1], [0], [0], [1], [0, 0, 1, 1], [], []>} : vector<16x32xbf16>, vector<32x32xbf16>, vector<16x32xf32> -> vector<16x32xf32>
    %c0_3 = arith.constant 0 : index
    %c0_4 = arith.constant 0 : index
    %4 = vector.load %arg4[%c0_3, %c0_4] : memref<16x32xf32, #tpu.memory_space<vmem>>, vector<16x32xf32>
    %5 = arith.addf %3, %4 : vector<16x32xf32>
    %c0_5 = arith.constant 0 : index
    %c0_6 = arith.constant 0 : index
    %6 = vector.load %arg5[%c0_5, %c0_6] : memref<16x32xf32, #tpu.memory_space<vmem>>, vector<16x32xf32>
    tpu.vector_store %arg5[%c0_5, %c0_6], %5 {strides = array<i32>} : memref<16x32xf32, #tpu.memory_space<vmem>>, vector<16x32xf32>,
    return
  }
  func.func @transform_0(%arg0: i32, %arg1: i32) -> (i32, i32) {
    %c0_i32 = arith.constant 0 : i32
    %c0_i32_0 = arith.constant 0 : i32
    return %arg0, %c0_i32 : i32, i32
  }
  func.func @transform_1(%arg0: i32, %arg1: i32) -> (i32, i32) {
    %c0_i32 = arith.constant 0 : i32
    %c0_i32_0 = arith.constant 0 : i32
    return %c0_i32, %arg1 : i32, i32
  }
  func.func @transform_2(%arg0: i32, %arg1: i32) -> (i32, i32) {
    %c0_i32 = arith.constant 0 : i32
    return %arg0, %arg1 : i32, i32
  }
  func.func @transform_3(%arg0: i32, %arg1: i32) -> (i32, i32) {
    %c0_i32 = arith.constant 0 : i32
    return %arg0, %arg1 : i32, i32
  }
}

module attributes {stable_mosaic.version = 11 : i64} {
  func.func @kernel(%arg0: i32, %arg1: i32, %arg2: memref<16x32xf32, #tpu.memory_space<vmem>>, %arg3: memref<32x128xbf16, #tpu.memory_space<vmem>>, %arg4: memref<1x32xf32, #tpu.memory_space<vmem>>, %arg5: memref<1x32xf32, #tpu.memory_space<vmem>>, %arg6: memref<1x128xf32, #tpu.memory_space<vmem>>, %arg7: memref<16x128xf32, #tpu.memory_space<vmem>>) attributes {dimension_semantics = [#tpu.dimension_semantics<parallel>, #tpu.dimension_semantics<parallel>], iteration_bounds = array<i64: 2, 1>, scalar_prefetch = 0 : i64, scratch_operands = 0 : i64, tpu.core_type = #tpu.core_type<tc>, window_params = [{transform_indices = @transform_0, window_bounds = array<i64: 16, 32>}, {transform_indices = @transform_1, window_bounds = array<i64: 32, 128>}, {pipeline_mode = #tpu.pipeline_mode<synchronous>, transform_indices = @transform_2, window_bounds = array<i64: 1, 32>}, {pipeline_mode = #tpu.pipeline_mode<synchronous>, transform_indices = @transform_3, window_bounds = array<i64: 1, 32>}, {transform_indices = @transform_4, window_bounds = array<i64: 1, 128>}, {transform_indices = @transform_5, window_bounds = array<i64: 16, 128>}]} {
    %c0 = arith.constant 0 : index
    %c0_0 = arith.constant 0 : index
    %0 = vector.load %arg2[%c0, %c0_0] : memref<16x32xf32, #tpu.memory_space<vmem>>, vector<16x32xf32>
    %c0_1 = arith.constant 0 : index
    %c0_2 = arith.constant 0 : index
    %1 = vector.load %arg4[%c0_1, %c0_2] : memref<1x32xf32, #tpu.memory_space<vmem>>, vector<1x32xf32>
    %c0_3 = arith.constant 0 : index
    %c0_4 = arith.constant 0 : index
    %2 = vector.load %arg5[%c0_3, %c0_4] : memref<1x32xf32, #tpu.memory_space<vmem>>, vector<1x32xf32>
    %cst = arith.constant dense<0.000000e+00> : vector<16xf32>
    %3 = vector.multi_reduction <add>, %0, %cst [1] : vector<16x32xf32> to vector<16xf32>
    %4 = vector.shape_cast %3 : vector<16xf32> to vector<16x1xf32>
    %cst_5 = arith.constant 3.200000e+01 : f32
    %5 = vector.broadcast %cst_5 : f32 to vector<16x1xf32>
    %6 = arith.divf %4, %5 : vector<16x1xf32>
    %7 = vector.broadcast %6 : vector<16x1xf32> to vector<16x32xf32>
    %8 = arith.subf %0, %7 : vector<16x32xf32>
    %9 = arith.mulf %8, %8 : vector<16x32xf32>
    %cst_6 = arith.constant dense<0.000000e+00> : vector<16xf32>
    %10 = vector.multi_reduction <add>, %9, %cst_6 [1] : vector<16x32xf32> to vector<16xf32>
    %11 = vector.shape_cast %10 : vector<16xf32> to vector<16x1xf32>
    %cst_7 = arith.constant 3.200000e+01 : f32
    %12 = vector.broadcast %cst_7 : f32 to vector<16x1xf32>
    %13 = arith.divf %11, %12 : vector<16x1xf32>
    %14 = vector.broadcast %6 : vector<16x1xf32> to vector<16x32xf32>
    %15 = arith.subf %0, %14 : vector<16x32xf32>
    %cst_8 = arith.constant 9.99999974E-6 : f32
    %16 = vector.broadcast %cst_8 : f32 to vector<16x1xf32>
    %17 = arith.addf %13, %16 : vector<16x1xf32>
    %18 = math.rsqrt %17 : vector<16x1xf32>
    %19 = vector.broadcast %18 : vector<16x1xf32> to vector<16x32xf32>
    %20 = arith.mulf %15, %19 : vector<16x32xf32>
    %21 = vector.broadcast %1 : vector<1x32xf32> to vector<16x32xf32>
    %22 = arith.mulf %20, %21 : vector<16x32xf32>
    %23 = vector.broadcast %2 : vector<1x32xf32> to vector<16x32xf32>
    %24 = arith.addf %22, %23 : vector<16x32xf32>
    %25 = arith.truncf %24 : vector<16x32xf32> to vector<16x32xbf16>
    %c0_9 = arith.constant 0 : index
    %c0_10 = arith.constant 0 : index
    %26 = vector.load %arg3[%c0_9, %c0_10] : memref<32x128xbf16, #tpu.memory_space<vmem>>, vector<32x128xbf16>
    %cst_11 = arith.constant dense<0.000000e+00> : vector<16x128xf32>
    %27 = tpu.matmul %25, %26, %cst_11 {dimension_numbers = #tpu.dot_dimension_numbers<[1], [0], [0], [1], [0, 0, 1, 1], [], []>} : vector<16x32xbf16>, vector<32x128xbf16>, vector<16x128xf32> -> vector<16x128xf32>
    %c0_12 = arith.constant 0 : index
    %c0_13 = arith.constant 0 : index
    %28 = vector.load %arg6[%c0_12, %c0_13] : memref<1x128xf32, #tpu.memory_space<vmem>>, vector<1x128xf32>
    %29 = vector.broadcast %28 : vector<1x128xf32> to vector<16x128xf32>
    %30 = arith.addf %27, %29 : vector<16x128xf32>
    %cst_14 = arith.constant 5.000000e-01 : f32
    %31 = vector.broadcast %cst_14 : f32 to vector<16x128xf32>
    %32 = arith.mulf %31, %30 : vector<16x128xf32>
    %cst_15 = arith.constant 0.707106769 : f32
    %33 = vector.broadcast %cst_15 : f32 to vector<16x128xf32>
    %34 = arith.mulf %30, %33 : vector<16x128xf32>
    %35 = math.absf %34 : vector<16x128xf32>
    %cst_16 = arith.constant 0.327591091 : f32
    %36 = vector.broadcast %cst_16 : f32 to vector<16x128xf32>
    %37 = arith.mulf %36, %35 : vector<16x128xf32>
    %cst_17 = arith.constant 1.000000e+00 : f32
    %38 = vector.broadcast %cst_17 : f32 to vector<16x128xf32>
    %39 = arith.addf %38, %37 : vector<16x128xf32>
    %cst_18 = arith.constant 1.000000e+00 : f32
    %40 = vector.broadcast %cst_18 : f32 to vector<16x128xf32>
    %41 = arith.divf %40, %39 : vector<16x128xf32>
    %cst_19 = arith.constant 1.06140542 : f32
    %42 = vector.broadcast %cst_19 : f32 to vector<16x128xf32>
    %43 = arith.mulf %42, %41 : vector<16x128xf32>
    %cst_20 = arith.constant -1.45315206 : f32
    %44 = vector.broadcast %cst_20 : f32 to vector<16x128xf32>
    %45 = arith.addf %43, %44 : vector<16x128xf32>
    %46 = arith.mulf %45, %41 : vector<16x128xf32>
    %cst_21 = arith.constant 1.42141378 : f32
    %47 = vector.broadcast %cst_21 : f32 to vector<16x128xf32>
    %48 = arith.addf %46, %47 : vector<16x128xf32>
    %49 = arith.mulf %48, %41 : vector<16x128xf32>
    %cst_22 = arith.constant -0.284496725 : f32
    %50 = vector.broadcast %cst_22 : f32 to vector<16x128xf32>
    %51 = arith.addf %49, %50 : vector<16x128xf32>
    %52 = arith.mulf %51, %41 : vector<16x128xf32>
    %cst_23 = arith.constant 0.254829586 : f32
    %53 = vector.broadcast %cst_23 : f32 to vector<16x128xf32>
    %54 = arith.addf %52, %53 : vector<16x128xf32>
    %55 = arith.mulf %54, %41 : vector<16x128xf32>
    %cst_24 = arith.constant 0.000000e+00 : f32
    %56 = vector.broadcast %cst_24 : f32 to vector<16x128xf32>
    %57 = arith.subf %56, %35 : vector<16x128xf32>
    %58 = arith.mulf %57, %35 : vector<16x128xf32>
    %59 = math.exp %58 : vector<16x128xf32>
    %60 = arith.mulf %55, %59 : vector<16x128xf32>
    %cst_25 = arith.constant 1.000000e+00 : f32
    %61 = vector.broadcast %cst_25 : f32 to vector<16x128xf32>
    %62 = arith.subf %61, %60 : vector<16x128xf32>
    %cst_26 = arith.constant 0.000000e+00 : f32
    %63 = vector.broadcast %cst_26 : f32 to vector<16x128xf32>
    %64 = arith.cmpf oge, %34, %63 : vector<16x128xf32>
    %cst_27 = arith.constant 0.000000e+00 : f32
    %65 = vector.broadcast %cst_27 : f32 to vector<16x128xf32>
    %66 = arith.subf %65, %62 : vector<16x128xf32>
    %67 = arith.select %64, %62, %66 : vector<16x128xi1>, vector<16x128xf32>
    %cst_28 = arith.constant 1.000000e+00 : f32
    %68 = vector.broadcast %cst_28 : f32 to vector<16x128xf32>
    %69 = arith.addf %68, %67 : vector<16x128xf32>
    %70 = arith.mulf %32, %69 : vector<16x128xf32>
    %c0_29 = arith.constant 0 : index
    %c0_30 = arith.constant 0 : index
    %71 = vector.load %arg7[%c0_29, %c0_30] : memref<16x128xf32, #tpu.memory_space<vmem>>, vector<16x128xf32>
    tpu.vector_store %arg7[%c0_29, %c0_30], %70 {strides = array<i32>} : memref<16x128xf32, #tpu.memory_space<vmem>>, vector<16x128xf32>,
    return
  }
  func.func @transform_0(%arg0: i32, %arg1: i32) -> (i32, i32) {
    %c0_i32 = arith.constant 0 : i32
    %c0_i32_0 = arith.constant 0 : i32
    return %arg0, %c0_i32 : i32, i32
  }
  func.func @transform_1(%arg0: i32, %arg1: i32) -> (i32, i32) {
    %c0_i32 = arith.constant 0 : i32
    %c0_i32_0 = arith.constant 0 : i32
    return %c0_i32, %arg1 : i32, i32
  }
  func.func @transform_2(%arg0: i32, %arg1: i32) -> (i32, i32) {
    %c0_i32 = arith.constant 0 : i32
    %c0_i32_0 = arith.constant 0 : i32
    %c0_i32_1 = arith.constant 0 : i32
    return %c0_i32, %c0_i32_0 : i32, i32
  }
  func.func @transform_3(%arg0: i32, %arg1: i32) -> (i32, i32) {
    %c0_i32 = arith.constant 0 : i32
    %c0_i32_0 = arith.constant 0 : i32
    %c0_i32_1 = arith.constant 0 : i32
    return %c0_i32, %c0_i32_0 : i32, i32
  }
  func.func @transform_4(%arg0: i32, %arg1: i32) -> (i32, i32) {
    %c0_i32 = arith.constant 0 : i32
    %c0_i32_0 = arith.constant 0 : i32
    return %c0_i32, %arg1 : i32, i32
  }
  func.func @transform_5(%arg0: i32, %arg1: i32) -> (i32, i32) {
    %c0_i32 = arith.constant 0 : i32
    return %arg0, %arg1 : i32, i32
  }
}

module attributes {stable_mosaic.version = 11 : i64} {
  func.func @kernel(%arg0: i32, %arg1: i32, %arg2: memref<16x128xf32, #tpu.memory_space<vmem>>, %arg3: memref<128x32xbf16, #tpu.memory_space<vmem>>, %arg4: memref<1x32xf32, #tpu.memory_space<vmem>>, %arg5: memref<16x32xf32, #tpu.memory_space<vmem>>, %arg6: memref<16x32xf32, #tpu.memory_space<vmem>>) attributes {dimension_semantics = [#tpu.dimension_semantics<parallel>, #tpu.dimension_semantics<parallel>], iteration_bounds = array<i64: 2, 1>, scalar_prefetch = 0 : i64, scratch_operands = 0 : i64, tpu.core_type = #tpu.core_type<tc>, window_params = [{transform_indices = @transform_0, window_bounds = array<i64: 16, 128>}, {transform_indices = @transform_1, window_bounds = array<i64: 128, 32>}, {transform_indices = @transform_2, window_bounds = array<i64: 1, 32>}, {transform_indices = @transform_3, window_bounds = array<i64: 16, 32>}, {transform_indices = @transform_4, window_bounds = array<i64: 16, 32>}]} {
    %c0 = arith.constant 0 : index
    %c0_0 = arith.constant 0 : index
    %0 = vector.load %arg2[%c0, %c0_0] : memref<16x128xf32, #tpu.memory_space<vmem>>, vector<16x128xf32>
    %1 = arith.truncf %0 : vector<16x128xf32> to vector<16x128xbf16>
    %c0_1 = arith.constant 0 : index
    %c0_2 = arith.constant 0 : index
    %2 = vector.load %arg3[%c0_1, %c0_2] : memref<128x32xbf16, #tpu.memory_space<vmem>>, vector<128x32xbf16>
    %cst = arith.constant dense<0.000000e+00> : vector<16x32xf32>
    %3 = tpu.matmul %1, %2, %cst {dimension_numbers = #tpu.dot_dimension_numbers<[1], [0], [0], [1], [0, 0, 1, 1], [], []>} : vector<16x128xbf16>, vector<128x32xbf16>, vector<16x32xf32> -> vector<16x32xf32>
    %c0_3 = arith.constant 0 : index
    %c0_4 = arith.constant 0 : index
    %4 = vector.load %arg4[%c0_3, %c0_4] : memref<1x32xf32, #tpu.memory_space<vmem>>, vector<1x32xf32>
    %5 = vector.broadcast %4 : vector<1x32xf32> to vector<16x32xf32>
    %6 = arith.addf %3, %5 : vector<16x32xf32>
    %cst_5 = arith.constant 5.000000e-01 : f32
    %7 = vector.broadcast %cst_5 : f32 to vector<16x32xf32>
    %8 = arith.mulf %7, %6 : vector<16x32xf32>
    %cst_6 = arith.constant 0.707106769 : f32
    %9 = vector.broadcast %cst_6 : f32 to vector<16x32xf32>
    %10 = arith.mulf %6, %9 : vector<16x32xf32>
    %11 = math.absf %10 : vector<16x32xf32>
    %cst_7 = arith.constant 0.327591091 : f32
    %12 = vector.broadcast %cst_7 : f32 to vector<16x32xf32>
    %13 = arith.mulf %12, %11 : vector<16x32xf32>
    %cst_8 = arith.constant 1.000000e+00 : f32
    %14 = vector.broadcast %cst_8 : f32 to vector<16x32xf32>
    %15 = arith.addf %14, %13 : vector<16x32xf32>
    %cst_9 = arith.constant 1.000000e+00 : f32
    %16 = vector.broadcast %cst_9 : f32 to vector<16x32xf32>
    %17 = arith.divf %16, %15 : vector<16x32xf32>
    %cst_10 = arith.constant 1.06140542 : f32
    %18 = vector.broadcast %cst_10 : f32 to vector<16x32xf32>
    %19 = arith.mulf %18, %17 : vector<16x32xf32>
    %cst_11 = arith.constant -1.45315206 : f32
    %20 = vector.broadcast %cst_11 : f32 to vector<16x32xf32>
    %21 = arith.addf %19, %20 : vector<16x32xf32>
    %22 = arith.mulf %21, %17 : vector<16x32xf32>
    %cst_12 = arith.constant 1.42141378 : f32
    %23 = vector.broadcast %cst_12 : f32 to vector<16x32xf32>
    %24 = arith.addf %22, %23 : vector<16x32xf32>
    %25 = arith.mulf %24, %17 : vector<16x32xf32>
    %cst_13 = arith.constant -0.284496725 : f32
    %26 = vector.broadcast %cst_13 : f32 to vector<16x32xf32>
    %27 = arith.addf %25, %26 : vector<16x32xf32>
    %28 = arith.mulf %27, %17 : vector<16x32xf32>
    %cst_14 = arith.constant 0.254829586 : f32
    %29 = vector.broadcast %cst_14 : f32 to vector<16x32xf32>
    %30 = arith.addf %28, %29 : vector<16x32xf32>
    %31 = arith.mulf %30, %17 : vector<16x32xf32>
    %cst_15 = arith.constant 0.000000e+00 : f32
    %32 = vector.broadcast %cst_15 : f32 to vector<16x32xf32>
    %33 = arith.subf %32, %11 : vector<16x32xf32>
    %34 = arith.mulf %33, %11 : vector<16x32xf32>
    %35 = math.exp %34 : vector<16x32xf32>
    %36 = arith.mulf %31, %35 : vector<16x32xf32>
    %cst_16 = arith.constant 1.000000e+00 : f32
    %37 = vector.broadcast %cst_16 : f32 to vector<16x32xf32>
    %38 = arith.subf %37, %36 : vector<16x32xf32>
    %cst_17 = arith.constant 0.000000e+00 : f32
    %39 = vector.broadcast %cst_17 : f32 to vector<16x32xf32>
    %40 = arith.cmpf oge, %10, %39 : vector<16x32xf32>
    %cst_18 = arith.constant 0.000000e+00 : f32
    %41 = vector.broadcast %cst_18 : f32 to vector<16x32xf32>
    %42 = arith.subf %41, %38 : vector<16x32xf32>
    %43 = arith.select %40, %38, %42 : vector<16x32xi1>, vector<16x32xf32>
    %cst_19 = arith.constant 1.000000e+00 : f32
    %44 = vector.broadcast %cst_19 : f32 to vector<16x32xf32>
    %45 = arith.addf %44, %43 : vector<16x32xf32>
    %46 = arith.mulf %8, %45 : vector<16x32xf32>
    %c0_20 = arith.constant 0 : index
    %c0_21 = arith.constant 0 : index
    %47 = vector.load %arg5[%c0_20, %c0_21] : memref<16x32xf32, #tpu.memory_space<vmem>>, vector<16x32xf32>
    %48 = arith.addf %46, %47 : vector<16x32xf32>
    %c0_22 = arith.constant 0 : index
    %c0_23 = arith.constant 0 : index
    %49 = vector.load %arg6[%c0_22, %c0_23] : memref<16x32xf32, #tpu.memory_space<vmem>>, vector<16x32xf32>
    tpu.vector_store %arg6[%c0_22, %c0_23], %48 {strides = array<i32>} : memref<16x32xf32, #tpu.memory_space<vmem>>, vector<16x32xf32>,
    return
  }
  func.func @transform_0(%arg0: i32, %arg1: i32) -> (i32, i32) {
    %c0_i32 = arith.constant 0 : i32
    %c0_i32_0 = arith.constant 0 : i32
    return %arg0, %c0_i32 : i32, i32
  }
  func.func @transform_1(%arg0: i32, %arg1: i32) -> (i32, i32) {
    %c0_i32 = arith.constant 0 : i32
    %c0_i32_0 = arith.constant 0 : i32
    return %c0_i32, %arg1 : i32, i32
  }
  func.func @transform_2(%arg0: i32, %arg1: i32) -> (i32, i32) {
    %c0_i32 = arith.constant 0 : i32
    %c0_i32_0 = arith.constant 0 : i32
    return %c0_i32, %arg1 : i32, i32
  }
  func.func @transform_3(%arg0: i32, %arg1: i32) -> (i32, i32) {
    %c0_i32 = arith.constant 0 : i32
    return %arg0, %arg1 : i32, i32
  }
  func.func @transform_4(%arg0: i32, %arg1: i32) -> (i32, i32) {
    %c0_i32 = arith.constant 0 : i32
    return %arg0, %arg1 : i32, i32
  }
}

module attributes {stable_mosaic.version = 11 : i64} {
  func.func @kernel(%arg0: i32, %arg1: i32, %arg2: memref<16x32xf32, #tpu.memory_space<vmem>>, %arg3: memref<32x192xbf16, #tpu.memory_space<vmem>>, %arg4: memref<1x192xf32, #tpu.memory_space<vmem>>, %arg5: memref<16x192xf32, #tpu.memory_space<vmem>>) attributes {dimension_semantics = [#tpu.dimension_semantics<parallel>, #tpu.dimension_semantics<parallel>], iteration_bounds = array<i64: 2, 1>, scalar_prefetch = 0 : i64, scratch_operands = 0 : i64, tpu.core_type = #tpu.core_type<tc>, window_params = [{transform_indices = @transform_0, window_bounds = array<i64: 16, 32>}, {transform_indices = @transform_1, window_bounds = array<i64: 32, 192>}, {transform_indices = @transform_2, window_bounds = array<i64: 1, 192>}, {transform_indices = @transform_3, window_bounds = array<i64: 16, 192>}]} {
    %c0 = arith.constant 0 : index
    %c0_0 = arith.constant 0 : index
    %0 = vector.load %arg2[%c0, %c0_0] : memref<16x32xf32, #tpu.memory_space<vmem>>, vector<16x32xf32>
    %1 = arith.truncf %0 : vector<16x32xf32> to vector<16x32xbf16>
    %c0_1 = arith.constant 0 : index
    %c0_2 = arith.constant 0 : index
    %2 = vector.load %arg3[%c0_1, %c0_2] : memref<32x192xbf16, #tpu.memory_space<vmem>>, vector<32x192xbf16>
    %cst = arith.constant dense<0.000000e+00> : vector<16x192xf32>
    %3 = tpu.matmul %1, %2, %cst {dimension_numbers = #tpu.dot_dimension_numbers<[1], [0], [0], [1], [0, 0, 1, 1], [], []>} : vector<16x32xbf16>, vector<32x192xbf16>, vector<16x192xf32> -> vector<16x192xf32>
    %c0_3 = arith.constant 0 : index
    %c0_4 = arith.constant 0 : index
    %4 = vector.load %arg4[%c0_3, %c0_4] : memref<1x192xf32, #tpu.memory_space<vmem>>, vector<1x192xf32>
    %5 = vector.broadcast %4 : vector<1x192xf32> to vector<16x192xf32>
    %6 = arith.addf %3, %5 : vector<16x192xf32>
    %c0_5 = arith.constant 0 : index
    %c0_6 = arith.constant 0 : index
    %7 = vector.load %arg5[%c0_5, %c0_6] : memref<16x192xf32, #tpu.memory_space<vmem>>, vector<16x192xf32>
    tpu.vector_store %arg5[%c0_5, %c0_6], %6 {strides = array<i32>} : memref<16x192xf32, #tpu.memory_space<vmem>>, vector<16x192xf32>,
    return
  }
  func.func @transform_0(%arg0: i32, %arg1: i32) -> (i32, i32) {
    %c0_i32 = arith.constant 0 : i32
    %c0_i32_0 = arith.constant 0 : i32
    return %arg0, %c0_i32 : i32, i32
  }
  func.func @transform_1(%arg0: i32, %arg1: i32) -> (i32, i32) {
    %c0_i32 = arith.constant 0 : i32
    %c0_i32_0 = arith.constant 0 : i32
    return %c0_i32, %arg1 : i32, i32
  }
  func.func @transform_2(%arg0: i32, %arg1: i32) -> (i32, i32) {
    %c0_i32 = arith.constant 0 : i32
    %c0_i32_0 = arith.constant 0 : i32
    return %c0_i32, %arg1 : i32, i32
  }
  func.func @transform_3(%arg0: i32, %arg1: i32) -> (i32, i32) {
    %c0_i32 = arith.constant 0 : i32
    return %arg0, %arg1 : i32, i32
  }
}

</mosaic_0001>

<bundles_post_ra>
// kernel: mae_forward.19
= control target key start
LH: loop header
LB: loop body
LE: loop exit
PB: predicated region body
PF: predicated region fallthrough
CT: control target
= control target key end

     0   :  { %vm21_vm0 = vcmask 523264   ;;  %v175_v15 = vmov 0   ;;  %s244_s0 = inlined_call_operand.vmem [shape: f32[8,64], index: 0, kind: input, shape index: {}]   ;;  %s245_s1 = inlined_call_operand.vmem [shape: bf16[64,192], index: 1, kind: input, shape index: {}]   ;;  %s246_s2 = inlined_call_operand.vmem [shape: f32[1,64], index: 2, kind: input, shape index: {}]   ;;  %s247_s3 = inlined_call_operand.vmem [shape: f32[1,64], index: 3, kind: input, shape index: {}]   ;;  %s248_s4 = inlined_call_operand.vmem [shape: f32[8,192], index: 4, kind: output, shape index: {}]  }
   0x1   :  { %v18_v0 = vld [vmem:[%s244_s0] sm:$0xff]  ;;  %v164_v9 = vld [vmem:[%s245_s1 + $0x14] ss:$8 sps:$4 sm:$0xff]   ;;  %v166_v10 = vld [vmem:[%s245_s1 + $0x10] ss:$8 sps:$4 sm:$0xff]   ;;  %134 = vmatprep.mubr.bf16.mxu0 %v175_v15 }
   0x2   :  { %v22_v1 = vsel %vm21_vm0, %v18_v0, 0.0  ;;  %v161_v7 = vld [vmem:[%s245_s1 + $0x4] ss:$8 sps:$4 sm:$0xff]   ;;  %v163_v8 = vld [vmem:[%s245_s1] ss:$8 sps:$4 sm:$0xff]  }
   0x3   :  { %23 = vadd.xlane.f32.xlu0 %v22_v1  ;;  %102 = vmatprep.subr.bf16.mxu0 %v161_v7  ;;  %v167_v11 = vld [vmem:[%s245_s1 + $0x24] ss:$8 sps:$4 sm:$0xff]   ;;  %v169_v12 = vld [vmem:[%s245_s1 + $0x20] ss:$8 sps:$4 sm:$0xff]   ;;  %v170_v13 = vld [vmem:[%s245_s1 + $0x34] ss:$8 sps:$4 sm:$0xff]  }
   0x4   :  { %103 = vmatpush1.bf16.msra.mxu0 %v163_v8  ;;  %v172_v14 = vld [vmem:[%s245_s1 + $0x30] ss:$8 sps:$4 sm:$0xff]   ;;  %v149_v20 = vld [vmem:[%s246_s2] ss:$0 sm:$0xff] }
   0x5   :  { %104 = vmatprep.subr.bf16.mxu0 %v164_v9  ;;  %v150_v22 = vld [vmem:[%s247_s3] ss:$0 sm:$0xff] }
   0x8   :  { %105 = vmatpush1.bf16.msra.mxu0 %v166_v10 }
   0x9   :  { %106 = vmatprep.subr.bf16.mxu0 %v167_v11 }
   0xc   :  { %107 = vmatpush1.bf16.msra.mxu0 %v169_v12 }
   0xd   :  { %108 = vmatprep.subr.bf16.mxu0 %v170_v13 }
  0x10   :  { %109 = vmatpush1.bf16.msra.mxu0 %v172_v14 }
  0x90   :  { %v24_v2 = vpop.xlane.xlu0 %23 }
  0x91   :  { %v26_v3 = vmul.f32 0.015625, %v24_v2 }
  0x93   :  { %v27_v4 = vsub.f32 %v18_v0, %v26_v3 }
  0x95   :  { %v28_v5 = vmul.f32 %v27_v4, %v27_v4 }
  0x97   :  { %v29_v6 = vsel %vm21_vm0, %v28_v5, 0.0 }
  0x98   :  { %30 = vadd.xlane.f32.xlu0 %v29_v6 }
 0x125   :  { %v31_v16 = vpop.xlane.xlu0 %30 }
 0x126   :  { %v32_v17 = vmul.f32 0.015625, %v31_v16 }
 0x128   :  { %v33_v18 = vadd.f32 1e-05, %v32_v17 }
 0x12a   :  { %173 = vrsqrt.f32 %v33_v18 }
 0x134   :  { %v174_v19 = vpop.eup %173 }
 0x135   :  { %v35_v21 = vmul.f32 %v174_v19, %v27_v4 }
 0x137   :  { %v42_v23 = vmul.f32 %v149_v20, %v35_v21 }
 0x139   :  { %v49_v24 = vadd.f32 %v150_v22, %v42_v23 }
 0x13b   :  { %v50_v25 = vpack.c.bf16 %v49_v24, %v49_v24 }
 0x13d   :  { %159 = vmatmul.mubr.msk.bf16.vlgmr.msra.gmra.mrb[0].mxu0 %vm21_vm0, %v50_v25 }
 0x210   :  { %v136_v26 = vpop.f32.mrb[0].mxu0 }
 0x211   :  { %143 = vst [vmem:[%s248_s4] sm:$0xff] %v136_v26  ;;  %v138_v27 = vpop.f32.mrb[1].mxu0 }
 0x212   :  { %144 = vst.msk [vmem:[%s248_s4 + $0x8] sm:$0xff] %vm21_vm0, %v138_v27  ;;  %v140_v28 = vpop.f32.mrb[2].mxu0 }
 0x213   :  { %v141_v29 = vpop.f32.mrb[3].mxu0 }

// kernel: mae_forward.18
= control target key start
LH: loop header
LB: loop body
LE: loop exit
PB: predicated region body
PF: predicated region fallthrough
CT: control target
= control target key end

     0   :  { %s850_s24 = smov 0   ;;  %s852_s25 = smov 0   ;;  %s949_s0 = inlined_call_operand.vmem [shape: f32[32,192], index: 0, kind: input, shape index: {}]   ;;  %s950_s1 = inlined_call_operand.vmem [shape: bf16[192,64], index: 1, kind: input, shape index: {}]   ;;  %s951_s2 = inlined_call_operand.vmem [shape: f32[1,192], index: 2, kind: input, shape index: {}]   ;;  %s952_s3 = inlined_call_operand.vmem [shape: f32[1,192], index: 3, kind: input, shape index: {}]   ;;  %s953_s4 = inlined_call_operand.vmem [shape: f32[1,64], index: 4, kind: input, shape index: {}]   ;;  %s954_s5 = inlined_call_operand.vmem [shape: f32[1,64], index: 5, kind: input, shape index: {}]   ;;  %s955_s6 = inlined_call_operand.vmem [shape: f32[1,64], index: 6, kind: input, shape index: {}]   ;;  %s956_s7 = inlined_call_operand.vmem [shape: f32[32,64], index: 7, kind: output, shape index: {}]  }
   0x1   :  { %s854_s26 = smov 0  }
   0x2 LB: > { %s29_s27 = sadd.s32 1, %s803_s25  ;;  %p715_p0 = scmp.ge.s32.totalorder %s807_s26, 1  ;;  %s807_s26 = sphi %s854_s26, %s17_s26   ;;  %s803_s25 = sphi %s852_s25, %s958_s25   ;;  %s799_s24 = sphi %s850_s24, %s957_s24  }
   0x3   : > { %p31_p1 = scmp.ge.s32.totalorder %s29_s27, 2  ;;  %p270_p2 = scmp.lt.s32.totalorder %s807_s26, 3 }
   0x5   : > { %s960_s27 = smov (%p31_p1, %s29_s27), 0  ;;  %p271_p3 = pnand %p715_p0, %p270_p2 }
   0x6   : > { %s716_s28 = sshll.u32 (!%p271_p3), %s799_s24, 1  ;;  %vm343_vm0 = vcmask (!%p271_p3), 523264   ;;  %v765_v8 = vld [vmem:[%s950_s1] sm:$0xff] (!%p271_p3)   ;;  %v809_v9 = vmov (!%p271_p3), 0   ;;  %v766_v10 = vld [vmem:[%s950_s1 + $0x8] sm:$0xff] (!%p271_p3)   ;;  %v767_v11 = vld [vmem:[%s950_s1 + $0x10] sm:$0xff] (!%p271_p3)   ;;  %v382_v41 = vlaneseq (!%p271_p3) }
   0x7   : > { %274 = sbr.rel (%p271_p3) target bundleno = 872 (0x368), region = 48  ;;  %p314_p4 = scmp.lt.s32.totalorder (!%p271_p3), %s716_s28, 3  ;;  %519 = vmatprep.subr.bf16.mxu0 (!%p271_p3), %v809_v9  ;;  %v768_v12 = vld [vmem:[%s950_s1 + $0x18] sm:$0xff] (!%p271_p3)   ;;  %v769_v13 = vld [vmem:[%s950_s1 + $0x20] sm:$0xff] (!%p271_p3)   ;;  %v770_v30 = vld [vmem:[%s950_s1 + $0x28] sm:$0xff] (!%p271_p3)  }
   0x8   : > { %520 = vmatpush1.bf16.msra.mxu0 (!%p271_p3), %v765_v8  ;;  %v771_v31 = vld [vmem:[%s950_s1 + $0x30] sm:$0xff] (!%p271_p3)   ;;  %v772_v32 = vld [vmem:[%s950_s1 + $0x38] sm:$0xff] (!%p271_p3)   ;;  %v773_v33 = vld [vmem:[%s950_s1 + $0x40] sm:$0xff] (!%p271_p3)   ;;  %v383_v44 = vshrl.u32 (!%p271_p3), %v382_v41, 7 }
   0x9   : > { %521 = vmatprep.subr.bf16.mxu0 (!%p271_p3), %v809_v9  ;;  %v774_v34 = vld [vmem:[%s950_s1 + $0x48] sm:$0xff] (!%p271_p3)   ;;  %v775_v35 = vld [vmem:[%s950_s1 + $0x50] sm:$0xff] (!%p271_p3)   ;;  %v776_v36 = vld [vmem:[%s950_s1 + $0x58] sm:$0xff] (!%p271_p3)  }
   0xa   : > { %v384_v45 = vsub.s32 (!%p271_p3), 0, %v383_v44  ;;  %v388_v46 = vsub.s32 (!%p271_p3), 1, %v383_v44  ;;  %v341_v47 = vld [vmem:[%s951_s2] sm:$0x3] (!%p271_p3) }
   0xb   : > { %v342_v49 = vld [vmem:[%s952_s3] sm:$0x3] (!%p271_p3) }
   0xc   : > { %522 = vmatpush1.bf16.msra.mxu0 (!%p271_p3), %v766_v10  ;;  %v385_v51 = vrot.slane (!%p271_p3), %v341_v47, %v384_v45  ;;  %v389_v52 = vrot.slane (!%p271_p3), %v341_v47, %v388_v46  ;;  %v400_v55 = vrot.slane (!%p271_p3), %v342_v49, %v384_v45  ;;  %v404_v56 = vrot.slane (!%p271_p3), %v342_v49, %v388_v46 }
   0xd   : > { %523 = vmatprep.subr.bf16.mxu0 (!%p271_p3), %v809_v9 }
   0xe   : > { %s962_s28 = smov (!%p314_p4, %s716_s28), 3 }
   0xf   : > { %s739_s29 = sshll.u32 %s962_s28, 4  ;;  %s720_s23 = sshll.u32 %s962_s28, 3 }
  0x10   : > { %s318_s9 = scalar_lea.vmem %s949_s0, %s739_s29  ;;  %524 = vmatpush1.bf16.msra.mxu0 %v767_v11 }
  0x11   : > { %v337_v0 = vld [vmem:[%s318_s9] sm:$0xff]  ;;  %v338_v1 = vld [vmem:[%s318_s9 + $0x8] sm:$0xff]  ;;  %v339_v2 = vld [vmem:[%s318_s9 + $0x10] sm:$0xff]  ;;  %525 = vmatprep.subr.bf16.mxu0 %v809_v9 }
  0x12   : > { %v344_v3 = vsel %vm343_vm0, %v338_v1, 0.0  ;;  %v340_v4 = vld [vmem:[%s318_s9 + $0x18] sm:$0xff]  ;;  %s334_s9 = scalar_lea.vmem %s956_s7, %s720_s23 }
  0x13   : > { %v345_v5 = vadd.f32 %v344_v3, %v337_v0  ;;  %v348_v6 = vsel %vm343_vm0, %v340_v4, 0.0 }
  0x14   : > { %v349_v7 = vadd.f32 %v348_v6, %v339_v2  ;;  %526 = vmatpush1.bf16.msra.mxu0 %v768_v12 }
  0x15   : > { %346 = vadd.xlane.f32.xlu0 %v345_v5  ;;  %527 = vmatprep.subr.bf16.mxu0 %v809_v9  ;;  %v721_v5 = vld [vmem:[%s953_s4] ss:$0 sm:$0xff] }
  0x18   : > { %528 = vmatpush1.bf16.msra.mxu0 %v769_v13 }
  0x19   : > { %350 = vadd.xlane.f32.xlu0 %v349_v7  ;;  %529 = vmatprep.subr.bf16.mxu0 %v809_v9 }
  0x1c   : > { %530 = vmatpush1.bf16.msra.mxu0 %v770_v30 }
  0x1d   : > { %531 = vmatprep.subr.bf16.mxu0 %v809_v9 }
  0x20   : > { %532 = vmatpush1.bf16.msra.mxu0 %v771_v31  ;;  %v735_v31 = vld [vmem:[%s954_s5] ss:$0 sm:$0xff] }
  0x21   : > { %533 = vmatprep.subr.bf16.mxu0 %v809_v9 }
  0x24   : > { %534 = vmatpush1.bf16.msra.mxu0 %v772_v32 }
  0x25   : > { %535 = vmatprep.subr.bf16.mxu0 %v809_v9 }
  0x28   : > { %536 = vmatpush1.bf16.msra.mxu0 %v773_v33 }
  0x29   : > { %537 = vmatprep.subr.bf16.mxu0 %v809_v9 }
  0x2c   : > { %538 = vmatpush1.bf16.msra.mxu0 %v774_v34  ;;  %v736_v34 = vld [vmem:[%s955_s6] ss:$0 sm:$0xff] }
  0x2d   : > { %539 = vmatprep.subr.bf16.mxu0 %v809_v9 }
  0x30   : > { %540 = vmatpush1.bf16.msra.mxu0 %v775_v35 }
  0x31   : > { %541 = vmatprep.subr.bf16.mxu0 %v809_v9 }
  0x34   : > { %542 = vmatpush1.bf16.msra.mxu0 %v776_v36 }
  0xa2   : > { %v347_v14 = vpop.xlane.xlu0 %346 }
  0xa3   : > { %v353_v15 = vmul.f32 0.0052083335, %v347_v14 }
  0xa5   : > { %v355_v16 = vsub.f32 %v337_v0, %v353_v15  ;;  %v356_v17 = vsub.f32 %v338_v1, %v353_v15 }
  0xa6   : > { %v351_v18 = vpop.xlane.xlu0 %350 }
  0xa7   : > { %v354_v19 = vmul.f32 0.0052083335, %v351_v18  ;;  %v359_v20 = vmul.f32 %v355_v16, %v355_v16  ;;  %v360_v21 = vmul.f32 %v356_v17, %v356_v17 }
  0xa9   : > { %v357_v22 = vsub.f32 %v339_v2, %v354_v19  ;;  %v358_v23 = vsub.f32 %v340_v4, %v354_v19  ;;  %v363_v24 = vsel %vm343_vm0, %v360_v21, 0.0 }
  0xaa   : > { %v364_v25 = vadd.f32 %v363_v24, %v359_v20 }
  0xab   : > { %v361_v26 = vmul.f32 %v357_v22, %v357_v22  ;;  %v362_v27 = vmul.f32 %v358_v23, %v358_v23 }
  0xac   : > { %365 = vadd.xlane.f32.xlu1 %v364_v25 }
  0xad   : > { %v367_v28 = vsel %vm343_vm0, %v362_v27, 0.0 }
  0xae   : > { %v368_v29 = vadd.f32 %v367_v28, %v361_v26 }
  0xb0   : > { %369 = vadd.xlane.f32.xlu1 %v368_v29 }
 0x139   : > { %v366_v37 = vpop.xlane.xlu1 %365 }
 0x13a   : > { %v371_v38 = vmul.f32 0.0052083335, %v366_v37 }
 0x13c   : > { %v373_v39 = vadd.f32 1e-05, %v371_v38 }
 0x13d   : > { %v370_v40 = vpop.xlane.xlu1 %369 }
 0x13e   : > { %777 = vrsqrt.f32 %v373_v39  ;;  %v372_v42 = vmul.f32 0.0052083335, %v370_v40 }
 0x140   : > { %v374_v43 = vadd.f32 1e-05, %v372_v42 }
 0x142   : > { %779 = vrsqrt.f32 %v374_v43 }
 0x148   : > { %v778_v48 = vpop.eup %777 }
 0x149   : > { %v378_v50 = vmul.f32 %v778_v48, %v356_v17  ;;  %v377_v53 = vmul.f32 %v778_v48, %v355_v16 }
 0x14b   : > { %v393_v58 = vmul.f32 %v389_v52, %v378_v50  ;;  %v392_v60 = vmul.f32 %v385_v51, %v377_v53 }
 0x14c   : > { %v780_v54 = vpop.eup %779 }
 0x14d   : > { %v380_v57 = vmul.f32 %v780_v54, %v358_v23  ;;  %v379_v59 = vmul.f32 %v780_v54, %v357_v22  ;;  %v408_v63 = vadd.f32 %v404_v56, %v393_v58  ;;  %v407_v1 = vadd.f32 %v400_v55, %v392_v60 }
 0x14f   : > { %v395_v61 = vmul.f32 %v389_v52, %v380_v57  ;;  %v394_v62 = vmul.f32 %v385_v51, %v379_v59 }
 0x151   : > { %v410_v0 = vadd.f32 %v404_v56, %v395_v61  ;;  %v409_v2 = vadd.f32 %v400_v55, %v394_v62 }
 0x153   : > { %v412_v3 = vpack.c.bf16 %v410_v0, %v408_v63  ;;  %v411_v4 = vpack.c.bf16 %v409_v2, %v407_v1 }
 0x155   : > { %734 = vmatprep.mubr.msk.bf16.mxu0 %vm343_vm0, %v412_v3 }
 0x156   : > { %552 = vmatmul.mubr.bf16.vlgmr.msra.gmra.mrb[0].mxu0 %v411_v4 }
 0x229   : > { %v553_v6 = vpop.f32.mrb[0].mxu0 }
 0x22a   : > { %v554_v7 = vadd.f32 %v721_v5, %v553_v6  ;;  %v555_v8 = vpop.f32.mrb[1].mxu0 }
 0x22b   : > { %v556_v9 = vpop.f32.mrb[2].mxu0 }
 0x22c   : > { %v557_v10 = vadd.f32 %v721_v5, %v556_v9  ;;  %v558_v11 = vpop.f32.mrb[3].mxu0  ;;  %v562_v12 = vsel %vm343_vm0, %v554_v7, 0.0 }
 0x22d   : > { %563 = vadd.xlane.f32.xlu0 %v562_v12 }
 0x22e   : > { %v565_v13 = vsel %vm343_vm0, %v557_v10, 0.0 }
 0x22f   : > { %566 = vadd.xlane.f32.xlu1 %v565_v13 }
 0x2ba   : > { %v564_v14 = vpop.xlane.xlu0 %563 }
 0x2bb   : > { %v569_v15 = vmul.f32 0.015625, %v564_v14 }
 0x2bc   : > { %v567_v16 = vpop.xlane.xlu1 %566 }
 0x2bd   : > { %v571_v17 = vsub.f32 %v554_v7, %v569_v15  ;;  %v570_v18 = vmul.f32 0.015625, %v567_v16 }
 0x2bf   : > { %v572_v19 = vsub.f32 %v557_v10, %v570_v18  ;;  %v573_v20 = vmul.f32 %v571_v17, %v571_v17 }
 0x2c1   : > { %v575_v21 = vsel %vm343_vm0, %v573_v20, 0.0  ;;  %v574_v22 = vmul.f32 %v572_v19, %v572_v19 }
 0x2c2   : > { %576 = vadd.xlane.f32.xlu0 %v575_v21 }
 0x2c3   : > { %v578_v23 = vsel %vm343_vm0, %v574_v22, 0.0 }
 0x2c4   : > { %579 = vadd.xlane.f32.xlu1 %v578_v23 }
 0x34f   : > { %v577_v24 = vpop.xlane.xlu0 %576 }
 0x350   : > { %v581_v25 = vmul.f32 0.015625, %v577_v24 }
 0x351   : > { %v580_v26 = vpop.xlane.xlu1 %579 }
 0x352   : > { %v583_v27 = vadd.f32 1e-05, %v581_v25  ;;  %v582_v28 = vmul.f32 0.015625, %v580_v26 }
 0x354   : > { %781 = vrsqrt.f32 %v583_v27  ;;  %v584_v29 = vadd.f32 1e-05, %v582_v28 }
 0x356   : > { %783 = vrsqrt.f32 %v584_v29 }
 0x35e   : > { %v782_v30 = vpop.eup %781 }
 0x35f   : > { %v587_v32 = vmul.f32 %v782_v30, %v571_v17 }
 0x360   : > { %v784_v33 = vpop.eup %783 }
 0x361   : > { %v595_v35 = vmul.f32 %v735_v31, %v587_v32  ;;  %v588_v36 = vmul.f32 %v784_v33, %v572_v19 }
 0x363   : > { %v603_v37 = vadd.f32 %v736_v34, %v595_v35  ;;  %v596_v38 = vmul.f32 %v735_v31, %v588_v36 }
 0x365   : > { %605 = vst.msk [vmem:[%s334_s9] sm:$0xff] %vm343_vm0, %v603_v37  ;;  %v604_v39 = vadd.f32 %v736_v34, %v596_v38 }
 0x367   : > { %606 = vst.msk [vmem:[%s334_s9 + $0x8] sm:$0xff] %vm343_vm0, %v604_v39 }
 0x368 PF: > { %s17_s26 = sadd.s32 1, %s807_s26   ;;  %s957_s24 = smov %s803_s25 }
 0x369   : > { %p14_p5 = scmp.ge.s32.totalorder %s17_s26, 4   ;;  %s958_s25 = smov %s960_s27 }
 0x36b   :  { %16 = sbr.rel (!%p14_p5) target bundleno = 2 (0x2), region = 84 }

// kernel: mae_forward.21
= control target key start
LH: loop header
LB: loop body
LE: loop exit
PB: predicated region body
PF: predicated region fallthrough
CT: control target
= control target key end

     0   :  { %v127_v0 = vmov 0.0   ;;  %vm128_vm0 = vmmov 0   ;;  %vm50_vm1 = vcmask 523264   ;;  %s170_s1 = inlined_call_operand.vmem [shape: bf16[64,64], index: 1, kind: input, shape index: {}]   ;;  %s171_s0 = inlined_call_operand.vmem [shape: f32[8,64], index: 0, kind: input, shape index: {}]   ;;  %s172_s2 = inlined_call_operand.vmem [shape: f32[8,64], index: 2, kind: input, shape index: {}]   ;;  %s173_s3 = inlined_call_operand.vmem [shape: f32[8,64], index: 3, kind: output, shape index: {}]  }
   0x1   :  { %109 = vmatprep.subr.bf16.mxu0 %v127_v0  ;;  %v123_v1 = vld [vmem:[%s170_s1] sm:$0xff]   ;;  %117 = vmatprep.mubr.msk.bf16.mxu0 %vm128_vm0, %v127_v0  ;;  %v124_v2 = vld [vmem:[%s170_s1 + $0x8] sm:$0xff]   ;;  %v125_v3 = vld [vmem:[%s170_s1 + $0x10] sm:$0xff]  }
   0x2   :  { %110 = vmatpush3.bf16.msra.mxu0 %v123_v1  ;;  %v126_v4 = vld [vmem:[%s170_s1 + $0x18] sm:$0xff]   ;;  %v15_v5 = vld [vmem:[%s171_s0] sm:$0xff] }
   0x3   :  { %111 = vmatprep.subr.bf16.mxu0 %v127_v0  ;;  %v16_v6 = vpack.c.bf16 %v15_v5, %v15_v5  ;;  %v25_v7 = vld [vmem:[%s172_s2] sm:$0xff] }
   0x6   :  { %112 = vmatpush3.bf16.msra.mxu0 %v124_v2 }
   0x7   :  { %113 = vmatprep.subr.bf16.mxu0 %v127_v0 }
   0xa   :  { %114 = vmatpush3.bf16.msra.mxu0 %v125_v3 }
   0xb   :  { %115 = vmatprep.subr.bf16.mxu0 %v127_v0 }
   0xe   :  { %116 = vmatpush3.bf16.msra.mxu0 %v126_v4 }
  0x11   :  { %118 = vmatmul.mubr.msk.bf16.vlgmr.msra.gmra.mrb[0].mxu0 %vm50_vm1, %v16_v6 }
  0xe4   :  { %v88_v8 = vpop.f32.mrb[0].mxu0 }
  0xe5   :  { %v89_v9 = vadd.f32 %v88_v8, %v25_v7  ;;  %v119_v10 = vpop.f32.mrb[1].mxu0 }
  0xe6   :  { %v91_v11 = vpop.f32.mrb[2].mxu0 }
  0xe7   :  { %94 = vst.msk [vmem:[%s173_s3] sm:$0xff] %vm50_vm1, %v89_v9  ;;  %v120_v12 = vpop.f32.mrb[3].mxu0 }

// kernel: mae_forward.20
= control target key start
LH: loop header
LB: loop body
LE: loop exit
PB: predicated region body
PF: predicated region fallthrough
CT: control target
= control target key end

     0   :  { %s895_s12 = smov 0   ;;  %s972_s0 = inlined_call_operand.vmem [shape: f32[8,4,16], index: 0, kind: input, shape index: {}]   ;;  %s973_s1 = inlined_call_operand.vmem [shape: f32[8,4,16], index: 1, kind: input, shape index: {}]   ;;  %s974_s2 = inlined_call_operand.vmem [shape: f32[8,4,16], index: 2, kind: input, shape index: {}]   ;;  %s975_s3 = inlined_call_operand.vmem [shape: f32[8,4,16], index: 3, kind: output, shape index: {}]  }
   0x1 LB: > { %s752_s13 = sadd.s32 4294967295, %s871_s12   ;;  %p756_p0 = scmp.ge.s32.totalorder %s871_s12, 1  ;;  %s871_s12 = sphi %s895_s12, %s13_s12  }
   0x2   : > { %p160_p1 = scmp.lt.s32.totalorder %s871_s12, 3 }
   0x4   : > { %p161_p2 = pnand %p756_p0, %p160_p1 }
   0x5   : > { %s757_s14 = sshll.u32 (!%p161_p2), %s752_s13, 2  ;;  %v873_v0 = vmov (!%p161_p2), 0.0   ;;  %vm874_vm0 = vmmov (!%p161_p2), 0   ;;  %vm243_vm1 = vcmask (!%p161_p2), 130048   ;;  %vm432_vm2 = vcmask (!%p161_p2), 27648  }
   0x6   : > { %164 = sbr.rel (%p161_p2) target bundleno = 784 (0x310), region = 32  ;;  %791 = vmatprep.subr.bf16.mxu0 (!%p161_p2), %v873_v0  ;;  %p195_p3 = scmp.lt.s32.totalorder (!%p161_p2), %s757_s14, 7  ;;  %797 = vmatprep.subr.bf16.mxu1 (!%p161_p2), %v873_v0  ;;  %vm485_vm3 = vcmask (!%p161_p2), 1041408   ;;  %vm481_vm4 = vcmask (!%p161_p2), 31744   ;;  %vm667_vm5 = vcmask (!%p161_p2), 125952  }
   0x7   : > { %793 = vmatprep.mubr.msk.bf16.mxu0 (!%p161_p2), %vm874_vm0, %v873_v0  ;;  %799 = vmatprep.mubr.msk.bf16.mxu1 (!%p161_p2), %vm874_vm0, %v873_v0 }
   0xd   : > { %s977_s14 = smov (!%p195_p3, %s757_s14), 7 }
   0xe   : > { %s909_s15 = sshll.u32 %s977_s14, 2 }
   0xf   : > { %s204_s18 = scalar_lea.vmem %s973_s1, %s909_s15  ;;  %s198_s21 = scalar_lea.vmem %s972_s0, %s909_s15 }
  0x10   : > { %v227_v1 = vld [vmem:[%s204_s18] sm:$0xf]  ;;  %v228_v2 = vld [vmem:[%s204_s18 + $0x4] sm:$0xf]  ;;  %v229_v5 = vld [vmem:[%s204_s18 + $0x8] sm:$0xf]  ;;  %s210_s24 = scalar_lea.vmem %s974_s2, %s909_s15  ;;  %s216_s27 = scalar_lea.vmem %s975_s3, %s909_s15 }
  0x11   : > { %v231_v3 = vpack.c.bf16 %v227_v1, %v227_v1  ;;  %v232_v4 = vpack.c.bf16 %v228_v2, %v228_v2  ;;  %v230_v6 = vld [vmem:[%s204_s18 + $0xc] sm:$0xf]  ;;  %v219_v9 = vld [vmem:[%s198_s21] sm:$0xf]  ;;  %v220_v10 = vld [vmem:[%s198_s21 + $0x4] sm:$0xf]  ;;  %v233_v11 = vpack.c.bf16 %v229_v5, %v229_v5 }
  0x12   : > { %v234_v12 = vpack.c.bf16 %v230_v6, %v230_v6  ;;  %v223_v13 = vpack.c.bf16 %v219_v9, %v219_v9  ;;  %v224_v14 = vpack.c.bf16 %v220_v10, %v220_v10  ;;  %v221_v17 = vld [vmem:[%s198_s21 + $0x8] sm:$0xf]  ;;  %v222_v18 = vld [vmem:[%s198_s21 + $0xc] sm:$0xf]  ;;  %v235_v2 = vld [vmem:[%s210_s24] sm:$0xf] }
  0x13   : > { %v248_v7 = vsel %vm243_vm1, %v231_v3, 0  ;;  %v294_v8 = vsel %vm243_vm1, %v232_v4, 0  ;;  %v340_v15 = vsel %vm243_vm1, %v233_v11, 0  ;;  %v225_v19 = vpack.c.bf16 %v221_v17, %v221_v17  ;;  %v236_v5 = vld [vmem:[%s210_s24 + $0x4] sm:$0xf] }
  0x14   : > { %792 = vmatpush3.bf16.xpose.msra.mxu0 %v248_v7  ;;  %798 = vmatpush3.bf16.xpose.msra.mxu1 %v294_v8  ;;  %v386_v16 = vsel %vm243_vm1, %v234_v12, 0  ;;  %v226_v20 = vpack.c.bf16 %v222_v18, %v222_v18  ;;  %v239_v3 = vpack.c.bf16 %v235_v2, %v235_v2  ;;  %v240_v6 = vpack.c.bf16 %v236_v5, %v236_v5  ;;  %v237_v8 = vld [vmem:[%s210_s24 + $0x8] sm:$0xf]  ;;  %v238_v11 = vld [vmem:[%s210_s24 + $0xc] sm:$0xf] }
  0x15   : > { %803 = vmatprep.subr.bf16.mxu0 %v873_v0  ;;  %809 = vmatprep.subr.bf16.mxu1 %v873_v0  ;;  %v241_v9 = vpack.c.bf16 %v237_v8, %v237_v8  ;;  %v242_v12 = vpack.c.bf16 %v238_v11, %v238_v11 }
  0x16   : > { %v487_v4 = vsel %vm485_vm3, %v239_v3, 0  ;;  %v533_v7 = vsel %vm485_vm3, %v240_v6, 0 }
  0x17   : > { %v579_v10 = vsel %vm485_vm3, %v241_v9, 0 }
  0x1b   : > { %794 = vmatmul.mubr.msk.bf16.vlgmr.msra.gmra.mrb[0].mxu0 %vm243_vm1, %v223_v13  ;;  %800 = vmatmul.mubr.msk.bf16.vlgmr.msra.gmra.mrb[0].mxu1 %vm243_vm1, %v224_v14  ;;  %v625_v13 = vsel %vm485_vm3, %v242_v12, 0 }
  0x1c   : > { %804 = vmatpush3.bf16.xpose.msra.mxu0 %v340_v15  ;;  %810 = vmatpush3.bf16.xpose.msra.mxu1 %v386_v16 }
  0x1d   : > { %805 = vmatprep.mubr.msk.bf16.mxu0 %vm874_vm0, %v873_v0  ;;  %811 = vmatprep.mubr.msk.bf16.mxu1 %vm874_vm0, %v873_v0 }
  0x1e   : > { %815 = vmatprep.subr.bf16.mxu0 %v873_v0  ;;  %821 = vmatprep.subr.bf16.mxu1 %v873_v0 }
  0x23   : > { %806 = vmatmul.mubr.msk.bf16.vlgmr.msra.gmra.mrb[4].mxu0 %vm243_vm1, %v225_v19  ;;  %812 = vmatmul.mubr.msk.bf16.vlgmr.msra.gmra.mrb[4].mxu1 %vm243_vm1, %v226_v20 }
  0x24   : > { %817 = vmatprep.mubr.msk.bf16.mxu0 %vm874_vm0, %v873_v0  ;;  %823 = vmatprep.mubr.msk.bf16.mxu1 %vm874_vm0, %v873_v0 }
  0x25   : > { %816 = vmatpush3.bf16.msra.mxu0 %v487_v4  ;;  %822 = vmatpush3.bf16.msra.mxu1 %v533_v7 }
  0x26   : > { %827 = vmatprep.subr.bf16.mxu0 %v873_v0  ;;  %833 = vmatprep.subr.bf16.mxu1 %v873_v0 }
  0xee   : > { %v284_v21 = vpop.f32.mrb[0].mxu0  ;;  %v330_v22 = vpop.f32.mrb[0].mxu1 }
  0xef   : > { %v428_v23 = vmul.f32 0.125, %v284_v21  ;;  %v795_v24 = vpop.f32.mrb[1].mxu0  ;;  %v429_v25 = vmul.f32 0.125, %v330_v22  ;;  %v801_v26 = vpop.f32.mrb[1].mxu1 }
  0xf0   : > { %v287_v27 = vpop.f32.mrb[2].mxu0  ;;  %v333_v28 = vpop.f32.mrb[2].mxu1 }
  0xf1   : > { %v796_v29 = vpop.f32.mrb[3].mxu0  ;;  %v433_v30 = vsel %vm432_vm2, %v428_v23, -inf  ;;  %v802_v31 = vpop.f32.mrb[3].mxu1  ;;  %v436_v32 = vsel %vm432_vm2, %v429_v25, -inf }
  0xf2   : > { %434 = vmax.xlane.f32.xlu0 %v433_v30 }
  0xf6   : > { %437 = vmax.xlane.f32.xlu0 %v436_v32  ;;  %v376_v33 = vpop.f32.mrb[4].mxu0  ;;  %v422_v34 = vpop.f32.mrb[4].mxu1 }
  0xf7   : > { %v430_v35 = vmul.f32 0.125, %v376_v33  ;;  %v807_v36 = vpop.f32.mrb[5].mxu0  ;;  %v431_v37 = vmul.f32 0.125, %v422_v34  ;;  %v813_v38 = vpop.f32.mrb[5].mxu1 }
  0xf8   : > { %v379_v39 = vpop.f32.mrb[6].mxu0  ;;  %v425_v40 = vpop.f32.mrb[6].mxu1 }
  0xf9   : > { %v808_v41 = vpop.f32.mrb[7].mxu0  ;;  %v439_v42 = vsel %vm432_vm2, %v430_v35, -inf  ;;  %v814_v43 = vpop.f32.mrb[7].mxu1  ;;  %v442_v44 = vsel %vm432_vm2, %v431_v37, -inf }
  0xfa   : > { %440 = vmax.xlane.f32.xlu1 %v439_v42 }
  0xfe   : > { %443 = vmax.xlane.f32.xlu1 %v442_v44 }
 0x17f   : > { %v435_v45 = vpop.xlane.xlu0 %434 }
 0x180   : > { %v445_v46 = vsub.f32 %v428_v23, %v435_v45 }
 0x182   : > { %v449_v47 = vmul.f32 1.442695, %v445_v46 }
 0x183   : > { %v438_v48 = vpop.xlane.xlu0 %437 }
 0x184   : > { %849 = vpow2.f32 %v449_v47  ;;  %v446_v49 = vsub.f32 %v429_v25, %v438_v48 }
 0x186   : > { %v451_v50 = vmul.f32 1.442695, %v446_v49 }
 0x187   : > { %v441_v51 = vpop.xlane.xlu1 %440 }
 0x188   : > { %851 = vpow2.f32 %v451_v50  ;;  %v447_v52 = vsub.f32 %v430_v35, %v441_v51 }
 0x18a   : > { %v453_v53 = vmul.f32 1.442695, %v447_v52 }
 0x18b   : > { %v444_v54 = vpop.xlane.xlu1 %443 }
 0x18c   : > { %853 = vpow2.f32 %v453_v53  ;;  %v448_v55 = vsub.f32 %v431_v37, %v444_v54 }
 0x18e   : > { %v850_v56 = vpop.eup %849  ;;  %v455_v57 = vmul.f32 1.442695, %v448_v55 }
 0x18f   : > { %v457_v58 = vsel %vm432_vm2, %v850_v56, 0.0 }
 0x190   : > { %855 = vpow2.f32 %v455_v57  ;;  %458 = vadd.xlane.f32.xlu0 %v457_v58 }
 0x192   : > { %v852_v59 = vpop.eup %851 }
 0x193   : > { %v460_v60 = vsel %vm432_vm2, %v852_v59, 0.0 }
 0x194   : > { %461 = vadd.xlane.f32.xlu1 %v460_v60 }
 0x196   : > { %v854_v61 = vpop.eup %853 }
 0x197   : > { %v463_v62 = vsel %vm432_vm2, %v854_v61, 0.0 }
 0x198   : > { %464 = vadd.xlane.f32.xlu0 %v463_v62 }
 0x19a   : > { %v856_v63 = vpop.eup %855 }
 0x19b   : > { %v466_v1 = vsel %vm432_vm2, %v856_v63, 0.0 }
 0x19c   : > { %467 = vadd.xlane.f32.xlu1 %v466_v1 }
 0x21d   : > { %v459_v14 = vpop.xlane.xlu0 %458 }
 0x21e   : > { %857 = vrcp.f32 %v459_v14 }
 0x221   : > { %v462_v15 = vpop.xlane.xlu1 %461 }
 0x222   : > { %859 = vrcp.f32 %v462_v15 }
 0x225   : > { %v465_v16 = vpop.xlane.xlu0 %464 }
 0x226   : > { %861 = vrcp.f32 %v465_v16 }
 0x228   : > { %v858_v17 = vpop.eup %857 }
 0x229   : > { %v473_v18 = vmul.f32 %v858_v17, %v850_v56  ;;  %v468_v19 = vpop.xlane.xlu1 %467 }
 0x22a   : > { %863 = vrcp.f32 %v468_v19 }
 0x22b   : > { %v477_v20 = vpack.c.bf16 %v473_v18, %v473_v18 }
 0x22c   : > { %v860_v21 = vpop.eup %859 }
 0x22d   : > { %v474_v22 = vmul.f32 %v860_v21, %v852_v59  ;;  %818 = vmatmul.mubr.msk.bf16.vlgmr.msra.gmra.mrb[8].mxu0 %vm481_vm4, %v477_v20 }
 0x22e   : > { %828 = vmatpush3.bf16.msra.mxu0 %v579_v10  ;;  %829 = vmatprep.mubr.msk.bf16.mxu0 %vm874_vm0, %v873_v0 }
 0x22f   : > { %v478_v23 = vpack.c.bf16 %v474_v22, %v474_v22 }
 0x230   : > { %v862_v24 = vpop.eup %861 }
 0x231   : > { %v475_v25 = vmul.f32 %v862_v24, %v854_v61  ;;  %824 = vmatmul.mubr.msk.bf16.vlgmr.msra.gmra.mrb[8].mxu1 %vm481_vm4, %v478_v23 }
 0x232   : > { %834 = vmatpush3.bf16.msra.mxu1 %v625_v13  ;;  %835 = vmatprep.mubr.msk.bf16.mxu1 %vm874_vm0, %v873_v0 }
 0x233   : > { %v479_v26 = vpack.c.bf16 %v475_v25, %v475_v25 }
 0x234   : > { %v864_v27 = vpop.eup %863 }
 0x235   : > { %v476_v28 = vmul.f32 %v864_v27, %v856_v63  ;;  %830 = vmatmul.mubr.msk.bf16.vlgmr.msra.gmra.mrb[12].mxu0 %vm481_vm4, %v479_v26 }
 0x237   : > { %v480_v29 = vpack.c.bf16 %v476_v28, %v476_v28 }
 0x239   : > { %836 = vmatmul.mubr.msk.bf16.vlgmr.msra.gmra.mrb[12].mxu1 %vm481_vm4, %v480_v29 }
 0x300   : > { %v523_v30 = vpop.f32.mrb[8].mxu0 }
 0x301   : > { %668 = vst.msk [vmem:[%s216_s27] sm:$0xf] %vm667_vm5, %v523_v30  ;;  %v819_v31 = vpop.f32.mrb[9].mxu0 }
 0x302   : > { %v526_v32 = vpop.f32.mrb[10].mxu0 }
 0x303   : > { %v820_v33 = vpop.f32.mrb[11].mxu0 }
 0x304   : > { %v569_v0 = vpop.f32.mrb[8].mxu1 }
 0x305   : > { %669 = vst.msk [vmem:[%s216_s27 + $0x4] sm:$0xf] %vm667_vm5, %v569_v0  ;;  %v825_v34 = vpop.f32.mrb[9].mxu1 }
 0x306   : > { %v572_v35 = vpop.f32.mrb[10].mxu1 }
 0x307   : > { %v826_v36 = vpop.f32.mrb[11].mxu1 }
 0x308   : > { %v615_v37 = vpop.f32.mrb[12].mxu0 }
 0x309   : > { %670 = vst.msk [vmem:[%s216_s27 + $0x8] sm:$0xf] %vm667_vm5, %v615_v37  ;;  %v831_v38 = vpop.f32.mrb[13].mxu0 }
 0x30a   : > { %v618_v39 = vpop.f32.mrb[14].mxu0 }
 0x30b   : > { %v832_v40 = vpop.f32.mrb[15].mxu0 }
 0x30c   : > { %v661_v41 = vpop.f32.mrb[12].mxu1 }
 0x30d   : > { %671 = vst.msk [vmem:[%s216_s27 + $0xc] sm:$0xf] %vm667_vm5, %v661_v41  ;;  %v837_v42 = vpop.f32.mrb[13].mxu1 }
 0x30e   : > { %v664_v43 = vpop.f32.mrb[14].mxu1 }
 0x30f   : > { %v838_v44 = vpop.f32.mrb[15].mxu1 }
 0x310 PF: > { %s13_s12 = sadd.s32 1, %s871_s12  }
 0x311   : > { %p10_p4 = scmp.ge.s32.totalorder %s13_s12, 4  }
 0x313   :  { %12 = sbr.rel (!%p10_p4) target bundleno = 1 (0x1), region = 68 }

// kernel: mae_forward.22
= control target key start
LH: loop header
LB: loop body
LE: loop exit
PB: predicated region body
PF: predicated region fallthrough
CT: control target
= control target key end

     0   :  { %vm24_vm0 = vcmask 523264   ;;  %v252_v15 = vmov 0   ;;  %v64_v26 = vlaneseq  ;;  %s328_s0 = inlined_call_operand.vmem [shape: f32[8,64], index: 0, kind: input, shape index: {}]   ;;  %s329_s1 = inlined_call_operand.vmem [shape: bf16[64,256], index: 1, kind: input, shape index: {}]   ;;  %s330_s2 = inlined_call_operand.vmem [shape: f32[1,64], index: 2, kind: input, shape index: {}]   ;;  %s331_s3 = inlined_call_operand.vmem [shape: f32[1,64], index: 3, kind: input, shape index: {}]   ;;  %s332_s4 = inlined_call_operand.vmem [shape: f32[1,256], index: 4, kind: input, shape index: {}]   ;;  %s333_s5 = inlined_call_operand.vmem [shape: f32[8,256], index: 5, kind: output, shape index: {}]  }
   0x1   :  { %v21_v0 = vld [vmem:[%s328_s0] sm:$0xff]  ;;  %v233_v9 = vld [vmem:[%s329_s1 + $0x14] ss:$8 sps:$4 sm:$0xff]   ;;  %v235_v10 = vld [vmem:[%s329_s1 + $0x10] ss:$8 sps:$4 sm:$0xff]   ;;  %149 = vmatprep.mubr.bf16.mxu0 %v252_v15 }
   0x2   :  { %v25_v1 = vsel %vm24_vm0, %v21_v0, 0.0  ;;  %v230_v7 = vld [vmem:[%s329_s1 + $0x4] ss:$8 sps:$4 sm:$0xff]   ;;  %v232_v8 = vld [vmem:[%s329_s1] ss:$8 sps:$4 sm:$0xff]   ;;  %v65_v27 = vshrl.u32 %v64_v26, 7 }
   0x3   :  { %26 = vadd.xlane.f32.xlu0 %v25_v1  ;;  %117 = vmatprep.subr.bf16.mxu0 %v230_v7  ;;  %v236_v11 = vld [vmem:[%s329_s1 + $0x24] ss:$8 sps:$4 sm:$0xff]   ;;  %v238_v12 = vld [vmem:[%s329_s1 + $0x20] ss:$8 sps:$4 sm:$0xff]   ;;  %v239_v13 = vld [vmem:[%s329_s1 + $0x34] ss:$8 sps:$4 sm:$0xff]  }
   0x4   :  { %118 = vmatpush1.bf16.msra.mxu0 %v232_v8  ;;  %v241_v14 = vld [vmem:[%s329_s1 + $0x30] ss:$8 sps:$4 sm:$0xff]   ;;  %v218_v20 = vld [vmem:[%s330_s2] ss:$0 sm:$0xff]  ;;  %v66_v28 = vsub.s32 0, %v65_v27  ;;  %v70_v30 = vsub.s32 1, %v65_v27 }
   0x5   :  { %119 = vmatprep.subr.bf16.mxu0 %v233_v9  ;;  %v219_v22 = vld [vmem:[%s331_s3] ss:$0 sm:$0xff] }
   0x6   :  { %v62_v29 = vld [vmem:[%s332_s4] sm:$0x3] }
   0x7   :  { %v67_v31 = vrot.slane %v62_v29, %v66_v28  ;;  %v71_v32 = vrot.slane %v62_v29, %v70_v30 }
   0x8   :  { %120 = vmatpush1.bf16.msra.mxu0 %v235_v10 }
   0x9   :  { %121 = vmatprep.subr.bf16.mxu0 %v236_v11 }
   0xc   :  { %122 = vmatpush1.bf16.msra.mxu0 %v238_v12 }
   0xd   :  { %123 = vmatprep.subr.bf16.mxu0 %v239_v13 }
  0x10   :  { %124 = vmatpush1.bf16.msra.mxu0 %v241_v14 }
  0x90   :  { %v27_v2 = vpop.xlane.xlu0 %26 }
  0x91   :  { %v29_v3 = vmul.f32 0.015625, %v27_v2 }
  0x93   :  { %v30_v4 = vsub.f32 %v21_v0, %v29_v3 }
  0x95   :  { %v31_v5 = vmul.f32 %v30_v4, %v30_v4 }
  0x97   :  { %v32_v6 = vsel %vm24_vm0, %v31_v5, 0.0 }
  0x98   :  { %33 = vadd.xlane.f32.xlu0 %v32_v6 }
 0x125   :  { %v34_v16 = vpop.xlane.xlu0 %33 }
 0x126   :  { %v35_v17 = vmul.f32 0.015625, %v34_v16 }
 0x128   :  { %v36_v18 = vadd.f32 1e-05, %v35_v17 }
 0x12a   :  { %242 = vrsqrt.f32 %v36_v18 }
 0x134   :  { %v243_v19 = vpop.eup %242 }
 0x135   :  { %v38_v21 = vmul.f32 %v243_v19, %v30_v4 }
 0x137   :  { %v45_v23 = vmul.f32 %v218_v20, %v38_v21 }
 0x139   :  { %v52_v24 = vadd.f32 %v219_v22, %v45_v23 }
 0x13b   :  { %v53_v25 = vpack.c.bf16 %v52_v24, %v52_v24 }
 0x13d   :  { %228 = vmatmul.mubr.msk.bf16.vlgmr.msra.gmra.mrb[0].mxu0 %vm24_vm0, %v53_v25 }
 0x210   :  { %v151_v33 = vpop.f32.mrb[0].mxu0 }
 0x211   :  { %v152_v34 = vadd.f32 %v151_v33, %v67_v31  ;;  %v153_v35 = vpop.f32.mrb[1].mxu0 }
 0x212   :  { %v154_v36 = vadd.f32 %v153_v35, %v71_v32  ;;  %v155_v37 = vpop.f32.mrb[2].mxu0 }
 0x213   :  { %v160_v38 = vmul.f32 0.70710677, %v152_v34  ;;  %v156_v39 = vpop.f32.mrb[3].mxu0  ;;  %v158_v18 = vmul.f32 0.5, %v152_v34 }
 0x214   :  { %v161_v40 = vmul.f32 0.70710677, %v154_v36  ;;  %v159_v21 = vmul.f32 0.5, %v154_v36 }
 0x215   :  { %v162_v41 = vand.u32 2147483647, %v160_v38  ;;  %vm202_vm1 = vcmp.ge.f32.partialorder %v160_v38, 0.0 }
 0x216   :  { %v163_v42 = vand.u32 2147483647, %v161_v40  ;;  %vm203_vm2 = vcmp.ge.f32.partialorder %v161_v40, 0.0 }
 0x217   :  { %v164_v43 = vmul.f32 0.3275911, %v162_v41  ;;  %v190_v47 = vsub.f32 0.0, %v162_v41 }
 0x218   :  { %v165_v44 = vmul.f32 0.3275911, %v163_v42  ;;  %v191_v48 = vsub.f32 0.0, %v163_v42 }
 0x219   :  { %v166_v45 = vadd.f32 1.0, %v164_v43  ;;  %v192_v50 = vmul.f32 %v190_v47, %v162_v41 }
 0x21a   :  { %v167_v46 = vadd.f32 1.0, %v165_v44  ;;  %v193_v53 = vmul.f32 %v191_v48, %v163_v42 }
 0x21b   :  { %244 = vrcp.f32 %v166_v45  ;;  %v194_v56 = vmul.f32 1.442695, %v192_v50 }
 0x21c   :  { %246 = vrcp.f32 %v167_v46  ;;  %v196_v59 = vmul.f32 1.442695, %v193_v53 }
 0x21d   :  { %248 = vpow2.f32 %v194_v56 }
 0x21e   :  { %250 = vpow2.f32 %v196_v59 }
 0x225   :  { %v245_v49 = vpop.eup %244 }
 0x226   :  { %v247_v51 = vpop.eup %246  ;;  %v172_v52 = vmul.f32 1.0614054, %v245_v49 }
 0x227   :  { %v173_v54 = vmul.f32 1.0614054, %v247_v51  ;;  %v249_v8 = vpop.eup %248 }
 0x228   :  { %v174_v55 = vadd.f32 -1.4531521, %v172_v52  ;;  %v251_v10 = vpop.eup %250 }
 0x229   :  { %v175_v57 = vadd.f32 -1.4531521, %v173_v54 }
 0x22a   :  { %v176_v58 = vmul.f32 %v245_v49, %v174_v55 }
 0x22b   :  { %v177_v60 = vmul.f32 %v247_v51, %v175_v57 }
 0x22c   :  { %v178_v61 = vadd.f32 1.4214138, %v176_v58 }
 0x22d   :  { %v179_v62 = vadd.f32 1.4214138, %v177_v60 }
 0x22e   :  { %v180_v63 = vmul.f32 %v245_v49, %v178_v61 }
 0x22f   :  { %v181_v0 = vmul.f32 %v247_v51, %v179_v62 }
 0x230   :  { %v182_v1 = vadd.f32 -0.28449672, %v180_v63 }
 0x231   :  { %v183_v2 = vadd.f32 -0.28449672, %v181_v0 }
 0x232   :  { %v184_v3 = vmul.f32 %v245_v49, %v182_v1 }
 0x233   :  { %v185_v4 = vmul.f32 %v247_v51, %v183_v2 }
 0x234   :  { %v186_v5 = vadd.f32 0.2548296, %v184_v3 }
 0x235   :  { %v187_v6 = vadd.f32 0.2548296, %v185_v4 }
 0x236   :  { %v188_v7 = vmul.f32 %v245_v49, %v186_v5 }
 0x237   :  { %v189_v9 = vmul.f32 %v247_v51, %v187_v6 }
 0x238   :  { %v198_v11 = vmul.f32 %v249_v8, %v188_v7 }
 0x239   :  { %v199_v12 = vmul.f32 %v251_v10, %v189_v9 }
 0x23a   :  { %v200_v13 = vsub.f32 1.0, %v198_v11 }
 0x23b   :  { %v201_v14 = vsub.f32 1.0, %v199_v12 }
 0x23c   :  { %v204_v15 = vsub.f32 0.0, %v200_v13 }
 0x23d   :  { %v205_v16 = vsub.f32 0.0, %v201_v14 }
 0x23e   :  { %v206_v17 = vsel %vm202_vm1, %v200_v13, %v204_v15 }
 0x23f   :  { %v208_v19 = vadd.f32 1.0, %v206_v17  ;;  %v207_v20 = vsel %vm203_vm2, %v201_v14, %v205_v16 }
 0x240   :  { %v209_v22 = vadd.f32 1.0, %v207_v20 }
 0x241   :  { %v210_v23 = vmul.f32 %v208_v19, %v158_v18 }
 0x242   :  { %v211_v24 = vmul.f32 %v209_v22, %v159_v21 }
 0x243   :  { %212 = vst [vmem:[%s333_s5] sm:$0xff] %v210_v23 }
 0x244   :  { %213 = vst [vmem:[%s333_s5 + $0x8] sm:$0xff] %v211_v24 }

// kernel: mae_forward.23
= control target key start
LH: loop header
LB: loop body
LE: loop exit
PB: predicated region body
PF: predicated region fallthrough
CT: control target
= control target key end

     0   :  { %vm226_vm1 = vcmask 523264   ;;  %s379_s1 = inlined_call_operand.vmem [shape: bf16[256,64], index: 1, kind: input, shape index: {}]   ;;  %s380_s0 = inlined_call_operand.vmem [shape: f32[8,256], index: 0, kind: input, shape index: {}]   ;;  %s381_s2 = inlined_call_operand.vmem [shape: f32[1,64], index: 2, kind: input, shape index: {}]   ;;  %s382_s3 = inlined_call_operand.vmem [shape: f32[8,64], index: 3, kind: input, shape index: {}]   ;;  %s383_s4 = inlined_call_operand.vmem [shape: f32[8,64], index: 4, kind: output, shape index: {}]  }
   0x1   :  { %v271_v0 = vld [vmem:[%s379_s1 + $0x40] sm:$0xff]   ;;  %v273_v2 = vld [vmem:[%s379_s1 + $0x48] sm:$0xff]   ;;  %v275_v4 = vld [vmem:[%s379_s1 + $0x50] sm:$0xff]  }
   0x2   :  { %v272_v1 = vld [vmem:[%s379_s1] sm:$0xff]   ;;  %249 = vmatprep.subr.bf16.mxu0 %v271_v0  ;;  %v274_v3 = vld [vmem:[%s379_s1 + $0x8] sm:$0xff]   ;;  %v276_v5 = vld [vmem:[%s379_s1 + $0x10] sm:$0xff]  }
   0x3   :  { %250 = vmatpush3.bf16.msra.mxu0 %v272_v1  ;;  %v277_v6 = vld [vmem:[%s379_s1 + $0x58] sm:$0xff]   ;;  %v279_v8 = vld [vmem:[%s379_s1 + $0x60] sm:$0xff]   ;;  %v281_v10 = vld [vmem:[%s379_s1 + $0x68] sm:$0xff]  }
   0x4   :  { %251 = vmatprep.subr.bf16.mxu0 %v273_v2  ;;  %v278_v7 = vld [vmem:[%s379_s1 + $0x18] sm:$0xff]   ;;  %v280_v9 = vld [vmem:[%s379_s1 + $0x20] sm:$0xff]   ;;  %v19_v11 = vld [vmem:[%s380_s0 + $0x8] sm:$0xff] }
   0x5   :  { %v21_v12 = vpack.c.bf16 %v19_v11, %v19_v11  ;;  %v282_v13 = vld [vmem:[%s379_s1 + $0x28] sm:$0xff]   ;;  %v283_v14 = vld [vmem:[%s379_s1 + $0x70] sm:$0xff]   ;;  %v285_v16 = vld [vmem:[%s379_s1 + $0x78] sm:$0xff]  }
   0x6   :  { %v284_v15 = vld [vmem:[%s379_s1 + $0x30] sm:$0xff]   ;;  %v286_v17 = vld [vmem:[%s379_s1 + $0x38] sm:$0xff]   ;;  %v18_v18 = vld [vmem:[%s380_s0] sm:$0xff] }
   0x7   :  { %252 = vmatpush3.bf16.msra.mxu0 %v274_v3  ;;  %189 = vmatprep.mubr.bf16.mxu0 %v21_v12  ;;  %v20_v19 = vpack.c.bf16 %v18_v18, %v18_v18  ;;  %v232_v21 = vld [vmem:[%s381_s2] ss:$0 sm:$0xff] }
   0x8   :  { %253 = vmatprep.subr.bf16.mxu0 %v275_v4  ;;  %v224_v51 = vld [vmem:[%s382_s3] sm:$0xff] }
   0xb   :  { %254 = vmatpush3.bf16.msra.mxu0 %v276_v5 }
   0xc   :  { %255 = vmatprep.subr.bf16.mxu0 %v277_v6 }
   0xf   :  { %256 = vmatpush3.bf16.msra.mxu0 %v278_v7 }
  0x10   :  { %257 = vmatprep.subr.bf16.mxu0 %v279_v8 }
  0x13   :  { %258 = vmatpush3.bf16.msra.mxu0 %v280_v9 }
  0x14   :  { %259 = vmatprep.subr.bf16.mxu0 %v281_v10 }
  0x17   :  { %260 = vmatpush3.bf16.msra.mxu0 %v282_v13 }
  0x18   :  { %261 = vmatprep.subr.bf16.mxu0 %v283_v14 }
  0x1b   :  { %262 = vmatpush3.bf16.msra.mxu0 %v284_v15 }
  0x1c   :  { %263 = vmatprep.subr.bf16.mxu0 %v285_v16 }
  0x1f   :  { %264 = vmatpush3.bf16.msra.mxu0 %v286_v17 }
  0x22   :  { %190 = vmatmul.mubr.bf16.vlgmr.msra.gmra.mrb[0].mxu0 %v20_v19 }
  0xf5   :  { %v265_v20 = vpop.f32.mrb[0].mxu0 }
  0xf6   :  { %v266_v22 = vpop.f32.mrb[1].mxu0 }
  0xf7   :  { %v267_v23 = vadd.f32 %v266_v22, %v265_v20  ;;  %v268_v24 = vpop.f32.mrb[2].mxu0 }
  0xf8   :  { %v269_v25 = vpop.f32.mrb[3].mxu0 }
  0xf9   :  { %v192_v26 = vadd.f32 %v267_v23, %v232_v21 }
  0xfb   :  { %v198_v27 = vmul.f32 0.70710677, %v192_v26  ;;  %v197_v49 = vmul.f32 0.5, %v192_v26 }
  0xfd   :  { %v199_v28 = vand.u32 2147483647, %v198_v27  ;;  %vm219_vm0 = vcmp.ge.f32.partialorder %v198_v27, 0.0 }
  0xff   :  { %v200_v29 = vmul.f32 0.3275911, %v199_v28  ;;  %v213_v31 = vsub.f32 0.0, %v199_v28 }
 0x101   :  { %v201_v30 = vadd.f32 1.0, %v200_v29  ;;  %v214_v33 = vmul.f32 %v213_v31, %v199_v28 }
 0x103   :  { %287 = vrcp.f32 %v201_v30  ;;  %v215_v36 = vmul.f32 1.442695, %v214_v33 }
 0x105   :  { %289 = vpow2.f32 %v215_v36 }
 0x10d   :  { %v288_v32 = vpop.eup %287 }
 0x10e   :  { %v204_v34 = vmul.f32 1.0614054, %v288_v32 }
 0x10f   :  { %v290_v44 = vpop.eup %289 }
 0x110   :  { %v205_v35 = vadd.f32 -1.4531521, %v204_v34 }
 0x112   :  { %v206_v37 = vmul.f32 %v288_v32, %v205_v35 }
 0x114   :  { %v207_v38 = vadd.f32 1.4214138, %v206_v37 }
 0x116   :  { %v208_v39 = vmul.f32 %v288_v32, %v207_v38 }
 0x118   :  { %v209_v40 = vadd.f32 -0.28449672, %v208_v39 }
 0x11a   :  { %v210_v41 = vmul.f32 %v288_v32, %v209_v40 }
 0x11c   :  { %v211_v42 = vadd.f32 0.2548296, %v210_v41 }
 0x11e   :  { %v212_v43 = vmul.f32 %v288_v32, %v211_v42 }
 0x120   :  { %v217_v45 = vmul.f32 %v290_v44, %v212_v43 }
 0x122   :  { %v218_v46 = vsub.f32 1.0, %v217_v45 }
 0x124   :  { %v220_v47 = vsub.f32 0.0, %v218_v46 }
 0x126   :  { %v221_v48 = vsel %vm219_vm0, %v218_v46, %v220_v47 }
 0x127   :  { %v222_v50 = vadd.f32 1.0, %v221_v48 }
 0x129   :  { %v223_v52 = vmul.f32 %v222_v50, %v197_v49 }
 0x12b   :  { %v225_v53 = vadd.f32 %v224_v51, %v223_v52 }
 0x12d   :  { %227 = vst.msk [vmem:[%s383_s4] sm:$0xff] %vm226_vm1, %v225_v53 }

// kernel: mae_forward.29
= control target key start
LH: loop header
LB: loop body
LE: loop exit
PB: predicated region body
PF: predicated region fallthrough
CT: control target
= control target key end

     0   :  { %s530_s12 = smov 0   ;;  %s532_s13 = smov 0   ;;  %s578_s0 = inlined_call_operand.vmem [shape: f32[32,64], index: 0, kind: input, shape index: {}]   ;;  %s579_s1 = inlined_call_operand.vmem [shape: bf16[64,32], index: 1, kind: input, shape index: {}]   ;;  %s580_s2 = inlined_call_operand.vmem [shape: f32[1,32], index: 2, kind: input, shape index: {}]   ;;  %s581_s3 = inlined_call_operand.vmem [shape: f32[32,32], index: 3, kind: output, shape index: {}]  }
   0x1   :  { %s534_s14 = smov 0  }
   0x2 LB: > { %s25_s15 = sadd.s32 1, %s502_s13  ;;  %p424_p0 = scmp.ge.s32.totalorder %s506_s14, 1  ;;  %s506_s14 = sphi %s534_s14, %s13_s14   ;;  %s502_s13 = sphi %s532_s13, %s583_s13   ;;  %s498_s12 = sphi %s530_s12, %s582_s12  }
   0x3   : > { %p27_p1 = scmp.ge.s32.totalorder %s25_s15, 2  ;;  %p169_p2 = scmp.lt.s32.totalorder %s506_s14, 3 }
   0x5   : > { %s585_s15 = smov (%p27_p1, %s25_s15), 0  ;;  %p170_p3 = pnand %p424_p0, %p169_p2 }
   0x6   : > { %v480_v0 = vld [vmem:[%s579_s1] sm:$0xff] (!%p170_p3)   ;;  %v508_v1 = vmov (!%p170_p3), 0.0   ;;  %v481_v2 = vld [vmem:[%s579_s1 + $0x8] sm:$0xff] (!%p170_p3)   ;;  %vm509_vm0 = vmmov (!%p170_p3), 0   ;;  %s425_s20 = sshll.u32 (!%p170_p3), %s498_s12, 1  ;;  %v482_v3 = vld [vmem:[%s579_s1 + $0x10] sm:$0xff] (!%p170_p3)  }
   0x7   : > { %173 = sbr.rel (%p170_p3) target bundleno = 240 (0xf0), region = 32  ;;  %442 = vmatprep.subr.bf16.mxu0 (!%p170_p3), %v508_v1  ;;  %450 = vmatprep.mubr.msk.bf16.mxu0 (!%p170_p3), %vm509_vm0, %v508_v1  ;;  %p204_p4 = scmp.lt.s32.totalorder (!%p170_p3), %s425_s20, 3  ;;  %v483_v4 = vld [vmem:[%s579_s1 + $0x18] sm:$0xff] (!%p170_p3)   ;;  %vm268_vm1 = vcmask (!%p170_p3), 523264   ;;  %v429_v8 = vld [vmem:[%s580_s2] ss:$0 sm:$0xff] (!%p170_p3) }
   0x8   : > { %443 = vmatpush3.bf16.msra.mxu0 (!%p170_p3), %v480_v0  ;;  %vm313_vm2 = vcmask (!%p170_p3), 261120  }
   0x9   : > { %444 = vmatprep.subr.bf16.mxu0 (!%p170_p3), %v508_v1 }
   0xc   : > { %445 = vmatpush3.bf16.msra.mxu0 (!%p170_p3), %v481_v2 }
   0xd   : > { %446 = vmatprep.subr.bf16.mxu0 (!%p170_p3), %v508_v1 }
   0xe   : > { %s587_s20 = smov (!%p204_p4, %s425_s20), 3 }
   0xf   : > { %s426_s23 = sshll.u32 %s587_s20, 3 }
  0x10   : > { %s207_s26 = scalar_lea.vmem %s578_s0, %s426_s23  ;;  %447 = vmatpush3.bf16.msra.mxu0 %v482_v3  ;;  %s223_s6 = scalar_lea.vmem %s581_s3, %s426_s23 }
  0x11   : > { %v226_v5 = vld [vmem:[%s207_s26] sm:$0xff]  ;;  %v227_v6 = vld [vmem:[%s207_s26 + $0x8] sm:$0xff]  ;;  %448 = vmatprep.subr.bf16.mxu0 %v508_v1 }
  0x12   : > { %v228_v7 = vpack.c.bf16 %v227_v6, %v226_v5 }
  0x14   : > { %449 = vmatpush3.bf16.msra.mxu0 %v483_v4 }
  0x17   : > { %451 = vmatmul.mubr.msk.bf16.vlgmr.msra.gmra.mrb[0].mxu0 %vm268_vm1, %v228_v7 }
  0xea   : > { %v306_v9 = vpop.f32.mrb[0].mxu0 }
  0xeb   : > { %v307_v10 = vadd.f32 %v429_v8, %v306_v9  ;;  %v452_v11 = vpop.f32.mrb[1].mxu0 }
  0xec   : > { %v309_v12 = vpop.f32.mrb[2].mxu0 }
  0xed   : > { %314 = vst.msk [vmem:[%s223_s6] sm:$0xff] %vm313_vm2, %v307_v10  ;;  %v310_v13 = vadd.f32 %v429_v8, %v309_v12  ;;  %v453_v14 = vpop.f32.mrb[3].mxu0 }
  0xef   : > { %315 = vst.msk [vmem:[%s223_s6 + $0x8] sm:$0xff] %vm313_vm2, %v310_v13 }
  0xf0 PF: > { %s13_s14 = sadd.s32 1, %s506_s14   ;;  %s582_s12 = smov %s502_s13 }
  0xf1   : > { %p10_p5 = scmp.ge.s32.totalorder %s13_s14, 4   ;;  %s583_s13 = smov %s585_s15 }
  0xf3   :  { %12 = sbr.rel (!%p10_p5) target bundleno = 2 (0x2), region = 68 }

// kernel: mae_forward.28
= control target key start
LH: loop header
LB: loop body
LE: loop exit
PB: predicated region body
PF: predicated region fallthrough
CT: control target
= control target key end

     0   :  { %vm234_vm1 = vcmask 523264   ;;  %s438_s1 = inlined_call_operand.vmem [shape: bf16[256,64], index: 1, kind: input, shape index: {}]   ;;  %s439_s0 = inlined_call_operand.vmem [shape: f32[8,256], index: 0, kind: input, shape index: {}]   ;;  %s440_s2 = inlined_call_operand.vmem [shape: f32[1,64], index: 2, kind: input, shape index: {}]   ;;  %s441_s3 = inlined_call_operand.vmem [shape: f32[8,64], index: 3, kind: input, shape index: {}]   ;;  %s442_s4 = inlined_call_operand.vmem [shape: f32[1,64], index: 4, kind: input, shape index: {}]   ;;  %s443_s5 = inlined_call_operand.vmem [shape: f32[1,64], index: 5, kind: input, shape index: {}]   ;;  %s444_s6 = inlined_call_operand.vmem [shape: f32[8,64], index: 6, kind: output, shape index: {}]  }
   0x1   :  { %v309_v0 = vld [vmem:[%s438_s1 + $0x40] sm:$0xff]   ;;  %v311_v2 = vld [vmem:[%s438_s1 + $0x48] sm:$0xff]   ;;  %v313_v4 = vld [vmem:[%s438_s1 + $0x50] sm:$0xff]  }
   0x2   :  { %v310_v1 = vld [vmem:[%s438_s1] sm:$0xff]   ;;  %287 = vmatprep.subr.bf16.mxu0 %v309_v0  ;;  %v312_v3 = vld [vmem:[%s438_s1 + $0x8] sm:$0xff]   ;;  %v314_v5 = vld [vmem:[%s438_s1 + $0x10] sm:$0xff]  }
   0x3   :  { %288 = vmatpush3.bf16.msra.mxu0 %v310_v1  ;;  %v315_v6 = vld [vmem:[%s438_s1 + $0x58] sm:$0xff]   ;;  %v317_v8 = vld [vmem:[%s438_s1 + $0x60] sm:$0xff]   ;;  %v319_v10 = vld [vmem:[%s438_s1 + $0x68] sm:$0xff]  }
   0x4   :  { %289 = vmatprep.subr.bf16.mxu0 %v311_v2  ;;  %v316_v7 = vld [vmem:[%s438_s1 + $0x18] sm:$0xff]   ;;  %v318_v9 = vld [vmem:[%s438_s1 + $0x20] sm:$0xff]   ;;  %v25_v11 = vld [vmem:[%s439_s0 + $0x8] sm:$0xff] }
   0x5   :  { %v27_v12 = vpack.c.bf16 %v25_v11, %v25_v11  ;;  %v320_v13 = vld [vmem:[%s438_s1 + $0x28] sm:$0xff]   ;;  %v321_v14 = vld [vmem:[%s438_s1 + $0x70] sm:$0xff]   ;;  %v323_v16 = vld [vmem:[%s438_s1 + $0x78] sm:$0xff]  }
   0x6   :  { %v322_v15 = vld [vmem:[%s438_s1 + $0x30] sm:$0xff]   ;;  %v324_v17 = vld [vmem:[%s438_s1 + $0x38] sm:$0xff]   ;;  %v24_v18 = vld [vmem:[%s439_s0] sm:$0xff] }
   0x7   :  { %290 = vmatpush3.bf16.msra.mxu0 %v312_v3  ;;  %195 = vmatprep.mubr.bf16.mxu0 %v27_v12  ;;  %v26_v19 = vpack.c.bf16 %v24_v18, %v24_v18  ;;  %v268_v21 = vld [vmem:[%s440_s2] ss:$0 sm:$0xff] }
   0x8   :  { %291 = vmatprep.subr.bf16.mxu0 %v313_v4  ;;  %v230_v51 = vld [vmem:[%s441_s3] sm:$0xff] }
   0x9   :  { %v285_v0 = vld [vmem:[%s442_s4] ss:$0 sm:$0xff] }
   0xa   :  { %v286_v2 = vld [vmem:[%s443_s5] ss:$0 sm:$0xff] }
   0xb   :  { %292 = vmatpush3.bf16.msra.mxu0 %v314_v5 }
   0xc   :  { %293 = vmatprep.subr.bf16.mxu0 %v315_v6 }
   0xf   :  { %294 = vmatpush3.bf16.msra.mxu0 %v316_v7 }
  0x10   :  { %295 = vmatprep.subr.bf16.mxu0 %v317_v8 }
  0x13   :  { %296 = vmatpush3.bf16.msra.mxu0 %v318_v9 }
  0x14   :  { %297 = vmatprep.subr.bf16.mxu0 %v319_v10 }
  0x17   :  { %298 = vmatpush3.bf16.msra.mxu0 %v320_v13 }
  0x18   :  { %299 = vmatprep.subr.bf16.mxu0 %v321_v14 }
  0x1b   :  { %300 = vmatpush3.bf16.msra.mxu0 %v322_v15 }
  0x1c   :  { %301 = vmatprep.subr.bf16.mxu0 %v323_v16 }
  0x1f   :  { %302 = vmatpush3.bf16.msra.mxu0 %v324_v17 }
  0x22   :  { %196 = vmatmul.mubr.bf16.vlgmr.msra.gmra.mrb[0].mxu0 %v26_v19 }
  0xf5   :  { %v303_v20 = vpop.f32.mrb[0].mxu0 }
  0xf6   :  { %v304_v22 = vpop.f32.mrb[1].mxu0 }
  0xf7   :  { %v305_v23 = vadd.f32 %v304_v22, %v303_v20  ;;  %v306_v24 = vpop.f32.mrb[2].mxu0 }
  0xf8   :  { %v307_v25 = vpop.f32.mrb[3].mxu0 }
  0xf9   :  { %v198_v26 = vadd.f32 %v305_v23, %v268_v21 }
  0xfb   :  { %v204_v27 = vmul.f32 0.70710677, %v198_v26  ;;  %v203_v49 = vmul.f32 0.5, %v198_v26 }
  0xfd   :  { %v205_v28 = vand.u32 2147483647, %v204_v27  ;;  %vm225_vm0 = vcmp.ge.f32.partialorder %v204_v27, 0.0 }
  0xff   :  { %v206_v29 = vmul.f32 0.3275911, %v205_v28  ;;  %v219_v31 = vsub.f32 0.0, %v205_v28 }
 0x101   :  { %v207_v30 = vadd.f32 1.0, %v206_v29  ;;  %v220_v33 = vmul.f32 %v219_v31, %v205_v28 }
 0x103   :  { %325 = vrcp.f32 %v207_v30  ;;  %v221_v36 = vmul.f32 1.442695, %v220_v33 }
 0x105   :  { %327 = vpow2.f32 %v221_v36 }
 0x10d   :  { %v326_v32 = vpop.eup %325 }
 0x10e   :  { %v210_v34 = vmul.f32 1.0614054, %v326_v32 }
 0x10f   :  { %v328_v44 = vpop.eup %327 }
 0x110   :  { %v211_v35 = vadd.f32 -1.4531521, %v210_v34 }
 0x112   :  { %v212_v37 = vmul.f32 %v326_v32, %v211_v35 }
 0x114   :  { %v213_v38 = vadd.f32 1.4214138, %v212_v37 }
 0x116   :  { %v214_v39 = vmul.f32 %v326_v32, %v213_v38 }
 0x118   :  { %v215_v40 = vadd.f32 -0.28449672, %v214_v39 }
 0x11a   :  { %v216_v41 = vmul.f32 %v326_v32, %v215_v40 }
 0x11c   :  { %v217_v42 = vadd.f32 0.2548296, %v216_v41 }
 0x11e   :  { %v218_v43 = vmul.f32 %v326_v32, %v217_v42 }
 0x120   :  { %v223_v45 = vmul.f32 %v328_v44, %v218_v43 }
 0x122   :  { %v224_v46 = vsub.f32 1.0, %v223_v45 }
 0x124   :  { %v226_v47 = vsub.f32 0.0, %v224_v46 }
 0x126   :  { %v227_v48 = vsel %vm225_vm0, %v224_v46, %v226_v47 }
 0x127   :  { %v228_v50 = vadd.f32 1.0, %v227_v48 }
 0x129   :  { %v229_v52 = vmul.f32 %v228_v50, %v203_v49 }
 0x12b   :  { %v231_v53 = vadd.f32 %v230_v51, %v229_v52 }
 0x12d   :  { %v235_v54 = vsel %vm234_vm1, %v231_v53, 0.0 }
 0x12e   :  { %236 = vadd.xlane.f32.xlu0 %v235_v54 }
 0x1bb   :  { %v237_v55 = vpop.xlane.xlu0 %236 }
 0x1bc   :  { %v239_v56 = vmul.f32 0.015625, %v237_v55 }
 0x1be   :  { %v240_v57 = vsub.f32 %v231_v53, %v239_v56 }
 0x1c0   :  { %v241_v58 = vmul.f32 %v240_v57, %v240_v57 }
 0x1c2   :  { %v242_v59 = vsel %vm234_vm1, %v241_v58, 0.0 }
 0x1c3   :  { %243 = vadd.xlane.f32.xlu0 %v242_v59 }
 0x250   :  { %v244_v60 = vpop.xlane.xlu0 %243 }
 0x251   :  { %v245_v61 = vmul.f32 0.015625, %v244_v60 }
 0x253   :  { %v246_v62 = vadd.f32 1e-05, %v245_v61 }
 0x255   :  { %329 = vrsqrt.f32 %v246_v62 }
 0x25f   :  { %v330_v63 = vpop.eup %329 }
 0x260   :  { %v248_v1 = vmul.f32 %v330_v63, %v240_v57 }
 0x262   :  { %v255_v3 = vmul.f32 %v285_v0, %v248_v1 }
 0x264   :  { %v262_v4 = vadd.f32 %v286_v2, %v255_v3 }
 0x266   :  { %263 = vst.msk [vmem:[%s444_s6] sm:$0xff] %vm234_vm1, %v262_v4 }

// kernel: mae_forward.30
= control target key start
LH: loop header
LB: loop body
LE: loop exit
PB: predicated region body
PF: predicated region fallthrough
CT: control target
= control target key end

     0   :  { %s552_s15 = smov 0   ;;  %s554_s16 = smov 0   ;;  %s609_s0 = inlined_call_operand.vmem [shape: f32[32,32], index: 0, kind: input, shape index: {}]   ;;  %s610_s1 = inlined_call_operand.vmem [shape: bf16[32,96], index: 1, kind: input, shape index: {}]   ;;  %s611_s2 = inlined_call_operand.vmem [shape: f32[1,32], index: 2, kind: input, shape index: {}]   ;;  %s612_s3 = inlined_call_operand.vmem [shape: f32[1,32], index: 3, kind: input, shape index: {}]   ;;  %s613_s4 = inlined_call_operand.vmem [shape: f32[32,96], index: 4, kind: output, shape index: {}]  }
   0x1   :  { %s556_s17 = smov 0  }
   0x2 LB: > { %s26_s18 = sadd.s32 1, %s519_s16  ;;  %p446_p0 = scmp.ge.s32.totalorder %s523_s17, 1  ;;  %s523_s17 = sphi %s556_s17, %s14_s17   ;;  %s519_s16 = sphi %s554_s16, %s615_s16   ;;  %s515_s15 = sphi %s552_s15, %s614_s15  }
   0x3   : > { %p28_p1 = scmp.ge.s32.totalorder %s26_s18, 2  ;;  %p186_p2 = scmp.lt.s32.totalorder %s523_s17, 3 }
   0x5   : > { %s617_s18 = smov (%p28_p1, %s26_s18), 0  ;;  %p187_p3 = pnand %p446_p0, %p186_p2 }
   0x6   : > { %s447_s19 = sshll.u32 (!%p187_p3), %s515_s15, 1  ;;  %vm243_vm0 = vcmask (!%p187_p3), 261120   ;;  %v495_v14 = vld [vmem:[%s610_s1] sm:$0xff] (!%p187_p3)   ;;  %v525_v15 = vmov (!%p187_p3), 0.0   ;;  %v496_v16 = vld [vmem:[%s610_s1 + $0x8] sm:$0xff] (!%p187_p3)   ;;  %vm526_vm1 = vmmov (!%p187_p3), 0  }
   0x7   : > { %190 = sbr.rel (%p187_p3) target bundleno = 552 (0x228), region = 36  ;;  %p220_p4 = scmp.lt.s32.totalorder (!%p187_p3), %s447_s19, 3  ;;  %461 = vmatprep.subr.bf16.mxu0 (!%p187_p3), %v525_v15  ;;  %465 = vmatprep.mubr.msk.bf16.mxu0 (!%p187_p3), %vm526_vm1, %v525_v15  ;;  %v451_v25 = vld [vmem:[%s611_s2] ss:$0 sm:$0xff] (!%p187_p3)  ;;  %vm348_vm2 = vcmask (!%p187_p3), 785408  }
   0x8   : > { %462 = vmatpush3.bf16.msra.mxu0 (!%p187_p3), %v495_v14  ;;  %v452_v29 = vld [vmem:[%s612_s3] ss:$0 sm:$0xff] (!%p187_p3) }
   0x9   : > { %463 = vmatprep.subr.bf16.mxu0 (!%p187_p3), %v525_v15 }
   0xc   : > { %464 = vmatpush3.bf16.msra.mxu0 (!%p187_p3), %v496_v16 }
   0xe   : > { %s619_s19 = smov (!%p220_p4, %s447_s19), 3 }
   0xf   : > { %s448_s20 = sshll.u32 %s619_s19, 3 }
  0x10   : > { %s223_s23 = scalar_lea.vmem %s609_s0, %s448_s20  ;;  %s236_s8 = scalar_lea.vmem %s613_s4, %s448_s20 }
  0x11   : > { %v239_v0 = vld [vmem:[%s223_s23] sm:$0xff]  ;;  %v240_v1 = vld [vmem:[%s223_s23 + $0x8] sm:$0xff] }
  0x12   : > { %v244_v2 = vsel %vm243_vm0, %v239_v0, 0.0  ;;  %v247_v3 = vsel %vm243_vm0, %v240_v1, 0.0 }
  0x13   : > { %245 = vadd.xlane.f32.xlu0 %v244_v2 }
  0x17   : > { %248 = vadd.xlane.f32.xlu0 %v247_v3 }
  0xa0   : > { %v246_v4 = vpop.xlane.xlu0 %245 }
  0xa1   : > { %v251_v5 = vmul.f32 0.03125, %v246_v4 }
  0xa3   : > { %v253_v6 = vsub.f32 %v239_v0, %v251_v5 }
  0xa4   : > { %v249_v7 = vpop.xlane.xlu0 %248 }
  0xa5   : > { %v252_v8 = vmul.f32 0.03125, %v249_v7  ;;  %v255_v9 = vmul.f32 %v253_v6, %v253_v6 }
  0xa7   : > { %v254_v10 = vsub.f32 %v240_v1, %v252_v8  ;;  %v257_v11 = vsel %vm243_vm0, %v255_v9, 0.0 }
  0xa8   : > { %258 = vadd.xlane.f32.xlu1 %v257_v11 }
  0xa9   : > { %v256_v12 = vmul.f32 %v254_v10, %v254_v10 }
  0xab   : > { %v260_v13 = vsel %vm243_vm0, %v256_v12, 0.0 }
  0xac   : > { %261 = vadd.xlane.f32.xlu1 %v260_v13 }
 0x135   : > { %v259_v17 = vpop.xlane.xlu1 %258 }
 0x136   : > { %v263_v18 = vmul.f32 0.03125, %v259_v17 }
 0x138   : > { %v265_v19 = vadd.f32 1e-05, %v263_v18 }
 0x139   : > { %v262_v20 = vpop.xlane.xlu1 %261 }
 0x13a   : > { %497 = vrsqrt.f32 %v265_v19  ;;  %v264_v21 = vmul.f32 0.03125, %v262_v20 }
 0x13c   : > { %v266_v22 = vadd.f32 1e-05, %v264_v21 }
 0x13e   : > { %499 = vrsqrt.f32 %v266_v22 }
 0x144   : > { %v498_v23 = vpop.eup %497 }
 0x145   : > { %v269_v24 = vmul.f32 %v498_v23, %v253_v6 }
 0x147   : > { %v277_v28 = vmul.f32 %v451_v25, %v269_v24 }
 0x148   : > { %v500_v26 = vpop.eup %499 }
 0x149   : > { %v270_v27 = vmul.f32 %v500_v26, %v254_v10  ;;  %v285_v31 = vadd.f32 %v452_v29, %v277_v28 }
 0x14b   : > { %v278_v30 = vmul.f32 %v451_v25, %v270_v27 }
 0x14d   : > { %v286_v32 = vadd.f32 %v452_v29, %v278_v30 }
 0x14f   : > { %v287_v33 = vpack.c.bf16 %v286_v32, %v285_v31 }
 0x151   : > { %466 = vmatmul.mubr.msk.bf16.vlgmr.msra.gmra.mrb[0].mxu0 %vm243_vm0, %v287_v33 }
 0x224   : > { %v341_v34 = vpop.f32.mrb[0].mxu0 }
 0x225   : > { %349 = vst.msk [vmem:[%s236_s8] sm:$0xff] %vm348_vm2, %v341_v34  ;;  %v467_v35 = vpop.f32.mrb[1].mxu0 }
 0x226   : > { %v344_v36 = vpop.f32.mrb[2].mxu0 }
 0x227   : > { %350 = vst.msk [vmem:[%s236_s8 + $0x8] sm:$0xff] %vm348_vm2, %v344_v36  ;;  %v468_v37 = vpop.f32.mrb[3].mxu0 }
 0x228 PF: > { %s14_s17 = sadd.s32 1, %s523_s17   ;;  %s614_s15 = smov %s519_s16 }
 0x229   : > { %p11_p5 = scmp.ge.s32.totalorder %s14_s17, 4   ;;  %s615_s16 = smov %s617_s18 }
 0x22b   :  { %13 = sbr.rel (!%p11_p5) target bundleno = 2 (0x2), region = 69 }

// kernel: mae_forward.31
= control target key start
LH: loop header
LB: loop body
LE: loop exit
PB: predicated region body
PF: predicated region fallthrough
CT: control target
= control target key end

     0   :  { %s682_s12 = smov 0   ;;  %s733_s0 = inlined_call_operand.vmem [shape: f32[4,16,16], index: 0, kind: input, shape index: {}]   ;;  %s734_s1 = inlined_call_operand.vmem [shape: f32[4,16,16], index: 1, kind: input, shape index: {}]   ;;  %s735_s2 = inlined_call_operand.vmem [shape: f32[4,16,16], index: 2, kind: input, shape index: {}]   ;;  %s736_s3 = inlined_call_operand.vmem [shape: f32[4,16,16], index: 3, kind: output, shape index: {}]  }
   0x1 LB: > { %s567_s13 = sadd.s32 4294967295, %s658_s12   ;;  %p571_p0 = scmp.ge.s32.totalorder %s658_s12, 1  ;;  %s658_s12 = sphi %s682_s12, %s13_s12  }
   0x2   : > { %p163_p1 = scmp.lt.s32.totalorder %s658_s12, 3 }
   0x4   : > { %p164_p2 = pnand %p571_p0, %p163_p1 }
   0x5   : > { %s572_s14 = sshll.u32 (!%p164_p2), %s567_s13, 1  ;;  %v660_v0 = vmov (!%p164_p2), 0.0   ;;  %vm661_vm0 = vmmov (!%p164_p2), 0   ;;  %vm248_vm1 = vcmask (!%p164_p2), 130048  }
   0x6   : > { %167 = sbr.rel (%p164_p2) target bundleno = 780 (0x30c), region = 32  ;;  %602 = vmatprep.subr.bf16.mxu0 (!%p164_p2), %v660_v0  ;;  %608 = vmatprep.subr.bf16.mxu1 (!%p164_p2), %v660_v0  ;;  %p202_p3 = scmp.lt.s32.totalorder (!%p164_p2), %s572_s14, 3 }
   0x7   : > { %604 = vmatprep.mubr.msk.bf16.mxu0 (!%p164_p2), %vm661_vm0, %v660_v0  ;;  %610 = vmatprep.mubr.msk.bf16.mxu1 (!%p164_p2), %vm661_vm0, %v660_v0 }
   0xd   : > { %s738_s14 = smov (!%p202_p3, %s572_s14), 3 }
   0xe   : > { %s692_s15 = sshll.u32 %s738_s14, 4 }
   0xf   : > { %s213_s18 = scalar_lea.vmem %s734_s1, %s692_s15  ;;  %s206_s21 = scalar_lea.vmem %s733_s0, %s692_s15 }
  0x10   : > { %v236_v1 = vld [vmem:[%s213_s18] sm:$0xff]  ;;  %v237_v2 = vld [vmem:[%s213_s18 + $0x8] sm:$0xff]  ;;  %v238_v3 = vld [vmem:[%s213_s18 + $0x10] sm:$0xff]  ;;  %s220_s24 = scalar_lea.vmem %s735_s2, %s692_s15  ;;  %s227_s27 = scalar_lea.vmem %s736_s3, %s692_s15 }
  0x11   : > { %v240_v4 = vpack.c.bf16 %v237_v2, %v236_v1  ;;  %v239_v5 = vld [vmem:[%s213_s18 + $0x18] sm:$0xff]  ;;  %v230_v9 = vld [vmem:[%s206_s21] sm:$0xff]  ;;  %v231_v10 = vld [vmem:[%s206_s21 + $0x8] sm:$0xff] }
  0x12   : > { %v241_v6 = vpack.c.bf16 %v239_v5, %v238_v3  ;;  %v232_v11 = vld [vmem:[%s206_s21 + $0x10] sm:$0xff]  ;;  %v233_v12 = vld [vmem:[%s206_s21 + $0x18] sm:$0xff]  ;;  %v234_v13 = vpack.c.bf16 %v231_v10, %v230_v9  ;;  %v242_v51 = vld [vmem:[%s220_s24] sm:$0xff] }
  0x13   : > { %v253_v7 = vsel %vm248_vm1, %v240_v4, 0  ;;  %v235_v14 = vpack.c.bf16 %v233_v12, %v232_v11  ;;  %v243_v52 = vld [vmem:[%s220_s24 + $0x8] sm:$0xff]  ;;  %v244_v54 = vld [vmem:[%s220_s24 + $0x10] sm:$0xff]  ;;  %v245_v55 = vld [vmem:[%s220_s24 + $0x18] sm:$0xff] }
  0x14   : > { %603 = vmatpush3.bf16.xpose.msra.mxu0 %v253_v7  ;;  %v300_v8 = vsel %vm248_vm1, %v241_v6, 0  ;;  %v246_v53 = vpack.c.bf16 %v243_v52, %v242_v51  ;;  %v247_v56 = vpack.c.bf16 %v245_v55, %v244_v54 }
  0x15   : > { %609 = vmatpush3.bf16.xpose.msra.mxu1 %v300_v8  ;;  %614 = vmatprep.subr.bf16.mxu0 %v660_v0 }
  0x16   : > { %620 = vmatprep.subr.bf16.mxu1 %v660_v0 }
  0x1b   : > { %605 = vmatmul.mubr.msk.bf16.vlgmr.msra.gmra.mrb[0].mxu0 %vm248_vm1, %v234_v13 }
  0x1c   : > { %611 = vmatmul.mubr.msk.bf16.vlgmr.msra.gmra.mrb[0].mxu1 %vm248_vm1, %v235_v14  ;;  %616 = vmatprep.mubr.msk.bf16.mxu0 %vm661_vm0, %v660_v0 }
  0x1d   : > { %622 = vmatprep.mubr.msk.bf16.mxu1 %vm661_vm0, %v660_v0  ;;  %615 = vmatpush3.bf16.msra.mxu0 %v246_v53 }
  0x1e   : > { %621 = vmatpush3.bf16.msra.mxu1 %v247_v56 }
  0xee   : > { %v289_v15 = vpop.f32.mrb[0].mxu0 }
  0xef   : > { %v343_v16 = vmul.f32 0.17677669, %v289_v15  ;;  %v336_v17 = vpop.f32.mrb[0].mxu1  ;;  %v606_v18 = vpop.f32.mrb[1].mxu0 }
  0xf0   : > { %v345_v19 = vmul.f32 0.17677669, %v336_v17  ;;  %v292_v20 = vpop.f32.mrb[2].mxu0  ;;  %v612_v21 = vpop.f32.mrb[1].mxu1 }
  0xf1   : > { %v344_v22 = vmul.f32 0.17677669, %v292_v20  ;;  %v607_v23 = vpop.f32.mrb[3].mxu0  ;;  %v339_v24 = vpop.f32.mrb[2].mxu1  ;;  %v347_v25 = vsel %vm248_vm1, %v343_v16, -inf }
  0xf2   : > { %v346_v26 = vmul.f32 0.17677669, %v339_v24  ;;  %v353_v27 = vsel %vm248_vm1, %v345_v19, -inf  ;;  %v613_v28 = vpop.f32.mrb[3].mxu1  ;;  %348 = vmax.xlane.f32.xlu0 %v347_v25 }
  0xf3   : > { %354 = vmax.xlane.f32.xlu1 %v353_v27  ;;  %v350_v30 = vsel %vm248_vm1, %v344_v22, -inf }
  0xf4   : > { %v356_v29 = vsel %vm248_vm1, %v346_v26, -inf }
  0xf6   : > { %351 = vmax.xlane.f32.xlu0 %v350_v30 }
  0xf7   : > { %357 = vmax.xlane.f32.xlu1 %v356_v29 }
 0x17f   : > { %v349_v31 = vpop.xlane.xlu0 %348 }
 0x180   : > { %v355_v32 = vpop.xlane.xlu1 %354  ;;  %v359_v33 = vsub.f32 %v343_v16, %v349_v31 }
 0x181   : > { %v361_v34 = vsub.f32 %v345_v19, %v355_v32 }
 0x182   : > { %v363_v35 = vmul.f32 1.442695, %v359_v33 }
 0x183   : > { %v367_v36 = vmul.f32 1.442695, %v361_v34  ;;  %v352_v37 = vpop.xlane.xlu0 %351 }
 0x184   : > { %636 = vpow2.f32 %v363_v35  ;;  %v358_v38 = vpop.xlane.xlu1 %357  ;;  %v360_v39 = vsub.f32 %v344_v22, %v352_v37 }
 0x185   : > { %v362_v40 = vsub.f32 %v346_v26, %v358_v38  ;;  %638 = vpow2.f32 %v367_v36 }
 0x186   : > { %v365_v41 = vmul.f32 1.442695, %v360_v39 }
 0x187   : > { %v369_v42 = vmul.f32 1.442695, %v362_v40 }
 0x188   : > { %640 = vpow2.f32 %v365_v41 }
 0x189   : > { %642 = vpow2.f32 %v369_v42 }
 0x18e   : > { %v637_v43 = vpop.eup %636 }
 0x18f   : > { %v371_v44 = vsel %vm248_vm1, %v637_v43, 0.0  ;;  %v639_v45 = vpop.eup %638 }
 0x190   : > { %372 = vadd.xlane.f32.xlu0 %v371_v44  ;;  %v377_v47 = vsel %vm248_vm1, %v639_v45, 0.0 }
 0x192   : > { %v641_v46 = vpop.eup %640 }
 0x193   : > { %v374_v48 = vsel %vm248_vm1, %v641_v46, 0.0  ;;  %v643_v49 = vpop.eup %642 }
 0x194   : > { %378 = vadd.xlane.f32.xlu0 %v377_v47  ;;  %375 = vadd.xlane.f32.xlu1 %v374_v48  ;;  %v380_v50 = vsel %vm248_vm1, %v643_v49, 0.0 }
 0x198   : > { %381 = vadd.xlane.f32.xlu1 %v380_v50 }
 0x21d   : > { %v373_v57 = vpop.xlane.xlu0 %372 }
 0x21e   : > { %644 = vrcp.f32 %v373_v57 }
 0x221   : > { %v376_v58 = vpop.xlane.xlu1 %375  ;;  %v379_v59 = vpop.xlane.xlu0 %378 }
 0x222   : > { %646 = vrcp.f32 %v376_v58 }
 0x223   : > { %648 = vrcp.f32 %v379_v59 }
 0x225   : > { %v382_v60 = vpop.xlane.xlu1 %381 }
 0x226   : > { %650 = vrcp.f32 %v382_v60 }
 0x228   : > { %v645_v61 = vpop.eup %644 }
 0x229   : > { %v387_v63 = vmul.f32 %v645_v61, %v637_v43 }
 0x22c   : > { %v647_v62 = vpop.eup %646 }
 0x22d   : > { %v388_v0 = vmul.f32 %v647_v62, %v641_v46  ;;  %v649_v1 = vpop.eup %648 }
 0x22e   : > { %v389_v4 = vmul.f32 %v649_v1, %v639_v45 }
 0x22f   : > { %v391_v2 = vpack.c.bf16 %v388_v0, %v387_v63 }
 0x230   : > { %v651_v3 = vpop.eup %650 }
 0x231   : > { %v390_v5 = vmul.f32 %v651_v3, %v643_v49  ;;  %617 = vmatmul.mubr.msk.bf16.vlgmr.msra.gmra.mrb[4].mxu0 %vm248_vm1, %v391_v2 }
 0x233   : > { %v392_v6 = vpack.c.bf16 %v390_v5, %v389_v4 }
 0x235   : > { %623 = vmatmul.mubr.msk.bf16.vlgmr.msra.gmra.mrb[4].mxu1 %vm248_vm1, %v392_v6 }
 0x304   : > { %v430_v7 = vpop.f32.mrb[4].mxu0 }
 0x305   : > { %481 = vst.msk [vmem:[%s227_s27] sm:$0xff] %vm248_vm1, %v430_v7  ;;  %v618_v8 = vpop.f32.mrb[5].mxu0 }
 0x306   : > { %v433_v9 = vpop.f32.mrb[6].mxu0 }
 0x307   : > { %482 = vst.msk [vmem:[%s227_s27 + $0x8] sm:$0xff] %vm248_vm1, %v433_v9  ;;  %v619_v10 = vpop.f32.mrb[7].mxu0 }
 0x308   : > { %v474_v11 = vpop.f32.mrb[4].mxu1 }
 0x309   : > { %483 = vst.msk [vmem:[%s227_s27 + $0x10] sm:$0xff] %vm248_vm1, %v474_v11  ;;  %v624_v12 = vpop.f32.mrb[5].mxu1 }
 0x30a   : > { %v477_v13 = vpop.f32.mrb[6].mxu1 }
 0x30b   : > { %484 = vst.msk [vmem:[%s227_s27 + $0x18] sm:$0xff] %vm248_vm1, %v477_v13  ;;  %v625_v14 = vpop.f32.mrb[7].mxu1 }
 0x30c PF: > { %s13_s12 = sadd.s32 1, %s658_s12  }
 0x30d   : > { %p10_p4 = scmp.ge.s32.totalorder %s13_s12, 4  }
 0x30f   :  { %12 = sbr.rel (!%p10_p4) target bundleno = 1 (0x1), region = 68 }

// kernel: mae_forward.32
= control target key start
LH: loop header
LB: loop body
LE: loop exit
PB: predicated region body
PF: predicated region fallthrough
CT: control target
= control target key end

     0   :  { %s520_s12 = smov 0   ;;  %s522_s13 = smov 0   ;;  %s562_s0 = inlined_call_operand.vmem [shape: f32[32,32], index: 0, kind: input, shape index: {}]   ;;  %s563_s1 = inlined_call_operand.vmem [shape: bf16[32,32], index: 1, kind: input, shape index: {}]   ;;  %s564_s2 = inlined_call_operand.vmem [shape: f32[32,32], index: 2, kind: input, shape index: {}]   ;;  %s565_s3 = inlined_call_operand.vmem [shape: f32[32,32], index: 3, kind: output, shape index: {}]  }
   0x1   :  { %s524_s14 = smov 0  }
   0x2 LB: > { %s25_s15 = sadd.s32 1, %s492_s13  ;;  %p423_p0 = scmp.ge.s32.totalorder %s496_s14, 1  ;;  %s496_s14 = sphi %s524_s14, %s13_s14   ;;  %s492_s13 = sphi %s522_s13, %s567_s13   ;;  %s488_s12 = sphi %s520_s12, %s566_s12  }
   0x3   : > { %p27_p1 = scmp.ge.s32.totalorder %s25_s15, 2  ;;  %p177_p2 = scmp.lt.s32.totalorder %s496_s14, 3 }
   0x5   : > { %s569_s15 = smov (%p27_p1, %s25_s15), 0  ;;  %p178_p3 = pnand %p423_p0, %p177_p2 }
   0x6   : > { %v472_v0 = vld [vmem:[%s563_s1] sm:$0xff] (!%p178_p3)   ;;  %v498_v1 = vmov (!%p178_p3), 0.0   ;;  %v473_v2 = vld [vmem:[%s563_s1 + $0x8] sm:$0xff] (!%p178_p3)   ;;  %vm499_vm0 = vmmov (!%p178_p3), 0   ;;  %s424_s20 = sshll.u32 (!%p178_p3), %s488_s12, 1  ;;  %vm266_vm1 = vcmask (!%p178_p3), 261120  }
   0x7   : > { %181 = sbr.rel (%p178_p3) target bundleno = 237 (0xed), region = 32  ;;  %438 = vmatprep.subr.bf16.mxu0 (!%p178_p3), %v498_v1  ;;  %442 = vmatprep.mubr.msk.bf16.mxu0 (!%p178_p3), %vm499_vm0, %v498_v1  ;;  %p217_p4 = scmp.lt.s32.totalorder (!%p178_p3), %s424_s20, 3 }
   0x8   : > { %439 = vmatpush3.bf16.msra.mxu0 (!%p178_p3), %v472_v0 }
   0x9   : > { %440 = vmatprep.subr.bf16.mxu0 (!%p178_p3), %v498_v1 }
   0xc   : > { %441 = vmatpush3.bf16.msra.mxu0 (!%p178_p3), %v473_v2 }
   0xe   : > { %s571_s20 = smov (!%p217_p4, %s424_s20), 3 }
   0xf   : > { %s425_s21 = sshll.u32 %s571_s20, 3 }
  0x10   : > { %s220_s24 = scalar_lea.vmem %s562_s0, %s425_s21  ;;  %s233_s27 = scalar_lea.vmem %s564_s2, %s425_s21 }
  0x11   : > { %v245_v3 = vld [vmem:[%s220_s24] sm:$0xff]  ;;  %v246_v4 = vld [vmem:[%s220_s24 + $0x8] sm:$0xff]  ;;  %s242_s30 = scalar_lea.vmem %s565_s3, %s425_s21 }
  0x12   : > { %v247_v5 = vpack.c.bf16 %v246_v4, %v245_v3  ;;  %v252_v6 = vld [vmem:[%s233_s27] sm:$0xff]  ;;  %v253_v8 = vld [vmem:[%s233_s27 + $0x8] sm:$0xff] }
  0x14   : > { %443 = vmatmul.mubr.msk.bf16.vlgmr.msra.gmra.mrb[0].mxu0 %vm266_vm1, %v247_v5 }
  0xe7   : > { %v304_v7 = vpop.f32.mrb[0].mxu0 }
  0xe8   : > { %v305_v9 = vadd.f32 %v304_v7, %v252_v6  ;;  %v444_v10 = vpop.f32.mrb[1].mxu0 }
  0xe9   : > { %v307_v11 = vpop.f32.mrb[2].mxu0 }
  0xea   : > { %311 = vst.msk [vmem:[%s242_s30] sm:$0xff] %vm266_vm1, %v305_v9  ;;  %v308_v12 = vadd.f32 %v307_v11, %v253_v8  ;;  %v445_v13 = vpop.f32.mrb[3].mxu0 }
  0xec   : > { %312 = vst.msk [vmem:[%s242_s30 + $0x8] sm:$0xff] %vm266_vm1, %v308_v12 }
  0xed PF: > { %s13_s14 = sadd.s32 1, %s496_s14   ;;  %s566_s12 = smov %s492_s13 }
  0xee   : > { %p10_p5 = scmp.ge.s32.totalorder %s13_s14, 4   ;;  %s567_s13 = smov %s569_s15 }
  0xf0   :  { %12 = sbr.rel (!%p10_p5) target bundleno = 2 (0x2), region = 68 }

// kernel: mae_forward.33
= control target key start
LH: loop header
LB: loop body
LE: loop exit
PB: predicated region body
PF: predicated region fallthrough
CT: control target
= control target key end

     0   :  { %s680_s18 = smov 0   ;;  %s682_s19 = smov 0   ;;  %s740_s0 = inlined_call_operand.vmem [shape: f32[32,32], index: 0, kind: input, shape index: {}]   ;;  %s741_s1 = inlined_call_operand.vmem [shape: bf16[32,128], index: 1, kind: input, shape index: {}]   ;;  %s742_s2 = inlined_call_operand.vmem [shape: f32[1,32], index: 2, kind: input, shape index: {}]   ;;  %s743_s3 = inlined_call_operand.vmem [shape: f32[1,32], index: 3, kind: input, shape index: {}]   ;;  %s744_s4 = inlined_call_operand.vmem [shape: f32[1,128], index: 4, kind: input, shape index: {}]   ;;  %s745_s5 = inlined_call_operand.vmem [shape: f32[32,128], index: 5, kind: output, shape index: {}]  }
   0x1   :  { %s684_s20 = smov 0  }
   0x2 LB: > { %s27_s21 = sadd.s32 1, %s642_s19  ;;  %p560_p0 = scmp.ge.s32.totalorder %s646_s20, 1  ;;  %s646_s20 = sphi %s684_s20, %s15_s20   ;;  %s642_s19 = sphi %s682_s19, %s747_s19   ;;  %s638_s18 = sphi %s680_s18, %s746_s18  }
   0x3   : > { %p29_p1 = scmp.ge.s32.totalorder %s27_s21, 2  ;;  %p219_p2 = scmp.lt.s32.totalorder %s646_s20, 3 }
   0x5   : > { %s749_s21 = smov (%p29_p1, %s27_s21), 0  ;;  %p220_p3 = pnand %p560_p0, %p219_p2 }
   0x6   : > { %s561_s22 = sshll.u32 (!%p220_p3), %s638_s18, 1  ;;  %vm284_vm0 = vcmask (!%p220_p3), 261120   ;;  %v610_v14 = vld [vmem:[%s741_s1] sm:$0xff] (!%p220_p3)   ;;  %v648_v15 = vmov (!%p220_p3), 0.0   ;;  %v611_v16 = vld [vmem:[%s741_s1 + $0x8] sm:$0xff] (!%p220_p3)   ;;  %vm649_vm1 = vmmov (!%p220_p3), 0  }
   0x7   : > { %223 = sbr.rel (%p220_p3) target bundleno = 602 (0x25a), region = 40  ;;  %p258_p4 = scmp.lt.s32.totalorder (!%p220_p3), %s561_s22, 3  ;;  %576 = vmatprep.subr.bf16.mxu0 (!%p220_p3), %v648_v15  ;;  %580 = vmatprep.mubr.msk.bf16.mxu0 (!%p220_p3), %vm649_vm1, %v648_v15  ;;  %v565_v25 = vld [vmem:[%s742_s2] ss:$0 sm:$0xff] (!%p220_p3) }
   0x8   : > { %577 = vmatpush3.bf16.msra.mxu0 (!%p220_p3), %v610_v14  ;;  %v566_v29 = vld [vmem:[%s743_s3] ss:$0 sm:$0xff] (!%p220_p3) }
   0x9   : > { %578 = vmatprep.subr.bf16.mxu0 (!%p220_p3), %v648_v15  ;;  %v567_v34 = vld [vmem:[%s744_s4] ss:$0 sm:$0xff] (!%p220_p3) }
   0xc   : > { %579 = vmatpush3.bf16.msra.mxu0 (!%p220_p3), %v611_v16 }
   0xe   : > { %s751_s22 = smov (!%p258_p4, %s561_s22), 3 }
   0xf   : > { %s562_s23 = sshll.u32 %s751_s22, 3 }
  0x10   : > { %s261_s26 = scalar_lea.vmem %s740_s0, %s562_s23  ;;  %s277_s14 = scalar_lea.vmem %s745_s5, %s562_s23 }
  0x11   : > { %v280_v0 = vld [vmem:[%s261_s26] sm:$0xff]  ;;  %v281_v1 = vld [vmem:[%s261_s26 + $0x8] sm:$0xff] }
  0x12   : > { %v285_v2 = vsel %vm284_vm0, %v280_v0, 0.0  ;;  %v288_v3 = vsel %vm284_vm0, %v281_v1, 0.0 }
  0x13   : > { %286 = vadd.xlane.f32.xlu0 %v285_v2 }
  0x17   : > { %289 = vadd.xlane.f32.xlu0 %v288_v3 }
  0xa0   : > { %v287_v4 = vpop.xlane.xlu0 %286 }
  0xa1   : > { %v292_v5 = vmul.f32 0.03125, %v287_v4 }
  0xa3   : > { %v294_v6 = vsub.f32 %v280_v0, %v292_v5 }
  0xa4   : > { %v290_v7 = vpop.xlane.xlu0 %289 }
  0xa5   : > { %v293_v8 = vmul.f32 0.03125, %v290_v7  ;;  %v296_v9 = vmul.f32 %v294_v6, %v294_v6 }
  0xa7   : > { %v295_v10 = vsub.f32 %v281_v1, %v293_v8  ;;  %v298_v11 = vsel %vm284_vm0, %v296_v9, 0.0 }
  0xa8   : > { %299 = vadd.xlane.f32.xlu1 %v298_v11 }
  0xa9   : > { %v297_v12 = vmul.f32 %v295_v10, %v295_v10 }
  0xab   : > { %v301_v13 = vsel %vm284_vm0, %v297_v12, 0.0 }
  0xac   : > { %302 = vadd.xlane.f32.xlu1 %v301_v13 }
 0x135   : > { %v300_v17 = vpop.xlane.xlu1 %299 }
 0x136   : > { %v304_v18 = vmul.f32 0.03125, %v300_v17 }
 0x138   : > { %v306_v19 = vadd.f32 1e-05, %v304_v18 }
 0x139   : > { %v303_v20 = vpop.xlane.xlu1 %302 }
 0x13a   : > { %612 = vrsqrt.f32 %v306_v19  ;;  %v305_v21 = vmul.f32 0.03125, %v303_v20 }
 0x13c   : > { %v307_v22 = vadd.f32 1e-05, %v305_v21 }
 0x13e   : > { %614 = vrsqrt.f32 %v307_v22 }
 0x144   : > { %v613_v23 = vpop.eup %612 }
 0x145   : > { %v310_v24 = vmul.f32 %v613_v23, %v294_v6 }
 0x147   : > { %v318_v28 = vmul.f32 %v565_v25, %v310_v24 }
 0x148   : > { %v615_v26 = vpop.eup %614 }
 0x149   : > { %v311_v27 = vmul.f32 %v615_v26, %v295_v10  ;;  %v326_v31 = vadd.f32 %v566_v29, %v318_v28 }
 0x14b   : > { %v319_v30 = vmul.f32 %v565_v25, %v311_v27 }
 0x14d   : > { %v327_v32 = vadd.f32 %v566_v29, %v319_v30 }
 0x14f   : > { %v328_v33 = vpack.c.bf16 %v327_v32, %v326_v31 }
 0x151   : > { %581 = vmatmul.mubr.msk.bf16.vlgmr.msra.gmra.mrb[0].mxu0 %vm284_vm0, %v328_v33 }
 0x224   : > { %v389_v35 = vpop.f32.mrb[0].mxu0 }
 0x225   : > { %v390_v36 = vadd.f32 %v567_v34, %v389_v35  ;;  %v582_v37 = vpop.f32.mrb[1].mxu0 }
 0x226   : > { %v392_v38 = vpop.f32.mrb[2].mxu0 }
 0x227   : > { %v398_v39 = vmul.f32 0.70710677, %v390_v36  ;;  %v393_v40 = vadd.f32 %v567_v34, %v392_v38  ;;  %v583_v41 = vpop.f32.mrb[3].mxu0  ;;  %v396_v19 = vmul.f32 0.5, %v390_v36 }
 0x229   : > { %v400_v42 = vand.u32 2147483647, %v398_v39  ;;  %v399_v43 = vmul.f32 0.70710677, %v393_v40  ;;  %vm440_vm2 = vcmp.ge.f32.partialorder %v398_v39, 0.0  ;;  %v397_v24 = vmul.f32 0.5, %v393_v40 }
 0x22b   : > { %v402_v44 = vmul.f32 0.3275911, %v400_v42  ;;  %v401_v45 = vand.u32 2147483647, %v399_v43  ;;  %v428_v49 = vsub.f32 0.0, %v400_v42  ;;  %vm441_vm3 = vcmp.ge.f32.partialorder %v399_v43, 0.0 }
 0x22d   : > { %v404_v46 = vadd.f32 1.0, %v402_v44  ;;  %v403_v47 = vmul.f32 0.3275911, %v401_v45  ;;  %v429_v50 = vsub.f32 0.0, %v401_v45  ;;  %v430_v52 = vmul.f32 %v428_v49, %v400_v42 }
 0x22f   : > { %616 = vrcp.f32 %v404_v46  ;;  %v405_v48 = vadd.f32 1.0, %v403_v47  ;;  %v431_v56 = vmul.f32 %v429_v50, %v401_v45  ;;  %v432_v57 = vmul.f32 1.442695, %v430_v52 }
 0x231   : > { %618 = vrcp.f32 %v405_v48  ;;  %v434_v62 = vmul.f32 1.442695, %v431_v56 }
 0x232   : > { %620 = vpow2.f32 %v432_v57 }
 0x233   : > { %622 = vpow2.f32 %v434_v62 }
 0x239   : > { %v617_v51 = vpop.eup %616 }
 0x23a   : > { %v410_v53 = vmul.f32 1.0614054, %v617_v51 }
 0x23b   : > { %v619_v54 = vpop.eup %618 }
 0x23c   : > { %v412_v55 = vadd.f32 -1.4531521, %v410_v53  ;;  %v411_v58 = vmul.f32 1.0614054, %v619_v54  ;;  %v621_v9 = vpop.eup %620 }
 0x23d   : > { %v623_v13 = vpop.eup %622 }
 0x23e   : > { %v414_v59 = vmul.f32 %v617_v51, %v412_v55  ;;  %v413_v60 = vadd.f32 -1.4531521, %v411_v58 }
 0x240   : > { %v416_v61 = vadd.f32 1.4214138, %v414_v59  ;;  %v415_v63 = vmul.f32 %v619_v54, %v413_v60 }
 0x242   : > { %v418_v0 = vmul.f32 %v617_v51, %v416_v61  ;;  %v417_v1 = vadd.f32 1.4214138, %v415_v63 }
 0x244   : > { %v420_v2 = vadd.f32 -0.28449672, %v418_v0  ;;  %v419_v3 = vmul.f32 %v619_v54, %v417_v1 }
 0x246   : > { %v422_v4 = vmul.f32 %v617_v51, %v420_v2  ;;  %v421_v5 = vadd.f32 -0.28449672, %v419_v3 }
 0x248   : > { %v424_v6 = vadd.f32 0.2548296, %v422_v4  ;;  %v423_v7 = vmul.f32 %v619_v54, %v421_v5 }
 0x24a   : > { %v426_v8 = vmul.f32 %v617_v51, %v424_v6  ;;  %v425_v10 = vadd.f32 0.2548296, %v423_v7 }
 0x24c   : > { %v436_v11 = vmul.f32 %v621_v9, %v426_v8  ;;  %v427_v12 = vmul.f32 %v619_v54, %v425_v10 }
 0x24e   : > { %v438_v14 = vsub.f32 1.0, %v436_v11  ;;  %v437_v15 = vmul.f32 %v623_v13, %v427_v12 }
 0x250   : > { %v442_v16 = vsub.f32 0.0, %v438_v14  ;;  %v439_v17 = vsub.f32 1.0, %v437_v15 }
 0x252   : > { %v444_v18 = vsel %vm440_vm2, %v438_v14, %v442_v16  ;;  %v443_v21 = vsub.f32 0.0, %v439_v17 }
 0x253   : > { %v446_v20 = vadd.f32 1.0, %v444_v18 }
 0x254   : > { %v445_v23 = vsel %vm441_vm3, %v439_v17, %v443_v21 }
 0x255   : > { %v448_v22 = vmul.f32 %v446_v20, %v396_v19  ;;  %v447_v25 = vadd.f32 1.0, %v445_v23 }
 0x257   : > { %450 = vst [vmem:[%s277_s14] sm:$0xff] %v448_v22  ;;  %v449_v26 = vmul.f32 %v447_v25, %v397_v24 }
 0x259   : > { %451 = vst [vmem:[%s277_s14 + $0x8] sm:$0xff] %v449_v26 }
 0x25a PF: > { %s15_s20 = sadd.s32 1, %s646_s20   ;;  %s746_s18 = smov %s642_s19 }
 0x25b   : > { %p12_p5 = scmp.ge.s32.totalorder %s15_s20, 4   ;;  %s747_s19 = smov %s749_s21 }
 0x25d   :  { %14 = sbr.rel (!%p12_p5) target bundleno = 2 (0x2), region = 76 }

// kernel: mae_forward.34
= control target key start
LH: loop header
LB: loop body
LE: loop exit
PB: predicated region body
PF: predicated region fallthrough
CT: control target
= control target key end

     0   :  { %s725_s15 = smov 0   ;;  %s727_s16 = smov 0   ;;  %s796_s0 = inlined_call_operand.vmem [shape: f32[32,128], index: 0, kind: input, shape index: {}]   ;;  %s797_s1 = inlined_call_operand.vmem [shape: bf16[128,32], index: 1, kind: input, shape index: {}]   ;;  %s798_s2 = inlined_call_operand.vmem [shape: f32[1,32], index: 2, kind: input, shape index: {}]   ;;  %s799_s3 = inlined_call_operand.vmem [shape: f32[32,32], index: 3, kind: input, shape index: {}]   ;;  %s800_s4 = inlined_call_operand.vmem [shape: f32[32,32], index: 4, kind: output, shape index: {}]  }
   0x1   :  { %s729_s17 = smov 0  }
   0x2 LB: > { %s26_s18 = sadd.s32 1, %s692_s16  ;;  %p585_p0 = scmp.ge.s32.totalorder %s696_s17, 1  ;;  %s696_s17 = sphi %s729_s17, %s14_s17   ;;  %s692_s16 = sphi %s727_s16, %s802_s16   ;;  %s688_s15 = sphi %s725_s15, %s801_s15  }
   0x3   : > { %p28_p1 = scmp.ge.s32.totalorder %s26_s18, 2  ;;  %p210_p2 = scmp.lt.s32.totalorder %s696_s17, 3 }
   0x5   : > { %s804_s18 = smov (%p28_p1, %s26_s18), 0  ;;  %p211_p3 = pnand %p585_p0, %p210_p2 }
   0x6   : > { %v658_v0 = vld [vmem:[%s797_s1] sm:$0xff] (!%p211_p3)   ;;  %v698_v1 = vmov (!%p211_p3), 0.0   ;;  %v659_v2 = vld [vmem:[%s797_s1 + $0x8] sm:$0xff] (!%p211_p3)   ;;  %vm699_vm0 = vmmov (!%p211_p3), 0   ;;  %v660_v3 = vld [vmem:[%s797_s1 + $0x10] sm:$0xff] (!%p211_p3)   ;;  %s586_s25 = sshll.u32 (!%p211_p3), %s688_s15, 1 }
   0x7   : > { %214 = sbr.rel (%p211_p3) target bundleno = 306 (0x132), region = 36  ;;  %612 = vmatprep.subr.bf16.mxu0 (!%p211_p3), %v698_v1  ;;  %628 = vmatprep.mubr.msk.bf16.mxu0 (!%p211_p3), %vm699_vm0, %v698_v1  ;;  %v661_v4 = vld [vmem:[%s797_s1 + $0x18] sm:$0xff] (!%p211_p3)   ;;  %p255_p4 = scmp.lt.s32.totalorder (!%p211_p3), %s586_s25, 3  ;;  %v662_v5 = vld [vmem:[%s797_s1 + $0x20] sm:$0xff] (!%p211_p3)   ;;  %v663_v6 = vld [vmem:[%s797_s1 + $0x28] sm:$0xff] (!%p211_p3)   ;;  %vm459_vm3 = vcmask (!%p211_p3), 261120  }
   0x8   : > { %613 = vmatpush3.bf16.msra.mxu0 (!%p211_p3), %v658_v0  ;;  %v664_v7 = vld [vmem:[%s797_s1 + $0x30] sm:$0xff] (!%p211_p3)   ;;  %v665_v8 = vld [vmem:[%s797_s1 + $0x38] sm:$0xff] (!%p211_p3)   ;;  %v592_v12 = vld [vmem:[%s798_s2] ss:$0 sm:$0xff] (!%p211_p3) }
   0x9   : > { %614 = vmatprep.subr.bf16.mxu0 (!%p211_p3), %v698_v1 }
   0xc   : > { %615 = vmatpush3.bf16.msra.mxu0 (!%p211_p3), %v659_v2 }
   0xd   : > { %616 = vmatprep.subr.bf16.mxu0 (!%p211_p3), %v698_v1 }
   0xe   : > { %s806_s25 = smov (!%p255_p4, %s586_s25), 3 }
   0xf   : > { %s764_s6 = sshll.u32 %s806_s25, 3 }
  0x10   : > { %617 = vmatpush3.bf16.msra.mxu0 %v660_v3  ;;  %s258_s11 = scalar_lea.vmem %s796_s0, %s764_s6  ;;  %s274_s21 = scalar_lea.vmem %s799_s3, %s764_s6 }
  0x11   : > { %618 = vmatprep.subr.bf16.mxu0 %v698_v1  ;;  %v286_v9 = vld [vmem:[%s258_s11] sm:$0xff]  ;;  %v287_v10 = vld [vmem:[%s258_s11 + $0x8] sm:$0xff]  ;;  %s283_s24 = scalar_lea.vmem %s800_s4, %s764_s6 }
  0x12   : > { %v288_v11 = vpack.c.bf16 %v287_v10, %v286_v9  ;;  %v455_v0 = vld [vmem:[%s274_s21] sm:$0xff] }
  0x14   : > { %619 = vmatpush3.bf16.msra.mxu0 %v661_v4 }
  0x15   : > { %620 = vmatprep.subr.bf16.mxu0 %v698_v1 }
  0x18   : > { %621 = vmatpush3.bf16.msra.mxu0 %v662_v5 }
  0x19   : > { %622 = vmatprep.subr.bf16.mxu0 %v698_v1 }
  0x1c   : > { %623 = vmatpush3.bf16.msra.mxu0 %v663_v6  ;;  %v456_v6 = vld [vmem:[%s274_s21 + $0x8] sm:$0xff] }
  0x1d   : > { %624 = vmatprep.subr.bf16.mxu0 %v698_v1 }
  0x20   : > { %625 = vmatpush3.bf16.msra.mxu0 %v664_v7 }
  0x21   : > { %626 = vmatprep.subr.bf16.mxu0 %v698_v1 }
  0x24   : > { %627 = vmatpush3.bf16.msra.mxu0 %v665_v8 }
  0x27   : > { %629 = vmatmul.mubr.bf16.vlgmr.msra.gmra.mrb[0].mxu0 %v288_v11 }
  0xfa   : > { %v394_v13 = vpop.f32.mrb[0].mxu0 }
  0xfb   : > { %v395_v14 = vadd.f32 %v592_v12, %v394_v13  ;;  %v630_v15 = vpop.f32.mrb[1].mxu0 }
  0xfc   : > { %v397_v16 = vpop.f32.mrb[2].mxu0 }
  0xfd   : > { %v403_v17 = vmul.f32 0.70710677, %v395_v14  ;;  %v398_v18 = vadd.f32 %v592_v12, %v397_v16  ;;  %v631_v19 = vpop.f32.mrb[3].mxu0  ;;  %v401_v61 = vmul.f32 0.5, %v395_v14 }
  0xff   : > { %v405_v20 = vand.u32 2147483647, %v403_v17  ;;  %v404_v21 = vmul.f32 0.70710677, %v398_v18  ;;  %vm445_vm1 = vcmp.ge.f32.partialorder %v403_v17, 0.0  ;;  %v402_v3 = vmul.f32 0.5, %v398_v18 }
 0x101   : > { %v407_v22 = vmul.f32 0.3275911, %v405_v20  ;;  %v406_v23 = vand.u32 2147483647, %v404_v21  ;;  %v433_v27 = vsub.f32 0.0, %v405_v20  ;;  %vm446_vm2 = vcmp.ge.f32.partialorder %v404_v21, 0.0 }
 0x103   : > { %v409_v24 = vadd.f32 1.0, %v407_v22  ;;  %v408_v25 = vmul.f32 0.3275911, %v406_v23  ;;  %v434_v28 = vsub.f32 0.0, %v406_v23  ;;  %v435_v30 = vmul.f32 %v433_v27, %v405_v20 }
 0x105   : > { %666 = vrcp.f32 %v409_v24  ;;  %v410_v26 = vadd.f32 1.0, %v408_v25  ;;  %v436_v34 = vmul.f32 %v434_v28, %v406_v23  ;;  %v437_v35 = vmul.f32 1.442695, %v435_v30 }
 0x107   : > { %668 = vrcp.f32 %v410_v26  ;;  %v439_v40 = vmul.f32 1.442695, %v436_v34 }
 0x108   : > { %670 = vpow2.f32 %v437_v35 }
 0x109   : > { %672 = vpow2.f32 %v439_v40 }
 0x10f   : > { %v667_v29 = vpop.eup %666 }
 0x110   : > { %v415_v31 = vmul.f32 1.0614054, %v667_v29 }
 0x111   : > { %v669_v32 = vpop.eup %668 }
 0x112   : > { %v417_v33 = vadd.f32 -1.4531521, %v415_v31  ;;  %v416_v36 = vmul.f32 1.0614054, %v669_v32  ;;  %v671_v51 = vpop.eup %670 }
 0x113   : > { %v673_v55 = vpop.eup %672 }
 0x114   : > { %v419_v37 = vmul.f32 %v667_v29, %v417_v33  ;;  %v418_v38 = vadd.f32 -1.4531521, %v416_v36 }
 0x116   : > { %v421_v39 = vadd.f32 1.4214138, %v419_v37  ;;  %v420_v41 = vmul.f32 %v669_v32, %v418_v38 }
 0x118   : > { %v423_v42 = vmul.f32 %v667_v29, %v421_v39  ;;  %v422_v43 = vadd.f32 1.4214138, %v420_v41 }
 0x11a   : > { %v425_v44 = vadd.f32 -0.28449672, %v423_v42  ;;  %v424_v45 = vmul.f32 %v669_v32, %v422_v43 }
 0x11c   : > { %v427_v46 = vmul.f32 %v667_v29, %v425_v44  ;;  %v426_v47 = vadd.f32 -0.28449672, %v424_v45 }
 0x11e   : > { %v429_v48 = vadd.f32 0.2548296, %v427_v46  ;;  %v428_v49 = vmul.f32 %v669_v32, %v426_v47 }
 0x120   : > { %v431_v50 = vmul.f32 %v667_v29, %v429_v48  ;;  %v430_v52 = vadd.f32 0.2548296, %v428_v49 }
 0x122   : > { %v441_v53 = vmul.f32 %v671_v51, %v431_v50  ;;  %v432_v54 = vmul.f32 %v669_v32, %v430_v52 }
 0x124   : > { %v443_v56 = vsub.f32 1.0, %v441_v53  ;;  %v442_v57 = vmul.f32 %v673_v55, %v432_v54 }
 0x126   : > { %v447_v58 = vsub.f32 0.0, %v443_v56  ;;  %v444_v59 = vsub.f32 1.0, %v442_v57 }
 0x128   : > { %v449_v60 = vsel %vm445_vm1, %v443_v56, %v447_v58  ;;  %v448_v63 = vsub.f32 0.0, %v444_v59 }
 0x129   : > { %v451_v62 = vadd.f32 1.0, %v449_v60 }
 0x12a   : > { %v450_v2 = vsel %vm446_vm2, %v444_v59, %v448_v63 }
 0x12b   : > { %v453_v1 = vmul.f32 %v451_v62, %v401_v61  ;;  %v452_v4 = vadd.f32 1.0, %v450_v2 }
 0x12d   : > { %v457_v5 = vadd.f32 %v455_v0, %v453_v1  ;;  %v454_v7 = vmul.f32 %v452_v4, %v402_v3 }
 0x12f   : > { %460 = vst.msk [vmem:[%s283_s24] sm:$0xff] %vm459_vm3, %v457_v5  ;;  %v458_v8 = vadd.f32 %v456_v6, %v454_v7 }
 0x131   : > { %461 = vst.msk [vmem:[%s283_s24 + $0x8] sm:$0xff] %vm459_vm3, %v458_v8 }
 0x132 PF: > { %s14_s17 = sadd.s32 1, %s696_s17   ;;  %s801_s15 = smov %s692_s16 }
 0x133   : > { %p11_p5 = scmp.ge.s32.totalorder %s14_s17, 4   ;;  %s802_s16 = smov %s804_s18 }
 0x135   :  { %13 = sbr.rel (!%p11_p5) target bundleno = 2 (0x2), region = 75 }

// kernel: mae_forward.35
= control target key start
LH: loop header
LB: loop body
LE: loop exit
PB: predicated region body
PF: predicated region fallthrough
CT: control target
= control target key end

     0   :  { %s539_s12 = smov 0   ;;  %s541_s13 = smov 0   ;;  %s587_s0 = inlined_call_operand.vmem [shape: f32[32,32], index: 0, kind: input, shape index: {}]   ;;  %s588_s1 = inlined_call_operand.vmem [shape: bf16[32,192], index: 1, kind: input, shape index: {}]   ;;  %s589_s2 = inlined_call_operand.vmem [shape: f32[1,192], index: 2, kind: input, shape index: {}]   ;;  %s590_s3 = inlined_call_operand.vmem [shape: f32[32,192], index: 3, kind: output, shape index: {}]  }
   0x1   :  { %s543_s14 = smov 0  }
   0x2 LB: > { %s25_s15 = sadd.s32 1, %s512_s13  ;;  %p449_p0 = scmp.ge.s32.totalorder %s516_s14, 1  ;;  %s516_s14 = sphi %s543_s14, %s13_s14   ;;  %s512_s13 = sphi %s541_s13, %s592_s13   ;;  %s508_s12 = sphi %s539_s12, %s591_s12  }
   0x3   : > { %p27_p1 = scmp.ge.s32.totalorder %s25_s15, 2  ;;  %p173_p2 = scmp.lt.s32.totalorder %s516_s14, 3 }
   0x5   : > { %s594_s15 = smov (%p27_p1, %s25_s15), 0  ;;  %p174_p3 = pnand %p449_p0, %p173_p2 }
   0x6   : > { %v488_v0 = vld [vmem:[%s588_s1 + $0x4] ss:$8 sps:$4 sm:$0xff] (!%p174_p3)   ;;  %s450_s18 = sshll.u32 (!%p174_p3), %s508_s12, 1  ;;  %v490_v1 = vld [vmem:[%s588_s1] ss:$8 sps:$4 sm:$0xff] (!%p174_p3)   ;;  %v518_v2 = vmov (!%p174_p3), 0   ;;  %v250_v8 = vlaneseq (!%p174_p3) }
   0x7   : > { %177 = sbr.rel (%p174_p3) target bundleno = 238 (0xee), region = 32  ;;  %316 = vmatprep.mubr.bf16.mxu0 (!%p174_p3), %v518_v2  ;;  %p212_p4 = scmp.lt.s32.totalorder (!%p174_p3), %s450_s18, 3  ;;  %284 = vmatprep.subr.bf16.mxu0 (!%p174_p3), %v488_v0  ;;  %v491_v3 = vld [vmem:[%s588_s1 + $0x14] ss:$8 sps:$4 sm:$0xff] (!%p174_p3)   ;;  %v493_v4 = vld [vmem:[%s588_s1 + $0x10] ss:$8 sps:$4 sm:$0xff] (!%p174_p3)  }
   0x8   : > { %285 = vmatpush1.bf16.msra.mxu0 (!%p174_p3), %v490_v1  ;;  %vm280_vm0 = vcmask (!%p174_p3), 261120   ;;  %v251_v9 = vshrl.u32 (!%p174_p3), %v250_v8, 7  ;;  %v248_v11 = vld [vmem:[%s589_s2] sm:$0x3] (!%p174_p3)  ;;  %vm328_vm1 = vcmask (!%p174_p3), 523264  }
   0x9   : > { %286 = vmatprep.subr.bf16.mxu0 (!%p174_p3), %v491_v3 }
   0xa   : > { %v252_v10 = vsub.s32 (!%p174_p3), 0, %v251_v9  ;;  %v256_v12 = vsub.s32 (!%p174_p3), 1, %v251_v9 }
   0xc   : > { %287 = vmatpush1.bf16.msra.mxu0 (!%p174_p3), %v493_v4  ;;  %v253_v13 = vrot.slane (!%p174_p3), %v248_v11, %v252_v10  ;;  %v257_v14 = vrot.slane (!%p174_p3), %v248_v11, %v256_v12 }
   0xe   : > { %s596_s18 = smov (!%p212_p4, %s450_s18), 3 }
   0xf   : > { %s451_s25 = sshll.u32 %s596_s18, 3  ;;  %s462_s4 = sshll.u32 %s596_s18, 4 }
  0x10   : > { %s215_s28 = scalar_lea.vmem %s587_s0, %s451_s25  ;;  %s237_s7 = scalar_lea.vmem %s590_s3, %s462_s4 }
  0x11   : > { %v241_v5 = vld [vmem:[%s215_s28] sm:$0xff]  ;;  %v242_v6 = vld [vmem:[%s215_s28 + $0x8] sm:$0xff] }
  0x12   : > { %v243_v7 = vpack.c.bf16 %v242_v6, %v241_v5 }
  0x14   : > { %459 = vmatmul.mubr.msk.bf16.vlgmr.msra.gmra.mrb[0].mxu0 %vm280_vm0, %v243_v7 }
  0xe7   : > { %v318_v15 = vpop.f32.mrb[0].mxu0 }
  0xe8   : > { %v319_v16 = vadd.f32 %v318_v15, %v253_v13  ;;  %v320_v17 = vpop.f32.mrb[1].mxu0 }
  0xe9   : > { %v321_v18 = vadd.f32 %v320_v17, %v257_v14  ;;  %v322_v19 = vpop.f32.mrb[2].mxu0 }
  0xea   : > { %327 = vst [vmem:[%s237_s7] sm:$0xff] %v319_v16  ;;  %v323_v20 = vadd.f32 %v322_v19, %v253_v13  ;;  %v324_v21 = vpop.f32.mrb[3].mxu0 }
  0xeb   : > { %329 = vst.msk [vmem:[%s237_s7 + $0x8] sm:$0xff] %vm328_vm1, %v321_v18  ;;  %v325_v22 = vadd.f32 %v324_v21, %v257_v14 }
  0xec   : > { %330 = vst [vmem:[%s237_s7 + $0x10] sm:$0xff] %v323_v20 }
  0xed   : > { %331 = vst.msk [vmem:[%s237_s7 + $0x18] sm:$0xff] %vm328_vm1, %v325_v22 }
  0xee PF: > { %s13_s14 = sadd.s32 1, %s516_s14   ;;  %s591_s12 = smov %s512_s13 }
  0xef   : > { %p10_p5 = scmp.ge.s32.totalorder %s13_s14, 4   ;;  %s592_s13 = smov %s594_s15 }
  0xf1   :  { %12 = sbr.rel (!%p10_p5) target bundleno = 2 (0x2), region = 68 }

</bundles_post_ra>
